<compile_context>
chip_gen: v7x
topology: tpu7x:2x2x1
jax: 0.10.0
libtpu: 0.0.40
codegen_flags: <defaults>
</compile_context>

<pallas_src>
import functools

import jax
import jax.numpy as jnp
from jax.experimental import pallas as pl
from jax.experimental.pallas import tpu as pltpu


# ----------------------------- configuration (size/arch/train) -----------------------------
SIZE_CONFIG = dict(num_nodes=16, out_size=2, in_size=4, hidden_size=32,
                   rnn_layers=2, gcn_layers=2)
ARCH_CONFIG = dict(geo_feat=True, conv_type="gcn", num_heads=None, horizon=3, window=8)
TRAIN_CONFIG = dict(optimizer="adam", reg_const=1e-4, lr=1e-3)

_LANE = 128   # lane width used to pad the readout so its stores are unmasked
_KPAD = 8     # sublane-aligned padding for the tiny input-feature contraction dims


def _round_up(v, m):
    return ((v + m - 1) // m) * m


# =============================== fused Pallas kernel ===============================

def _fused_forward_kernel(n_rnn, n_gcn, B, T, N, H, use_geo, want_graph, *refs):
    """Entire GraphForecastingExpert forward in one VMEM-resident invocation.

    Ref order: x_rows, [gf], enc_wx, [enc_wg], enc_b,
               [w_ih_f, w_hh_f, bias_f, b_hn] * n_rnn,
               a_block, [gcn_w, gcn_b] * n_gcn, read_w, read_b,
               out_ref, [g_ref], gi0_scratch
    """
    M = B * N
    H2, H3 = 2 * H, 3 * H

    it = iter(refs)
    x_ref = next(it)                                   # (B*T*N, Cpad), rows (b,t,n)-major
    gf_ref = next(it) if use_geo else None             # (M, Gpad),     rows (b,n)-major
    enc_wx = next(it)                                  # (Cpad, H)
    enc_wg = next(it) if use_geo else None             # (Gpad, H)
    enc_b = next(it)                                   # (1, H)
    gru = [tuple(next(it) for _ in range(4)) for _ in range(n_rnn)]
    a_ref = next(it)                                   # (M, M) block-diag normalized adj
    gcn = [tuple(next(it) for _ in range(2)) for _ in range(n_gcn)]
    read_w = next(it)                                  # (H, lane-padded)
    read_b = next(it)                                  # (1, lane-padded)
    out_ref = next(it)                                 # (M, lane-padded)
    g_ref = next(it) if want_graph else None           # (M, H)
    gi0_scr = next(it)                                 # VMEM scratch (B*T*N, 3H)

    w_ih0, _, bias0, _ = gru[0]

    # ---- 1) hoisted encoder + layer-0 fused input-gate GEMMs (off the recurrence path).
    #      Result is staged in VMEM (not held in vregs across the unrolled recurrence).
    enc_x = (jnp.dot(x_ref[...], enc_wx[...], preferred_element_type=jnp.float32)
             + enc_b[...])                             # (B*T*N, H)
    gi0_scr[...] = (jnp.dot(enc_x, w_ih0[...], preferred_element_type=jnp.float32)
                    + bias0[...])                      # (B*T*N, 3H), b_hr/b_hz folded in

    if use_geo:
        # Time-invariant geo contribution, added per timestep slice (exact algebra:
        # enc = x@Wx + gf@Wg + b  =>  gi0 = (x@Wx + b)@Wih + (gf@Wg)@Wih + bias).
        geo_h = jnp.dot(gf_ref[...], enc_wg[...], preferred_element_type=jnp.float32)
        gi0_geo = jnp.dot(geo_h, w_ih0[...], preferred_element_type=jnp.float32)  # (M,3H)
    else:
        gi0_geo = None

    # ---- 2) stacked GRU, wavefront over (layer, time): serial chain = T + n_rnn - 1 cells.
    # Per-layer constants hoisted out of the unrolled loop (JAX doesn't CSE broadcasts).
    wih_v = [None if li == 0 else gru[li][0][...] for li in range(n_rnn)]
    whh_v = [gru[li][1][...] for li in range(n_rnn)]
    bias_b = [None if li == 0 else jnp.broadcast_to(gru[li][2][...], (M, H3))
              for li in range(n_rnn)]
    bhn_b = [jnp.broadcast_to(gru[li][3][...], (M, H)) for li in range(n_rnn)]

    def gru_cell(gi, h, w_hh_f, b_hn, first):
        # PyTorch GRU gate order (r, z, n); b_hr/b_hz are already folded into gi.
        if first:                                      # h == 0 -> skip recurrent matmul
            rz = jax.nn.sigmoid(gi[:, :H2])
            r, z = rz[:, :H], rz[:, H:]
            n = jnp.tanh(gi[:, H2:] + r * b_hn)
            return (1.0 - z) * n
        gh = jnp.dot(h, w_hh_f, preferred_element_type=jnp.float32)   # one fused (M,3H)
        rz = jax.nn.sigmoid(gi[:, :H2] + gh[:, :H2])
        r, z = rz[:, :H], rz[:, H:]
        n = jnp.tanh(gi[:, H2:] + r * (gh[:, H2:] + b_hn))
        return (1.0 - z) * n + z * h

    def gi0_at(t):
        # Gather timestep t from the (b,t,n)-major scratch -> (M, 3H), (b,n)-major rows.
        parts = [gi0_scr[(b * T + t) * N:(b * T + t) * N + N, :] for b in range(B)]
        gi = parts[0] if B == 1 else jnp.concatenate(parts, axis=0)
        return gi if gi0_geo is None else gi + gi0_geo

    h = [None] * n_rnn
    for wave in range(T + n_rnn - 1):
        # Deeper layers first within a wave so h[li-1] still holds timestep (wave - li).
        for li in reversed(range(n_rnn)):
            t = wave - li
            if t < 0 or t >= T:
                continue
            if li == 0:
                gi = gi0_at(t)
            else:
                # Input-gate GEMM for layer li at step t: depends only on h[li-1] from the
                # previous wave, so it sits off this layer's serialized critical path.
                gi = (jnp.dot(h[li - 1], wih_v[li], preferred_element_type=jnp.float32)
                      + bias_b[li])
            h[li] = gru_cell(gi, h[li], whh_v[li], bhn_b[li], first=(t == 0))
    # TODO(synk): inter-layer GRU dropout (p=0.2) is an eval-mode identity; omitted.

    # ---- 3) GCN decoder: relu(A_norm @ (G @ W) + b); batch folded into block-diag A,
    #      so each layer is one feature GEMM + one propagation GEMM.
    g = h[n_rnn - 1]                                   # (M, H), rows (b, n)-major
    a = a_ref[...]
    for (w, b) in gcn:
        gw = jnp.dot(g, w[...], preferred_element_type=jnp.float32)
        g = jnp.maximum(jnp.dot(a, gw, preferred_element_type=jnp.float32) + b[...], 0.0)
    if want_graph:
        g_ref[...] = g

    # ---- 4) readout linear, lane-dense (128-wide zero-padded) so stores are unmasked.
    out_ref[...] = (jnp.dot(g, read_w[...], preferred_element_type=jnp.float32)
                    + read_b[...])


# =============================== JAX glue ===============================

def build_norm_adj(edge_index, edge_weight, num_nodes):
    """Dense symmetrically-normalized adjacency with self loops (GCN normalization).

    Call once per graph (outside the per-step forward)."""
    A = jnp.zeros((num_nodes, num_nodes), jnp.float32)
    A = A.at[edge_index[0], edge_index[1]].add(edge_weight.astype(jnp.float32))
    A = A + jnp.eye(num_nodes, dtype=jnp.float32)
    deg = A.sum(axis=1)
    d_inv_sqrt = jax.lax.rsqrt(jnp.maximum(deg, 1e-6))
    return A * d_inv_sqrt[:, None] * d_inv_sqrt[None, :]


def init_params(key):
    hid = SIZE_CONFIG["hidden_size"]
    in_sz = SIZE_CONFIG["in_size"]
    geo_sz = 2 if ARCH_CONFIG["geo_feat"] else 0
    out_sz = SIZE_CONFIG["out_size"]
    horizon = ARCH_CONFIG["horizon"]

    def nrm(k, shape, scale=0.1):
        return scale * jax.random.normal(k, shape, jnp.float32)

    n_keys = 4 + 4 * SIZE_CONFIG["rnn_layers"] + 2 * SIZE_CONFIG["gcn_layers"]
    keys = iter(jax.random.split(key, n_keys))

    params = {
        "enc_w": nrm(next(keys), (in_sz + geo_sz, hid)),   # rows: [x features | geo feats]
        "enc_b": nrm(next(keys), (hid,)),
        "gru": [],
        "gcn": [],
        "read_w": nrm(next(keys), (hid, horizon * out_sz)),
        "read_b": nrm(next(keys), (horizon * out_sz,)),
    }
    for _ in range(SIZE_CONFIG["rnn_layers"]):
        params["gru"].append(dict(
            w_ih=nrm(next(keys), (3, hid, hid)),   # per-gate (r, z, n), applied as x @ W
            w_hh=nrm(next(keys), (3, hid, hid)),   # per-gate recurrent weights
            b_ih=nrm(next(keys), (3, hid)),
            b_hh=nrm(next(keys), (3, hid)),
        ))
    for _ in range(SIZE_CONFIG["gcn_layers"]):
        params["gcn"].append(dict(w=nrm(next(keys), (hid, hid)),
                                  b=nrm(next(keys), (hid,))))
    return params


def prepare_expert(params, a_norm, batch_size):
    """Precompute kernel-ready weights once per (graph, parameter update), NOT per step:
    kron block-diagonal adjacency, lane-fused/bias-folded GRU weights, split + padded
    encoder weights, lane-padded readout weights."""
    hid = SIZE_CONFIG["hidden_size"]
    in_sz = SIZE_CONFIG["in_size"]
    geo = ARCH_CONFIG["geo_feat"]
    ro = ARCH_CONFIG["horizon"] * SIZE_CONFIG["out_size"]
    ro_pad = _round_up(ro, _LANE)
    c_pad = _round_up(in_sz, _KPAD)
    g_pad = _round_up(2, _KPAD)

    enc_w = params["enc_w"]
    prepared = {
        "enc_wx": jnp.zeros((c_pad, hid), jnp.float32).at[:in_sz].set(enc_w[:in_sz]),
        "enc_b": params["enc_b"].reshape(1, hid),
        "gru": [],
        "a_block": jnp.kron(jnp.eye(batch_size, dtype=jnp.float32), a_norm),
        "gcn": [(lyr["w"], lyr["b"].reshape(1, hid)) for lyr in params["gcn"]],
        "read_w": jnp.pad(params["read_w"], ((0, 0), (0, ro_pad - ro))),
        "read_b": jnp.pad(params["read_b"], (0, ro_pad - ro)).reshape(1, ro_pad),
    }
    if geo:
        prepared["enc_wg"] = (jnp.zeros((g_pad, hid), jnp.float32)
                              .at[:2].set(enc_w[in_sz:in_sz + 2]))
    for lyr in params["gru"]:
        w_ih_f = jnp.concatenate([lyr["w_ih"][0], lyr["w_ih"][1], lyr["w_ih"][2]], axis=1)
        w_hh_f = jnp.concatenate([lyr["w_hh"][0], lyr["w_hh"][1], lyr["w_hh"][2]], axis=1)
        # Fold b_hr/b_hz into the hoisted input gates; b_hn must stay inside r*(...).
        bias_f = jnp.concatenate([lyr["b_ih"][0] + lyr["b_hh"][0],
                                  lyr["b_ih"][1] + lyr["b_hh"][1],
                                  lyr["b_ih"][2]], axis=0).reshape(1, 3 * hid)
        b_hn = lyr["b_hh"][2].reshape(1, hid)
        prepared["gru"].append((w_ih_f, w_hh_f, bias_f, b_hn))
    return jax.tree_util.tree_map(jnp.asarray, prepared)


@functools.partial(jax.jit, static_argnames=("return_graph_output",))
def graph_forecasting_expert_forward(prepared, x, graph_features=None,
                                     return_graph_output=False):
    """x: [B, T, N, C]; graph_features: [B, N, 2] or None; prepared: from prepare_expert."""
    B, T, N, C = x.shape
    hid = prepared["enc_b"].shape[1]
    ro_pad = prepared["read_w"].shape[1]
    c_pad = prepared["enc_wx"].shape[0]
    out_sz = SIZE_CONFIG["out_size"]
    horizon = ARCH_CONFIG["horizon"]
    ro = horizon * out_sz
    n_rnn = len(prepared["gru"])
    n_gcn = len(prepared["gcn"])
    M = B * N
    use_geo = ("enc_wg" in prepared) and (graph_features is not None)

    # Only per-call host prep: a free reshape + one tiny zero-pad of the feature dim.
    # The time-major gather happens inside the kernel (static slices of the gi scratch).
    x_rows = jnp.pad(x.reshape(B * T * N, C), ((0, 0), (0, c_pad - C)))

    args = [x_rows]
    if use_geo:
        g_pad = prepared["enc_wg"].shape[0]
        gf = graph_features.reshape(M, graph_features.shape[-1])
        args.append(jnp.pad(gf, ((0, 0), (0, g_pad - gf.shape[1]))))
    args.append(prepared["enc_wx"])
    if use_geo:
        args.append(prepared["enc_wg"])
    args.append(prepared["enc_b"])
    for lyr in prepared["gru"]:
        args += list(lyr)
    args.append(prepared["a_block"])
    for (w, b) in prepared["gcn"]:
        args += [w, b]
    args += [prepared["read_w"], prepared["read_b"]]

    vmem = pl.BlockSpec(memory_space=pltpu.MemorySpace.VMEM)
    if return_graph_output:
        out_shape = (jax.ShapeDtypeStruct((M, ro_pad), jnp.float32),
                     jax.ShapeDtypeStruct((M, hid), jnp.float32))
        out_specs = (vmem, vmem)
    else:
        out_shape = jax.ShapeDtypeStruct((M, ro_pad), jnp.float32)
        out_specs = vmem

    result = pl.pallas_call(
        functools.partial(_fused_forward_kernel, n_rnn, n_gcn, B, T, N, hid,
                          use_geo, return_graph_output),
        out_shape=out_shape,
        in_specs=[vmem] * len(args),
        out_specs=out_specs,
        scratch_shapes=[pltpu.VMEM((B * T * N, 3 * hid), jnp.float32)],
    )(*args)

    out_pad = result[0] if return_graph_output else result
    # Readout last-dim is horizon-major '(h p)'; slice the lane padding, then
    # rearrange to [B, horizon, N, out_size].
    out = out_pad[:, :ro].reshape(B, N, horizon, out_sz).transpose(0, 2, 1, 3)
    if return_graph_output:
        return out, result[1].reshape(B, N, hid)
    return out


# =============================== driver ===============================

if __name__ == "__main__":
    key = jax.random.PRNGKey(0)
    k_param, k_x, k_gf, k_ew = jax.random.split(key, 4)

    B = 2
    T = ARCH_CONFIG["window"]
    N = SIZE_CONFIG["num_nodes"]
    C = SIZE_CONFIG["in_size"]

    params = init_params(k_param)

    x = jax.random.normal(k_x, (B, T, N, C), jnp.float32)
    graph_features = jax.random.normal(k_gf, (B, N, 2), jnp.float32)

    # ring graph (both directions)
    src = jnp.arange(N, dtype=jnp.int32)
    dst = (src + 1) % N
    edge_index = jnp.concatenate(
        [jnp.stack([src, dst], axis=0), jnp.stack([dst, src], axis=0)], axis=1)  # [2, 2N]
    edge_weight = 0.5 + jax.random.uniform(k_ew, (edge_index.shape[1],), jnp.float32)

    # Per-graph / per-parameter-update precompute (off the per-call hot path).
    a_norm = build_norm_adj(edge_index, edge_weight, N)
    prepared = prepare_expert(params, a_norm, batch_size=B)

    out = graph_forecasting_expert_forward(prepared, x, graph_features=graph_features)
    out = jax.block_until_ready(out)

    expected = (B, ARCH_CONFIG["horizon"], N, SIZE_CONFIG["out_size"])
    assert out.shape == expected, (out.shape, expected)
    assert bool(jnp.all(jnp.isfinite(out)))

    out2, g_out = graph_forecasting_expert_forward(
        prepared, x, graph_features=graph_features, return_graph_output=True)
    jax.block_until_ready((out2, g_out))
    assert g_out.shape == (B, N, SIZE_CONFIG["hidden_size"]), g_out.shape
    assert bool(jnp.all(jnp.isfinite(g_out)))
    assert bool(jnp.allclose(out, out2, atol=1e-5))

    print("KERNEL_OK")
</pallas_src>

<mosaic_0001>
module attributes {stable_mosaic.version = 11 : i64} {
  func.func @_fused_forward_kernel(%arg0: memref<256x8xf32, #tpu.memory_space<vmem>>, %arg1: memref<32x8xf32, #tpu.memory_space<vmem>>, %arg2: memref<8x32xf32, #tpu.memory_space<vmem>>, %arg3: memref<8x32xf32, #tpu.memory_space<vmem>>, %arg4: memref<1x32xf32, #tpu.memory_space<vmem>>, %arg5: memref<32x96xf32, #tpu.memory_space<vmem>>, %arg6: memref<32x96xf32, #tpu.memory_space<vmem>>, %arg7: memref<1x96xf32, #tpu.memory_space<vmem>>, %arg8: memref<1x32xf32, #tpu.memory_space<vmem>>, %arg9: memref<32x96xf32, #tpu.memory_space<vmem>>, %arg10: memref<32x96xf32, #tpu.memory_space<vmem>>, %arg11: memref<1x96xf32, #tpu.memory_space<vmem>>, %arg12: memref<1x32xf32, #tpu.memory_space<vmem>>, %arg13: memref<32x32xf32, #tpu.memory_space<vmem>>, %arg14: memref<32x32xf32, #tpu.memory_space<vmem>>, %arg15: memref<1x32xf32, #tpu.memory_space<vmem>>, %arg16: memref<32x32xf32, #tpu.memory_space<vmem>>, %arg17: memref<1x32xf32, #tpu.memory_space<vmem>>, %arg18: memref<32x128xf32, #tpu.memory_space<vmem>>, %arg19: memref<1x128xf32, #tpu.memory_space<vmem>>, %arg20: memref<32x128xf32, #tpu.memory_space<vmem>>, %arg21: memref<256x96xf32, #tpu.memory_space<vmem>>) attributes {dimension_semantics = [], scalar_prefetch = 0 : i64, scratch_operands = 1 : i64, tpu.core_type = #tpu.core_type<tc>} {
    %c0 = arith.constant 0 : index
    %c0_0 = arith.constant 0 : index
    %0 = vector.load %arg0[%c0, %c0_0] : memref<256x8xf32, #tpu.memory_space<vmem>>, vector<256x8xf32>
    %c0_1 = arith.constant 0 : index
    %c0_2 = arith.constant 0 : index
    %1 = vector.load %arg2[%c0_1, %c0_2] : memref<8x32xf32, #tpu.memory_space<vmem>>, vector<8x32xf32>
    %cst = arith.constant dense<0.000000e+00> : vector<256x32xf32>
    %2 = tpu.matmul %0, %1, %cst {dimension_numbers = #tpu.dot_dimension_numbers<[1], [0], [0], [1], [0, 0, 1, 1], [], []>} : vector<256x8xf32>, vector<8x32xf32>, vector<256x32xf32> -> vector<256x32xf32>
    %c0_3 = arith.constant 0 : index
    %c0_4 = arith.constant 0 : index
    %3 = vector.load %arg4[%c0_3, %c0_4] : memref<1x32xf32, #tpu.memory_space<vmem>>, vector<1x32xf32>
    %4 = vector.broadcast %3 : vector<1x32xf32> to vector<256x32xf32>
    %5 = arith.addf %2, %4 : vector<256x32xf32>
    %c0_5 = arith.constant 0 : index
    %c0_6 = arith.constant 0 : index
    %6 = vector.load %arg5[%c0_5, %c0_6] : memref<32x96xf32, #tpu.memory_space<vmem>>, vector<32x96xf32>
    %cst_7 = arith.constant dense<0.000000e+00> : vector<256x96xf32>
    %7 = tpu.matmul %5, %6, %cst_7 {dimension_numbers = #tpu.dot_dimension_numbers<[1], [0], [0], [1], [0, 0, 1, 1], [], []>} : vector<256x32xf32>, vector<32x96xf32>, vector<256x96xf32> -> vector<256x96xf32>
    %c0_8 = arith.constant 0 : index
    %c0_9 = arith.constant 0 : index
    %8 = vector.load %arg7[%c0_8, %c0_9] : memref<1x96xf32, #tpu.memory_space<vmem>>, vector<1x96xf32>
    %9 = vector.broadcast %8 : vector<1x96xf32> to vector<256x96xf32>
    %10 = arith.addf %7, %9 : vector<256x96xf32>
    %c0_10 = arith.constant 0 : index
    %c0_11 = arith.constant 0 : index
    %11 = vector.load %arg21[%c0_10, %c0_11] : memref<256x96xf32, #tpu.memory_space<vmem>>, vector<256x96xf32>
    tpu.vector_store %arg21[%c0_10, %c0_11], %10 {strides = array<i32>} : memref<256x96xf32, #tpu.memory_space<vmem>>, vector<256x96xf32>,
    %c0_12 = arith.constant 0 : index
    %c0_13 = arith.constant 0 : index
    %12 = vector.load %arg1[%c0_12, %c0_13] : memref<32x8xf32, #tpu.memory_space<vmem>>, vector<32x8xf32>
    %c0_14 = arith.constant 0 : index
    %c0_15 = arith.constant 0 : index
    %13 = vector.load %arg3[%c0_14, %c0_15] : memref<8x32xf32, #tpu.memory_space<vmem>>, vector<8x32xf32>
    %cst_16 = arith.constant dense<0.000000e+00> : vector<32x32xf32>
    %14 = tpu.matmul %12, %13, %cst_16 {dimension_numbers = #tpu.dot_dimension_numbers<[1], [0], [0], [1], [0, 0, 1, 1], [], []>} : vector<32x8xf32>, vector<8x32xf32>, vector<32x32xf32> -> vector<32x32xf32>
    %c0_17 = arith.constant 0 : index
    %c0_18 = arith.constant 0 : index
    %15 = vector.load %arg5[%c0_17, %c0_18] : memref<32x96xf32, #tpu.memory_space<vmem>>, vector<32x96xf32>
    %cst_19 = arith.constant dense<0.000000e+00> : vector<32x96xf32>
    %16 = tpu.matmul %14, %15, %cst_19 {dimension_numbers = #tpu.dot_dimension_numbers<[1], [0], [0], [1], [0, 0, 1, 1], [], []>} : vector<32x32xf32>, vector<32x96xf32>, vector<32x96xf32> -> vector<32x96xf32>
    %c0_20 = arith.constant 0 : index
    %c0_21 = arith.constant 0 : index
    %17 = vector.load %arg9[%c0_20, %c0_21] : memref<32x96xf32, #tpu.memory_space<vmem>>, vector<32x96xf32>
    %c0_22 = arith.constant 0 : index
    %c0_23 = arith.constant 0 : index
    %18 = vector.load %arg6[%c0_22, %c0_23] : memref<32x96xf32, #tpu.memory_space<vmem>>, vector<32x96xf32>
    %c0_24 = arith.constant 0 : index
    %c0_25 = arith.constant 0 : index
    %19 = vector.load %arg10[%c0_24, %c0_25] : memref<32x96xf32, #tpu.memory_space<vmem>>, vector<32x96xf32>
    %c0_26 = arith.constant 0 : index
    %c0_27 = arith.constant 0 : index
    %20 = vector.load %arg11[%c0_26, %c0_27] : memref<1x96xf32, #tpu.memory_space<vmem>>, vector<1x96xf32>
    %21 = vector.shape_cast %20 : vector<1x96xf32> to vector<1x96xf32>
    %22 = vector.broadcast %21 : vector<1x96xf32> to vector<32x96xf32>
    %c0_28 = arith.constant 0 : index
    %c0_29 = arith.constant 0 : index
    %23 = vector.load %arg8[%c0_28, %c0_29] : memref<1x32xf32, #tpu.memory_space<vmem>>, vector<1x32xf32>
    %24 = vector.shape_cast %23 : vector<1x32xf32> to vector<1x32xf32>
    %25 = vector.broadcast %24 : vector<1x32xf32> to vector<32x32xf32>
    %c0_30 = arith.constant 0 : index
    %c0_31 = arith.constant 0 : index
    %26 = vector.load %arg12[%c0_30, %c0_31] : memref<1x32xf32, #tpu.memory_space<vmem>>, vector<1x32xf32>
    %27 = vector.shape_cast %26 : vector<1x32xf32> to vector<1x32xf32>
    %28 = vector.broadcast %27 : vector<1x32xf32> to vector<32x32xf32>
    %c0_32 = arith.constant 0 : index
    %c0_33 = arith.constant 0 : index
    %29 = vector.load %arg21[%c0_32, %c0_33] : memref<256x96xf32, #tpu.memory_space<vmem>>, vector<16x96xf32>
    %c128 = arith.constant 128 : index
    %c0_34 = arith.constant 0 : index
    %30 = vector.load %arg21[%c128, %c0_34] : memref<256x96xf32, #tpu.memory_space<vmem>>, vector<16x96xf32>
    %31 = tpu.concatenate %29, %30 in 0 : vector<16x96xf32>, vector<16x96xf32> -> vector<32x96xf32>
    %32 = arith.addf %31, %16 : vector<32x96xf32>
    %33 = vector.extract_strided_slice %32 {offsets = [0, 0], sizes = [32, 64], strides = [1, 1]} : vector<32x96xf32> to vector<32x64xf32>
    %34 = arith.negf %33 : vector<32x64xf32>
    %35 = math.exp %34 : vector<32x64xf32>
    %cst_35 = arith.constant 1.000000e+00 : f32
    %36 = vector.broadcast %cst_35 : f32 to vector<32x64xf32>
    %37 = arith.addf %36, %35 : vector<32x64xf32>
    %38 = arith.divf %36, %37 : vector<32x64xf32>
    %39 = vector.extract_strided_slice %38 {offsets = [0, 0], sizes = [32, 32], strides = [1, 1]} : vector<32x64xf32> to vector<32x32xf32>
    %40 = vector.extract_strided_slice %38 {offsets = [0, 32], sizes = [32, 32], strides = [1, 1]} : vector<32x64xf32> to vector<32x32xf32>
    %41 = vector.extract_strided_slice %32 {offsets = [0, 64], sizes = [32, 32], strides = [1, 1]} : vector<32x96xf32> to vector<32x32xf32>
    %42 = arith.mulf %39, %25 : vector<32x32xf32>
    %43 = arith.addf %41, %42 : vector<32x32xf32>
    %44 = math.tanh %43 : vector<32x32xf32>
    %cst_36 = arith.constant 1.000000e+00 : f32
    %45 = vector.broadcast %cst_36 : f32 to vector<32x32xf32>
    %46 = arith.subf %45, %40 : vector<32x32xf32>
    %47 = arith.mulf %46, %44 : vector<32x32xf32>
    %cst_37 = arith.constant dense<0.000000e+00> : vector<32x96xf32>
    %48 = tpu.matmul %47, %17, %cst_37 {dimension_numbers = #tpu.dot_dimension_numbers<[1], [0], [0], [1], [0, 0, 1, 1], [], []>} : vector<32x32xf32>, vector<32x96xf32>, vector<32x96xf32> -> vector<32x96xf32>
    %49 = arith.addf %48, %22 : vector<32x96xf32>
    %50 = vector.extract_strided_slice %49 {offsets = [0, 0], sizes = [32, 64], strides = [1, 1]} : vector<32x96xf32> to vector<32x64xf32>
    %51 = arith.negf %50 : vector<32x64xf32>
    %52 = math.exp %51 : vector<32x64xf32>
    %cst_38 = arith.constant 1.000000e+00 : f32
    %53 = vector.broadcast %cst_38 : f32 to vector<32x64xf32>
    %54 = arith.addf %53, %52 : vector<32x64xf32>
    %55 = arith.divf %53, %54 : vector<32x64xf32>
    %56 = vector.extract_strided_slice %55 {offsets = [0, 0], sizes = [32, 32], strides = [1, 1]} : vector<32x64xf32> to vector<32x32xf32>
    %57 = vector.extract_strided_slice %55 {offsets = [0, 32], sizes = [32, 32], strides = [1, 1]} : vector<32x64xf32> to vector<32x32xf32>
    %58 = vector.extract_strided_slice %49 {offsets = [0, 64], sizes = [32, 32], strides = [1, 1]} : vector<32x96xf32> to vector<32x32xf32>
    %59 = arith.mulf %56, %28 : vector<32x32xf32>
    %60 = arith.addf %58, %59 : vector<32x32xf32>
    %61 = math.tanh %60 : vector<32x32xf32>
    %cst_39 = arith.constant 1.000000e+00 : f32
    %62 = vector.broadcast %cst_39 : f32 to vector<32x32xf32>
    %63 = arith.subf %62, %57 : vector<32x32xf32>
    %64 = arith.mulf %63, %61 : vector<32x32xf32>
    %c16 = arith.constant 16 : index
    %c0_40 = arith.constant 0 : index
    %65 = vector.load %arg21[%c16, %c0_40] : memref<256x96xf32, #tpu.memory_space<vmem>>, vector<16x96xf32>
    %c144 = arith.constant 144 : index
    %c0_41 = arith.constant 0 : index
    %66 = vector.load %arg21[%c144, %c0_41] : memref<256x96xf32, #tpu.memory_space<vmem>>, vector<16x96xf32>
    %67 = tpu.concatenate %65, %66 in 0 : vector<16x96xf32>, vector<16x96xf32> -> vector<32x96xf32>
    %68 = arith.addf %67, %16 : vector<32x96xf32>
    %cst_42 = arith.constant dense<0.000000e+00> : vector<32x96xf32>
    %69 = tpu.matmul %47, %18, %cst_42 {dimension_numbers = #tpu.dot_dimension_numbers<[1], [0], [0], [1], [0, 0, 1, 1], [], []>} : vector<32x32xf32>, vector<32x96xf32>, vector<32x96xf32> -> vector<32x96xf32>
    %70 = vector.extract_strided_slice %68 {offsets = [0, 0], sizes = [32, 64], strides = [1, 1]} : vector<32x96xf32> to vector<32x64xf32>
    %71 = vector.extract_strided_slice %69 {offsets = [0, 0], sizes = [32, 64], strides = [1, 1]} : vector<32x96xf32> to vector<32x64xf32>
    %72 = arith.addf %70, %71 : vector<32x64xf32>
    %73 = arith.negf %72 : vector<32x64xf32>
    %74 = math.exp %73 : vector<32x64xf32>
    %cst_43 = arith.constant 1.000000e+00 : f32
    %75 = vector.broadcast %cst_43 : f32 to vector<32x64xf32>
    %76 = arith.addf %75, %74 : vector<32x64xf32>
    %77 = arith.divf %75, %76 : vector<32x64xf32>
    %78 = vector.extract_strided_slice %77 {offsets = [0, 0], sizes = [32, 32], strides = [1, 1]} : vector<32x64xf32> to vector<32x32xf32>
    %79 = vector.extract_strided_slice %77 {offsets = [0, 32], sizes = [32, 32], strides = [1, 1]} : vector<32x64xf32> to vector<32x32xf32>
    %80 = vector.extract_strided_slice %68 {offsets = [0, 64], sizes = [32, 32], strides = [1, 1]} : vector<32x96xf32> to vector<32x32xf32>
    %81 = vector.extract_strided_slice %69 {offsets = [0, 64], sizes = [32, 32], strides = [1, 1]} : vector<32x96xf32> to vector<32x32xf32>
    %82 = arith.addf %81, %25 : vector<32x32xf32>
    %83 = arith.mulf %78, %82 : vector<32x32xf32>
    %84 = arith.addf %80, %83 : vector<32x32xf32>
    %85 = math.tanh %84 : vector<32x32xf32>
    %cst_44 = arith.constant 1.000000e+00 : f32
    %86 = vector.broadcast %cst_44 : f32 to vector<32x32xf32>
    %87 = arith.subf %86, %79 : vector<32x32xf32>
    %88 = arith.mulf %87, %85 : vector<32x32xf32>
    %89 = arith.mulf %79, %47 : vector<32x32xf32>
    %90 = arith.addf %88, %89 : vector<32x32xf32>
    %cst_45 = arith.constant dense<0.000000e+00> : vector<32x96xf32>
    %91 = tpu.matmul %90, %17, %cst_45 {dimension_numbers = #tpu.dot_dimension_numbers<[1], [0], [0], [1], [0, 0, 1, 1], [], []>} : vector<32x32xf32>, vector<32x96xf32>, vector<32x96xf32> -> vector<32x96xf32>
    %92 = arith.addf %91, %22 : vector<32x96xf32>
    %cst_46 = arith.constant dense<0.000000e+00> : vector<32x96xf32>
    %93 = tpu.matmul %64, %19, %cst_46 {dimension_numbers = #tpu.dot_dimension_numbers<[1], [0], [0], [1], [0, 0, 1, 1], [], []>} : vector<32x32xf32>, vector<32x96xf32>, vector<32x96xf32> -> vector<32x96xf32>
    %94 = vector.extract_strided_slice %92 {offsets = [0, 0], sizes = [32, 64], strides = [1, 1]} : vector<32x96xf32> to vector<32x64xf32>
    %95 = vector.extract_strided_slice %93 {offsets = [0, 0], sizes = [32, 64], strides = [1, 1]} : vector<32x96xf32> to vector<32x64xf32>
    %96 = arith.addf %94, %95 : vector<32x64xf32>
    %97 = arith.negf %96 : vector<32x64xf32>
    %98 = math.exp %97 : vector<32x64xf32>
    %cst_47 = arith.constant 1.000000e+00 : f32
    %99 = vector.broadcast %cst_47 : f32 to vector<32x64xf32>
    %100 = arith.addf %99, %98 : vector<32x64xf32>
    %101 = arith.divf %99, %100 : vector<32x64xf32>
    %102 = vector.extract_strided_slice %101 {offsets = [0, 0], sizes = [32, 32], strides = [1, 1]} : vector<32x64xf32> to vector<32x32xf32>
    %103 = vector.extract_strided_slice %101 {offsets = [0, 32], sizes = [32, 32], strides = [1, 1]} : vector<32x64xf32> to vector<32x32xf32>
    %104 = vector.extract_strided_slice %92 {offsets = [0, 64], sizes = [32, 32], strides = [1, 1]} : vector<32x96xf32> to vector<32x32xf32>
    %105 = vector.extract_strided_slice %93 {offsets = [0, 64], sizes = [32, 32], strides = [1, 1]} : vector<32x96xf32> to vector<32x32xf32>
    %106 = arith.addf %105, %28 : vector<32x32xf32>
    %107 = arith.mulf %102, %106 : vector<32x32xf32>
    %108 = arith.addf %104, %107 : vector<32x32xf32>
    %109 = math.tanh %108 : vector<32x32xf32>
    %cst_48 = arith.constant 1.000000e+00 : f32
    %110 = vector.broadcast %cst_48 : f32 to vector<32x32xf32>
    %111 = arith.subf %110, %103 : vector<32x32xf32>
    %112 = arith.mulf %111, %109 : vector<32x32xf32>
    %113 = arith.mulf %103, %64 : vector<32x32xf32>
    %114 = arith.addf %112, %113 : vector<32x32xf32>
    %c32 = arith.constant 32 : index
    %c0_49 = arith.constant 0 : index
    %115 = vector.load %arg21[%c32, %c0_49] : memref<256x96xf32, #tpu.memory_space<vmem>>, vector<16x96xf32>
    %c160 = arith.constant 160 : index
    %c0_50 = arith.constant 0 : index
    %116 = vector.load %arg21[%c160, %c0_50] : memref<256x96xf32, #tpu.memory_space<vmem>>, vector<16x96xf32>
    %117 = tpu.concatenate %115, %116 in 0 : vector<16x96xf32>, vector<16x96xf32> -> vector<32x96xf32>
    %118 = arith.addf %117, %16 : vector<32x96xf32>
    %cst_51 = arith.constant dense<0.000000e+00> : vector<32x96xf32>
    %119 = tpu.matmul %90, %18, %cst_51 {dimension_numbers = #tpu.dot_dimension_numbers<[1], [0], [0], [1], [0, 0, 1, 1], [], []>} : vector<32x32xf32>, vector<32x96xf32>, vector<32x96xf32> -> vector<32x96xf32>
    %120 = vector.extract_strided_slice %118 {offsets = [0, 0], sizes = [32, 64], strides = [1, 1]} : vector<32x96xf32> to vector<32x64xf32>
    %121 = vector.extract_strided_slice %119 {offsets = [0, 0], sizes = [32, 64], strides = [1, 1]} : vector<32x96xf32> to vector<32x64xf32>
    %122 = arith.addf %120, %121 : vector<32x64xf32>
    %123 = arith.negf %122 : vector<32x64xf32>
    %124 = math.exp %123 : vector<32x64xf32>
    %cst_52 = arith.constant 1.000000e+00 : f32
    %125 = vector.broadcast %cst_52 : f32 to vector<32x64xf32>
    %126 = arith.addf %125, %124 : vector<32x64xf32>
    %127 = arith.divf %125, %126 : vector<32x64xf32>
    %128 = vector.extract_strided_slice %127 {offsets = [0, 0], sizes = [32, 32], strides = [1, 1]} : vector<32x64xf32> to vector<32x32xf32>
    %129 = vector.extract_strided_slice %127 {offsets = [0, 32], sizes = [32, 32], strides = [1, 1]} : vector<32x64xf32> to vector<32x32xf32>
    %130 = vector.extract_strided_slice %118 {offsets = [0, 64], sizes = [32, 32], strides = [1, 1]} : vector<32x96xf32> to vector<32x32xf32>
    %131 = vector.extract_strided_slice %119 {offsets = [0, 64], sizes = [32, 32], strides = [1, 1]} : vector<32x96xf32> to vector<32x32xf32>
    %132 = arith.addf %131, %25 : vector<32x32xf32>
    %133 = arith.mulf %128, %132 : vector<32x32xf32>
    %134 = arith.addf %130, %133 : vector<32x32xf32>
    %135 = math.tanh %134 : vector<32x32xf32>
    %cst_53 = arith.constant 1.000000e+00 : f32
    %136 = vector.broadcast %cst_53 : f32 to vector<32x32xf32>
    %137 = arith.subf %136, %129 : vector<32x32xf32>
    %138 = arith.mulf %137, %135 : vector<32x32xf32>
    %139 = arith.mulf %129, %90 : vector<32x32xf32>
    %140 = arith.addf %138, %139 : vector<32x32xf32>
    %cst_54 = arith.constant dense<0.000000e+00> : vector<32x96xf32>
    %141 = tpu.matmul %140, %17, %cst_54 {dimension_numbers = #tpu.dot_dimension_numbers<[1], [0], [0], [1], [0, 0, 1, 1], [], []>} : vector<32x32xf32>, vector<32x96xf32>, vector<32x96xf32> -> vector<32x96xf32>
    %142 = arith.addf %141, %22 : vector<32x96xf32>
    %cst_55 = arith.constant dense<0.000000e+00> : vector<32x96xf32>
    %143 = tpu.matmul %114, %19, %cst_55 {dimension_numbers = #tpu.dot_dimension_numbers<[1], [0], [0], [1], [0, 0, 1, 1], [], []>} : vector<32x32xf32>, vector<32x96xf32>, vector<32x96xf32> -> vector<32x96xf32>
    %144 = vector.extract_strided_slice %142 {offsets = [0, 0], sizes = [32, 64], strides = [1, 1]} : vector<32x96xf32> to vector<32x64xf32>
    %145 = vector.extract_strided_slice %143 {offsets = [0, 0], sizes = [32, 64], strides = [1, 1]} : vector<32x96xf32> to vector<32x64xf32>
    %146 = arith.addf %144, %145 : vector<32x64xf32>
    %147 = arith.negf %146 : vector<32x64xf32>
    %148 = math.exp %147 : vector<32x64xf32>
    %cst_56 = arith.constant 1.000000e+00 : f32
    %149 = vector.broadcast %cst_56 : f32 to vector<32x64xf32>
    %150 = arith.addf %149, %148 : vector<32x64xf32>
    %151 = arith.divf %149, %150 : vector<32x64xf32>
    %152 = vector.extract_strided_slice %151 {offsets = [0, 0], sizes = [32, 32], strides = [1, 1]} : vector<32x64xf32> to vector<32x32xf32>
    %153 = vector.extract_strided_slice %151 {offsets = [0, 32], sizes = [32, 32], strides = [1, 1]} : vector<32x64xf32> to vector<32x32xf32>
    %154 = vector.extract_strided_slice %142 {offsets = [0, 64], sizes = [32, 32], strides = [1, 1]} : vector<32x96xf32> to vector<32x32xf32>
    %155 = vector.extract_strided_slice %143 {offsets = [0, 64], sizes = [32, 32], strides = [1, 1]} : vector<32x96xf32> to vector<32x32xf32>
    %156 = arith.addf %155, %28 : vector<32x32xf32>
    %157 = arith.mulf %152, %156 : vector<32x32xf32>
    %158 = arith.addf %154, %157 : vector<32x32xf32>
    %159 = math.tanh %158 : vector<32x32xf32>
    %cst_57 = arith.constant 1.000000e+00 : f32
    %160 = vector.broadcast %cst_57 : f32 to vector<32x32xf32>
    %161 = arith.subf %160, %153 : vector<32x32xf32>
    %162 = arith.mulf %161, %159 : vector<32x32xf32>
    %163 = arith.mulf %153, %114 : vector<32x32xf32>
    %164 = arith.addf %162, %163 : vector<32x32xf32>
    %c48 = arith.constant 48 : index
    %c0_58 = arith.constant 0 : index
    %165 = vector.load %arg21[%c48, %c0_58] : memref<256x96xf32, #tpu.memory_space<vmem>>, vector<16x96xf32>
    %c176 = arith.constant 176 : index
    %c0_59 = arith.constant 0 : index
    %166 = vector.load %arg21[%c176, %c0_59] : memref<256x96xf32, #tpu.memory_space<vmem>>, vector<16x96xf32>
    %167 = tpu.concatenate %165, %166 in 0 : vector<16x96xf32>, vector<16x96xf32> -> vector<32x96xf32>
    %168 = arith.addf %167, %16 : vector<32x96xf32>
    %cst_60 = arith.constant dense<0.000000e+00> : vector<32x96xf32>
    %169 = tpu.matmul %140, %18, %cst_60 {dimension_numbers = #tpu.dot_dimension_numbers<[1], [0], [0], [1], [0, 0, 1, 1], [], []>} : vector<32x32xf32>, vector<32x96xf32>, vector<32x96xf32> -> vector<32x96xf32>
    %170 = vector.extract_strided_slice %168 {offsets = [0, 0], sizes = [32, 64], strides = [1, 1]} : vector<32x96xf32> to vector<32x64xf32>
    %171 = vector.extract_strided_slice %169 {offsets = [0, 0], sizes = [32, 64], strides = [1, 1]} : vector<32x96xf32> to vector<32x64xf32>
    %172 = arith.addf %170, %171 : vector<32x64xf32>
    %173 = arith.negf %172 : vector<32x64xf32>
    %174 = math.exp %173 : vector<32x64xf32>
    %cst_61 = arith.constant 1.000000e+00 : f32
    %175 = vector.broadcast %cst_61 : f32 to vector<32x64xf32>
    %176 = arith.addf %175, %174 : vector<32x64xf32>
    %177 = arith.divf %175, %176 : vector<32x64xf32>
    %178 = vector.extract_strided_slice %177 {offsets = [0, 0], sizes = [32, 32], strides = [1, 1]} : vector<32x64xf32> to vector<32x32xf32>
    %179 = vector.extract_strided_slice %177 {offsets = [0, 32], sizes = [32, 32], strides = [1, 1]} : vector<32x64xf32> to vector<32x32xf32>
    %180 = vector.extract_strided_slice %168 {offsets = [0, 64], sizes = [32, 32], strides = [1, 1]} : vector<32x96xf32> to vector<32x32xf32>
    %181 = vector.extract_strided_slice %169 {offsets = [0, 64], sizes = [32, 32], strides = [1, 1]} : vector<32x96xf32> to vector<32x32xf32>
    %182 = arith.addf %181, %25 : vector<32x32xf32>
    %183 = arith.mulf %178, %182 : vector<32x32xf32>
    %184 = arith.addf %180, %183 : vector<32x32xf32>
    %185 = math.tanh %184 : vector<32x32xf32>
    %cst_62 = arith.constant 1.000000e+00 : f32
    %186 = vector.broadcast %cst_62 : f32 to vector<32x32xf32>
    %187 = arith.subf %186, %179 : vector<32x32xf32>
    %188 = arith.mulf %187, %185 : vector<32x32xf32>
    %189 = arith.mulf %179, %140 : vector<32x32xf32>
    %190 = arith.addf %188, %189 : vector<32x32xf32>
    %cst_63 = arith.constant dense<0.000000e+00> : vector<32x96xf32>
    %191 = tpu.matmul %190, %17, %cst_63 {dimension_numbers = #tpu.dot_dimension_numbers<[1], [0], [0], [1], [0, 0, 1, 1], [], []>} : vector<32x32xf32>, vector<32x96xf32>, vector<32x96xf32> -> vector<32x96xf32>
    %192 = arith.addf %191, %22 : vector<32x96xf32>
    %cst_64 = arith.constant dense<0.000000e+00> : vector<32x96xf32>
    %193 = tpu.matmul %164, %19, %cst_64 {dimension_numbers = #tpu.dot_dimension_numbers<[1], [0], [0], [1], [0, 0, 1, 1], [], []>} : vector<32x32xf32>, vector<32x96xf32>, vector<32x96xf32> -> vector<32x96xf32>
    %194 = vector.extract_strided_slice %192 {offsets = [0, 0], sizes = [32, 64], strides = [1, 1]} : vector<32x96xf32> to vector<32x64xf32>
    %195 = vector.extract_strided_slice %193 {offsets = [0, 0], sizes = [32, 64], strides = [1, 1]} : vector<32x96xf32> to vector<32x64xf32>
    %196 = arith.addf %194, %195 : vector<32x64xf32>
    %197 = arith.negf %196 : vector<32x64xf32>
    %198 = math.exp %197 : vector<32x64xf32>
    %cst_65 = arith.constant 1.000000e+00 : f32
    %199 = vector.broadcast %cst_65 : f32 to vector<32x64xf32>
    %200 = arith.addf %199, %198 : vector<32x64xf32>
    %201 = arith.divf %199, %200 : vector<32x64xf32>
    %202 = vector.extract_strided_slice %201 {offsets = [0, 0], sizes = [32, 32], strides = [1, 1]} : vector<32x64xf32> to vector<32x32xf32>
    %203 = vector.extract_strided_slice %201 {offsets = [0, 32], sizes = [32, 32], strides = [1, 1]} : vector<32x64xf32> to vector<32x32xf32>
    %204 = vector.extract_strided_slice %192 {offsets = [0, 64], sizes = [32, 32], strides = [1, 1]} : vector<32x96xf32> to vector<32x32xf32>
    %205 = vector.extract_strided_slice %193 {offsets = [0, 64], sizes = [32, 32], strides = [1, 1]} : vector<32x96xf32> to vector<32x32xf32>
    %206 = arith.addf %205, %28 : vector<32x32xf32>
    %207 = arith.mulf %202, %206 : vector<32x32xf32>
    %208 = arith.addf %204, %207 : vector<32x32xf32>
    %209 = math.tanh %208 : vector<32x32xf32>
    %cst_66 = arith.constant 1.000000e+00 : f32
    %210 = vector.broadcast %cst_66 : f32 to vector<32x32xf32>
    %211 = arith.subf %210, %203 : vector<32x32xf32>
    %212 = arith.mulf %211, %209 : vector<32x32xf32>
    %213 = arith.mulf %203, %164 : vector<32x32xf32>
    %214 = arith.addf %212, %213 : vector<32x32xf32>
    %c64 = arith.constant 64 : index
    %c0_67 = arith.constant 0 : index
    %215 = vector.load %arg21[%c64, %c0_67] : memref<256x96xf32, #tpu.memory_space<vmem>>, vector<16x96xf32>
    %c192 = arith.constant 192 : index
    %c0_68 = arith.constant 0 : index
    %216 = vector.load %arg21[%c192, %c0_68] : memref<256x96xf32, #tpu.memory_space<vmem>>, vector<16x96xf32>
    %217 = tpu.concatenate %215, %216 in 0 : vector<16x96xf32>, vector<16x96xf32> -> vector<32x96xf32>
    %218 = arith.addf %217, %16 : vector<32x96xf32>
    %cst_69 = arith.constant dense<0.000000e+00> : vector<32x96xf32>
    %219 = tpu.matmul %190, %18, %cst_69 {dimension_numbers = #tpu.dot_dimension_numbers<[1], [0], [0], [1], [0, 0, 1, 1], [], []>} : vector<32x32xf32>, vector<32x96xf32>, vector<32x96xf32> -> vector<32x96xf32>
    %220 = vector.extract_strided_slice %218 {offsets = [0, 0], sizes = [32, 64], strides = [1, 1]} : vector<32x96xf32> to vector<32x64xf32>
    %221 = vector.extract_strided_slice %219 {offsets = [0, 0], sizes = [32, 64], strides = [1, 1]} : vector<32x96xf32> to vector<32x64xf32>
    %222 = arith.addf %220, %221 : vector<32x64xf32>
    %223 = arith.negf %222 : vector<32x64xf32>
    %224 = math.exp %223 : vector<32x64xf32>
    %cst_70 = arith.constant 1.000000e+00 : f32
    %225 = vector.broadcast %cst_70 : f32 to vector<32x64xf32>
    %226 = arith.addf %225, %224 : vector<32x64xf32>
    %227 = arith.divf %225, %226 : vector<32x64xf32>
    %228 = vector.extract_strided_slice %227 {offsets = [0, 0], sizes = [32, 32], strides = [1, 1]} : vector<32x64xf32> to vector<32x32xf32>
    %229 = vector.extract_strided_slice %227 {offsets = [0, 32], sizes = [32, 32], strides = [1, 1]} : vector<32x64xf32> to vector<32x32xf32>
    %230 = vector.extract_strided_slice %218 {offsets = [0, 64], sizes = [32, 32], strides = [1, 1]} : vector<32x96xf32> to vector<32x32xf32>
    %231 = vector.extract_strided_slice %219 {offsets = [0, 64], sizes = [32, 32], strides = [1, 1]} : vector<32x96xf32> to vector<32x32xf32>
    %232 = arith.addf %231, %25 : vector<32x32xf32>
    %233 = arith.mulf %228, %232 : vector<32x32xf32>
    %234 = arith.addf %230, %233 : vector<32x32xf32>
    %235 = math.tanh %234 : vector<32x32xf32>
    %cst_71 = arith.constant 1.000000e+00 : f32
    %236 = vector.broadcast %cst_71 : f32 to vector<32x32xf32>
    %237 = arith.subf %236, %229 : vector<32x32xf32>
    %238 = arith.mulf %237, %235 : vector<32x32xf32>
    %239 = arith.mulf %229, %190 : vector<32x32xf32>
    %240 = arith.addf %238, %239 : vector<32x32xf32>
    %cst_72 = arith.constant dense<0.000000e+00> : vector<32x96xf32>
    %241 = tpu.matmul %240, %17, %cst_72 {dimension_numbers = #tpu.dot_dimension_numbers<[1], [0], [0], [1], [0, 0, 1, 1], [], []>} : vector<32x32xf32>, vector<32x96xf32>, vector<32x96xf32> -> vector<32x96xf32>
    %242 = arith.addf %241, %22 : vector<32x96xf32>
    %cst_73 = arith.constant dense<0.000000e+00> : vector<32x96xf32>
    %243 = tpu.matmul %214, %19, %cst_73 {dimension_numbers = #tpu.dot_dimension_numbers<[1], [0], [0], [1], [0, 0, 1, 1], [], []>} : vector<32x32xf32>, vector<32x96xf32>, vector<32x96xf32> -> vector<32x96xf32>
    %244 = vector.extract_strided_slice %242 {offsets = [0, 0], sizes = [32, 64], strides = [1, 1]} : vector<32x96xf32> to vector<32x64xf32>
    %245 = vector.extract_strided_slice %243 {offsets = [0, 0], sizes = [32, 64], strides = [1, 1]} : vector<32x96xf32> to vector<32x64xf32>
    %246 = arith.addf %244, %245 : vector<32x64xf32>
    %247 = arith.negf %246 : vector<32x64xf32>
    %248 = math.exp %247 : vector<32x64xf32>
    %cst_74 = arith.constant 1.000000e+00 : f32
    %249 = vector.broadcast %cst_74 : f32 to vector<32x64xf32>
    %250 = arith.addf %249, %248 : vector<32x64xf32>
    %251 = arith.divf %249, %250 : vector<32x64xf32>
    %252 = vector.extract_strided_slice %251 {offsets = [0, 0], sizes = [32, 32], strides = [1, 1]} : vector<32x64xf32> to vector<32x32xf32>
    %253 = vector.extract_strided_slice %251 {offsets = [0, 32], sizes = [32, 32], strides = [1, 1]} : vector<32x64xf32> to vector<32x32xf32>
    %254 = vector.extract_strided_slice %242 {offsets = [0, 64], sizes = [32, 32], strides = [1, 1]} : vector<32x96xf32> to vector<32x32xf32>
    %255 = vector.extract_strided_slice %243 {offsets = [0, 64], sizes = [32, 32], strides = [1, 1]} : vector<32x96xf32> to vector<32x32xf32>
    %256 = arith.addf %255, %28 : vector<32x32xf32>
    %257 = arith.mulf %252, %256 : vector<32x32xf32>
    %258 = arith.addf %254, %257 : vector<32x32xf32>
    %259 = math.tanh %258 : vector<32x32xf32>
    %cst_75 = arith.constant 1.000000e+00 : f32
    %260 = vector.broadcast %cst_75 : f32 to vector<32x32xf32>
    %261 = arith.subf %260, %253 : vector<32x32xf32>
    %262 = arith.mulf %261, %259 : vector<32x32xf32>
    %263 = arith.mulf %253, %214 : vector<32x32xf32>
    %264 = arith.addf %262, %263 : vector<32x32xf32>
    %c80 = arith.constant 80 : index
    %c0_76 = arith.constant 0 : index
    %265 = vector.load %arg21[%c80, %c0_76] : memref<256x96xf32, #tpu.memory_space<vmem>>, vector<16x96xf32>
    %c208 = arith.constant 208 : index
    %c0_77 = arith.constant 0 : index
    %266 = vector.load %arg21[%c208, %c0_77] : memref<256x96xf32, #tpu.memory_space<vmem>>, vector<16x96xf32>
    %267 = tpu.concatenate %265, %266 in 0 : vector<16x96xf32>, vector<16x96xf32> -> vector<32x96xf32>
    %268 = arith.addf %267, %16 : vector<32x96xf32>
    %cst_78 = arith.constant dense<0.000000e+00> : vector<32x96xf32>
    %269 = tpu.matmul %240, %18, %cst_78 {dimension_numbers = #tpu.dot_dimension_numbers<[1], [0], [0], [1], [0, 0, 1, 1], [], []>} : vector<32x32xf32>, vector<32x96xf32>, vector<32x96xf32> -> vector<32x96xf32>
    %270 = vector.extract_strided_slice %268 {offsets = [0, 0], sizes = [32, 64], strides = [1, 1]} : vector<32x96xf32> to vector<32x64xf32>
    %271 = vector.extract_strided_slice %269 {offsets = [0, 0], sizes = [32, 64], strides = [1, 1]} : vector<32x96xf32> to vector<32x64xf32>
    %272 = arith.addf %270, %271 : vector<32x64xf32>
    %273 = arith.negf %272 : vector<32x64xf32>
    %274 = math.exp %273 : vector<32x64xf32>
    %cst_79 = arith.constant 1.000000e+00 : f32
    %275 = vector.broadcast %cst_79 : f32 to vector<32x64xf32>
    %276 = arith.addf %275, %274 : vector<32x64xf32>
    %277 = arith.divf %275, %276 : vector<32x64xf32>
    %278 = vector.extract_strided_slice %277 {offsets = [0, 0], sizes = [32, 32], strides = [1, 1]} : vector<32x64xf32> to vector<32x32xf32>
    %279 = vector.extract_strided_slice %277 {offsets = [0, 32], sizes = [32, 32], strides = [1, 1]} : vector<32x64xf32> to vector<32x32xf32>
    %280 = vector.extract_strided_slice %268 {offsets = [0, 64], sizes = [32, 32], strides = [1, 1]} : vector<32x96xf32> to vector<32x32xf32>
    %281 = vector.extract_strided_slice %269 {offsets = [0, 64], sizes = [32, 32], strides = [1, 1]} : vector<32x96xf32> to vector<32x32xf32>
    %282 = arith.addf %281, %25 : vector<32x32xf32>
    %283 = arith.mulf %278, %282 : vector<32x32xf32>
    %284 = arith.addf %280, %283 : vector<32x32xf32>
    %285 = math.tanh %284 : vector<32x32xf32>
    %cst_80 = arith.constant 1.000000e+00 : f32
    %286 = vector.broadcast %cst_80 : f32 to vector<32x32xf32>
    %287 = arith.subf %286, %279 : vector<32x32xf32>
    %288 = arith.mulf %287, %285 : vector<32x32xf32>
    %289 = arith.mulf %279, %240 : vector<32x32xf32>
    %290 = arith.addf %288, %289 : vector<32x32xf32>
    %cst_81 = arith.constant dense<0.000000e+00> : vector<32x96xf32>
    %291 = tpu.matmul %290, %17, %cst_81 {dimension_numbers = #tpu.dot_dimension_numbers<[1], [0], [0], [1], [0, 0, 1, 1], [], []>} : vector<32x32xf32>, vector<32x96xf32>, vector<32x96xf32> -> vector<32x96xf32>
    %292 = arith.addf %291, %22 : vector<32x96xf32>
    %cst_82 = arith.constant dense<0.000000e+00> : vector<32x96xf32>
    %293 = tpu.matmul %264, %19, %cst_82 {dimension_numbers = #tpu.dot_dimension_numbers<[1], [0], [0], [1], [0, 0, 1, 1], [], []>} : vector<32x32xf32>, vector<32x96xf32>, vector<32x96xf32> -> vector<32x96xf32>
    %294 = vector.extract_strided_slice %292 {offsets = [0, 0], sizes = [32, 64], strides = [1, 1]} : vector<32x96xf32> to vector<32x64xf32>
    %295 = vector.extract_strided_slice %293 {offsets = [0, 0], sizes = [32, 64], strides = [1, 1]} : vector<32x96xf32> to vector<32x64xf32>
    %296 = arith.addf %294, %295 : vector<32x64xf32>
    %297 = arith.negf %296 : vector<32x64xf32>
    %298 = math.exp %297 : vector<32x64xf32>
    %cst_83 = arith.constant 1.000000e+00 : f32
    %299 = vector.broadcast %cst_83 : f32 to vector<32x64xf32>
    %300 = arith.addf %299, %298 : vector<32x64xf32>
    %301 = arith.divf %299, %300 : vector<32x64xf32>
    %302 = vector.extract_strided_slice %301 {offsets = [0, 0], sizes = [32, 32], strides = [1, 1]} : vector<32x64xf32> to vector<32x32xf32>
    %303 = vector.extract_strided_slice %301 {offsets = [0, 32], sizes = [32, 32], strides = [1, 1]} : vector<32x64xf32> to vector<32x32xf32>
    %304 = vector.extract_strided_slice %292 {offsets = [0, 64], sizes = [32, 32], strides = [1, 1]} : vector<32x96xf32> to vector<32x32xf32>
    %305 = vector.extract_strided_slice %293 {offsets = [0, 64], sizes = [32, 32], strides = [1, 1]} : vector<32x96xf32> to vector<32x32xf32>
    %306 = arith.addf %305, %28 : vector<32x32xf32>
    %307 = arith.mulf %302, %306 : vector<32x32xf32>
    %308 = arith.addf %304, %307 : vector<32x32xf32>
    %309 = math.tanh %308 : vector<32x32xf32>
    %cst_84 = arith.constant 1.000000e+00 : f32
    %310 = vector.broadcast %cst_84 : f32 to vector<32x32xf32>
    %311 = arith.subf %310, %303 : vector<32x32xf32>
    %312 = arith.mulf %311, %309 : vector<32x32xf32>
    %313 = arith.mulf %303, %264 : vector<32x32xf32>
    %314 = arith.addf %312, %313 : vector<32x32xf32>
    %c96 = arith.constant 96 : index
    %c0_85 = arith.constant 0 : index
    %315 = vector.load %arg21[%c96, %c0_85] : memref<256x96xf32, #tpu.memory_space<vmem>>, vector<16x96xf32>
    %c224 = arith.constant 224 : index
    %c0_86 = arith.constant 0 : index
    %316 = vector.load %arg21[%c224, %c0_86] : memref<256x96xf32, #tpu.memory_space<vmem>>, vector<16x96xf32>
    %317 = tpu.concatenate %315, %316 in 0 : vector<16x96xf32>, vector<16x96xf32> -> vector<32x96xf32>
    %318 = arith.addf %317, %16 : vector<32x96xf32>
    %cst_87 = arith.constant dense<0.000000e+00> : vector<32x96xf32>
    %319 = tpu.matmul %290, %18, %cst_87 {dimension_numbers = #tpu.dot_dimension_numbers<[1], [0], [0], [1], [0, 0, 1, 1], [], []>} : vector<32x32xf32>, vector<32x96xf32>, vector<32x96xf32> -> vector<32x96xf32>
    %320 = vector.extract_strided_slice %318 {offsets = [0, 0], sizes = [32, 64], strides = [1, 1]} : vector<32x96xf32> to vector<32x64xf32>
    %321 = vector.extract_strided_slice %319 {offsets = [0, 0], sizes = [32, 64], strides = [1, 1]} : vector<32x96xf32> to vector<32x64xf32>
    %322 = arith.addf %320, %321 : vector<32x64xf32>
    %323 = arith.negf %322 : vector<32x64xf32>
    %324 = math.exp %323 : vector<32x64xf32>
    %cst_88 = arith.constant 1.000000e+00 : f32
    %325 = vector.broadcast %cst_88 : f32 to vector<32x64xf32>
    %326 = arith.addf %325, %324 : vector<32x64xf32>
    %327 = arith.divf %325, %326 : vector<32x64xf32>
    %328 = vector.extract_strided_slice %327 {offsets = [0, 0], sizes = [32, 32], strides = [1, 1]} : vector<32x64xf32> to vector<32x32xf32>
    %329 = vector.extract_strided_slice %327 {offsets = [0, 32], sizes = [32, 32], strides = [1, 1]} : vector<32x64xf32> to vector<32x32xf32>
    %330 = vector.extract_strided_slice %318 {offsets = [0, 64], sizes = [32, 32], strides = [1, 1]} : vector<32x96xf32> to vector<32x32xf32>
    %331 = vector.extract_strided_slice %319 {offsets = [0, 64], sizes = [32, 32], strides = [1, 1]} : vector<32x96xf32> to vector<32x32xf32>
    %332 = arith.addf %331, %25 : vector<32x32xf32>
    %333 = arith.mulf %328, %332 : vector<32x32xf32>
    %334 = arith.addf %330, %333 : vector<32x32xf32>
    %335 = math.tanh %334 : vector<32x32xf32>
    %cst_89 = arith.constant 1.000000e+00 : f32
    %336 = vector.broadcast %cst_89 : f32 to vector<32x32xf32>
    %337 = arith.subf %336, %329 : vector<32x32xf32>
    %338 = arith.mulf %337, %335 : vector<32x32xf32>
    %339 = arith.mulf %329, %290 : vector<32x32xf32>
    %340 = arith.addf %338, %339 : vector<32x32xf32>
    %cst_90 = arith.constant dense<0.000000e+00> : vector<32x96xf32>
    %341 = tpu.matmul %340, %17, %cst_90 {dimension_numbers = #tpu.dot_dimension_numbers<[1], [0], [0], [1], [0, 0, 1, 1], [], []>} : vector<32x32xf32>, vector<32x96xf32>, vector<32x96xf32> -> vector<32x96xf32>
    %342 = arith.addf %341, %22 : vector<32x96xf32>
    %cst_91 = arith.constant dense<0.000000e+00> : vector<32x96xf32>
    %343 = tpu.matmul %314, %19, %cst_91 {dimension_numbers = #tpu.dot_dimension_numbers<[1], [0], [0], [1], [0, 0, 1, 1], [], []>} : vector<32x32xf32>, vector<32x96xf32>, vector<32x96xf32> -> vector<32x96xf32>
    %344 = vector.extract_strided_slice %342 {offsets = [0, 0], sizes = [32, 64], strides = [1, 1]} : vector<32x96xf32> to vector<32x64xf32>
    %345 = vector.extract_strided_slice %343 {offsets = [0, 0], sizes = [32, 64], strides = [1, 1]} : vector<32x96xf32> to vector<32x64xf32>
    %346 = arith.addf %344, %345 : vector<32x64xf32>
    %347 = arith.negf %346 : vector<32x64xf32>
    %348 = math.exp %347 : vector<32x64xf32>
    %cst_92 = arith.constant 1.000000e+00 : f32
    %349 = vector.broadcast %cst_92 : f32 to vector<32x64xf32>
    %350 = arith.addf %349, %348 : vector<32x64xf32>
    %351 = arith.divf %349, %350 : vector<32x64xf32>
    %352 = vector.extract_strided_slice %351 {offsets = [0, 0], sizes = [32, 32], strides = [1, 1]} : vector<32x64xf32> to vector<32x32xf32>
    %353 = vector.extract_strided_slice %351 {offsets = [0, 32], sizes = [32, 32], strides = [1, 1]} : vector<32x64xf32> to vector<32x32xf32>
    %354 = vector.extract_strided_slice %342 {offsets = [0, 64], sizes = [32, 32], strides = [1, 1]} : vector<32x96xf32> to vector<32x32xf32>
    %355 = vector.extract_strided_slice %343 {offsets = [0, 64], sizes = [32, 32], strides = [1, 1]} : vector<32x96xf32> to vector<32x32xf32>
    %356 = arith.addf %355, %28 : vector<32x32xf32>
    %357 = arith.mulf %352, %356 : vector<32x32xf32>
    %358 = arith.addf %354, %357 : vector<32x32xf32>
    %359 = math.tanh %358 : vector<32x32xf32>
    %cst_93 = arith.constant 1.000000e+00 : f32
    %360 = vector.broadcast %cst_93 : f32 to vector<32x32xf32>
    %361 = arith.subf %360, %353 : vector<32x32xf32>
    %362 = arith.mulf %361, %359 : vector<32x32xf32>
    %363 = arith.mulf %353, %314 : vector<32x32xf32>
    %364 = arith.addf %362, %363 : vector<32x32xf32>
    %c112 = arith.constant 112 : index
    %c0_94 = arith.constant 0 : index
    %365 = vector.load %arg21[%c112, %c0_94] : memref<256x96xf32, #tpu.memory_space<vmem>>, vector<16x96xf32>
    %c240 = arith.constant 240 : index
    %c0_95 = arith.constant 0 : index
    %366 = vector.load %arg21[%c240, %c0_95] : memref<256x96xf32, #tpu.memory_space<vmem>>, vector<16x96xf32>
    %367 = tpu.concatenate %365, %366 in 0 : vector<16x96xf32>, vector<16x96xf32> -> vector<32x96xf32>
    %368 = arith.addf %367, %16 : vector<32x96xf32>
    %cst_96 = arith.constant dense<0.000000e+00> : vector<32x96xf32>
    %369 = tpu.matmul %340, %18, %cst_96 {dimension_numbers = #tpu.dot_dimension_numbers<[1], [0], [0], [1], [0, 0, 1, 1], [], []>} : vector<32x32xf32>, vector<32x96xf32>, vector<32x96xf32> -> vector<32x96xf32>
    %370 = vector.extract_strided_slice %368 {offsets = [0, 0], sizes = [32, 64], strides = [1, 1]} : vector<32x96xf32> to vector<32x64xf32>
    %371 = vector.extract_strided_slice %369 {offsets = [0, 0], sizes = [32, 64], strides = [1, 1]} : vector<32x96xf32> to vector<32x64xf32>
    %372 = arith.addf %370, %371 : vector<32x64xf32>
    %373 = arith.negf %372 : vector<32x64xf32>
    %374 = math.exp %373 : vector<32x64xf32>
    %cst_97 = arith.constant 1.000000e+00 : f32
    %375 = vector.broadcast %cst_97 : f32 to vector<32x64xf32>
    %376 = arith.addf %375, %374 : vector<32x64xf32>
    %377 = arith.divf %375, %376 : vector<32x64xf32>
    %378 = vector.extract_strided_slice %377 {offsets = [0, 0], sizes = [32, 32], strides = [1, 1]} : vector<32x64xf32> to vector<32x32xf32>
    %379 = vector.extract_strided_slice %377 {offsets = [0, 32], sizes = [32, 32], strides = [1, 1]} : vector<32x64xf32> to vector<32x32xf32>
    %380 = vector.extract_strided_slice %368 {offsets = [0, 64], sizes = [32, 32], strides = [1, 1]} : vector<32x96xf32> to vector<32x32xf32>
    %381 = vector.extract_strided_slice %369 {offsets = [0, 64], sizes = [32, 32], strides = [1, 1]} : vector<32x96xf32> to vector<32x32xf32>
    %382 = arith.addf %381, %25 : vector<32x32xf32>
    %383 = arith.mulf %378, %382 : vector<32x32xf32>
    %384 = arith.addf %380, %383 : vector<32x32xf32>
    %385 = math.tanh %384 : vector<32x32xf32>
    %cst_98 = arith.constant 1.000000e+00 : f32
    %386 = vector.broadcast %cst_98 : f32 to vector<32x32xf32>
    %387 = arith.subf %386, %379 : vector<32x32xf32>
    %388 = arith.mulf %387, %385 : vector<32x32xf32>
    %389 = arith.mulf %379, %340 : vector<32x32xf32>
    %390 = arith.addf %388, %389 : vector<32x32xf32>
    %cst_99 = arith.constant dense<0.000000e+00> : vector<32x96xf32>
    %391 = tpu.matmul %390, %17, %cst_99 {dimension_numbers = #tpu.dot_dimension_numbers<[1], [0], [0], [1], [0, 0, 1, 1], [], []>} : vector<32x32xf32>, vector<32x96xf32>, vector<32x96xf32> -> vector<32x96xf32>
    %392 = arith.addf %391, %22 : vector<32x96xf32>
    %cst_100 = arith.constant dense<0.000000e+00> : vector<32x96xf32>
    %393 = tpu.matmul %364, %19, %cst_100 {dimension_numbers = #tpu.dot_dimension_numbers<[1], [0], [0], [1], [0, 0, 1, 1], [], []>} : vector<32x32xf32>, vector<32x96xf32>, vector<32x96xf32> -> vector<32x96xf32>
    %394 = vector.extract_strided_slice %392 {offsets = [0, 0], sizes = [32, 64], strides = [1, 1]} : vector<32x96xf32> to vector<32x64xf32>
    %395 = vector.extract_strided_slice %393 {offsets = [0, 0], sizes = [32, 64], strides = [1, 1]} : vector<32x96xf32> to vector<32x64xf32>
    %396 = arith.addf %394, %395 : vector<32x64xf32>
    %397 = arith.negf %396 : vector<32x64xf32>
    %398 = math.exp %397 : vector<32x64xf32>
    %cst_101 = arith.constant 1.000000e+00 : f32
    %399 = vector.broadcast %cst_101 : f32 to vector<32x64xf32>
    %400 = arith.addf %399, %398 : vector<32x64xf32>
    %401 = arith.divf %399, %400 : vector<32x64xf32>
    %402 = vector.extract_strided_slice %401 {offsets = [0, 0], sizes = [32, 32], strides = [1, 1]} : vector<32x64xf32> to vector<32x32xf32>
    %403 = vector.extract_strided_slice %401 {offsets = [0, 32], sizes = [32, 32], strides = [1, 1]} : vector<32x64xf32> to vector<32x32xf32>
    %404 = vector.extract_strided_slice %392 {offsets = [0, 64], sizes = [32, 32], strides = [1, 1]} : vector<32x96xf32> to vector<32x32xf32>
    %405 = vector.extract_strided_slice %393 {offsets = [0, 64], sizes = [32, 32], strides = [1, 1]} : vector<32x96xf32> to vector<32x32xf32>
    %406 = arith.addf %405, %28 : vector<32x32xf32>
    %407 = arith.mulf %402, %406 : vector<32x32xf32>
    %408 = arith.addf %404, %407 : vector<32x32xf32>
    %409 = math.tanh %408 : vector<32x32xf32>
    %cst_102 = arith.constant 1.000000e+00 : f32
    %410 = vector.broadcast %cst_102 : f32 to vector<32x32xf32>
    %411 = arith.subf %410, %403 : vector<32x32xf32>
    %412 = arith.mulf %411, %409 : vector<32x32xf32>
    %413 = arith.mulf %403, %364 : vector<32x32xf32>
    %414 = arith.addf %412, %413 : vector<32x32xf32>
    %c0_103 = arith.constant 0 : index
    %c0_104 = arith.constant 0 : index
    %415 = vector.load %arg13[%c0_103, %c0_104] : memref<32x32xf32, #tpu.memory_space<vmem>>, vector<32x32xf32>
    %c0_105 = arith.constant 0 : index
    %c0_106 = arith.constant 0 : index
    %416 = vector.load %arg14[%c0_105, %c0_106] : memref<32x32xf32, #tpu.memory_space<vmem>>, vector<32x32xf32>
    %cst_107 = arith.constant dense<0.000000e+00> : vector<32x32xf32>
    %417 = tpu.matmul %414, %416, %cst_107 {dimension_numbers = #tpu.dot_dimension_numbers<[1], [0], [0], [1], [0, 0, 1, 1], [], []>} : vector<32x32xf32>, vector<32x32xf32>, vector<32x32xf32> -> vector<32x32xf32>
    %cst_108 = arith.constant dense<0.000000e+00> : vector<32x32xf32>
    %418 = tpu.matmul %415, %417, %cst_108 {dimension_numbers = #tpu.dot_dimension_numbers<[1], [0], [0], [1], [0, 0, 1, 1], [], []>} : vector<32x32xf32>, vector<32x32xf32>, vector<32x32xf32> -> vector<32x32xf32>
    %c0_109 = arith.constant 0 : index
    %c0_110 = arith.constant 0 : index
    %419 = vector.load %arg15[%c0_109, %c0_110] : memref<1x32xf32, #tpu.memory_space<vmem>>, vector<1x32xf32>
    %420 = vector.broadcast %419 : vector<1x32xf32> to vector<32x32xf32>
    %421 = arith.addf %418, %420 : vector<32x32xf32>
    %cst_111 = arith.constant 0.000000e+00 : f32
    %422 = vector.broadcast %cst_111 : f32 to vector<32x32xf32>
    %423 = arith.maximumf %421, %422 : vector<32x32xf32>
    %c0_112 = arith.constant 0 : index
    %c0_113 = arith.constant 0 : index
    %424 = vector.load %arg16[%c0_112, %c0_113] : memref<32x32xf32, #tpu.memory_space<vmem>>, vector<32x32xf32>
    %cst_114 = arith.constant dense<0.000000e+00> : vector<32x32xf32>
    %425 = tpu.matmul %423, %424, %cst_114 {dimension_numbers = #tpu.dot_dimension_numbers<[1], [0], [0], [1], [0, 0, 1, 1], [], []>} : vector<32x32xf32>, vector<32x32xf32>, vector<32x32xf32> -> vector<32x32xf32>
    %cst_115 = arith.constant dense<0.000000e+00> : vector<32x32xf32>
    %426 = tpu.matmul %415, %425, %cst_115 {dimension_numbers = #tpu.dot_dimension_numbers<[1], [0], [0], [1], [0, 0, 1, 1], [], []>} : vector<32x32xf32>, vector<32x32xf32>, vector<32x32xf32> -> vector<32x32xf32>
    %c0_116 = arith.constant 0 : index
    %c0_117 = arith.constant 0 : index
    %427 = vector.load %arg17[%c0_116, %c0_117] : memref<1x32xf32, #tpu.memory_space<vmem>>, vector<1x32xf32>
    %428 = vector.broadcast %427 : vector<1x32xf32> to vector<32x32xf32>
    %429 = arith.addf %426, %428 : vector<32x32xf32>
    %cst_118 = arith.constant 0.000000e+00 : f32
    %430 = vector.broadcast %cst_118 : f32 to vector<32x32xf32>
    %431 = arith.maximumf %429, %430 : vector<32x32xf32>
    %c0_119 = arith.constant 0 : index
    %c0_120 = arith.constant 0 : index
    %432 = vector.load %arg18[%c0_119, %c0_120] : memref<32x128xf32, #tpu.memory_space<vmem>>, vector<32x128xf32>
    %cst_121 = arith.constant dense<0.000000e+00> : vector<32x128xf32>
    %433 = tpu.matmul %431, %432, %cst_121 {dimension_numbers = #tpu.dot_dimension_numbers<[1], [0], [0], [1], [0, 0, 1, 1], [], []>} : vector<32x32xf32>, vector<32x128xf32>, vector<32x128xf32> -> vector<32x128xf32>
    %c0_122 = arith.constant 0 : index
    %c0_123 = arith.constant 0 : index
    %434 = vector.load %arg19[%c0_122, %c0_123] : memref<1x128xf32, #tpu.memory_space<vmem>>, vector<1x128xf32>
    %435 = vector.broadcast %434 : vector<1x128xf32> to vector<32x128xf32>
    %436 = arith.addf %433, %435 : vector<32x128xf32>
    %c0_124 = arith.constant 0 : index
    %c0_125 = arith.constant 0 : index
    %437 = vector.load %arg20[%c0_124, %c0_125] : memref<32x128xf32, #tpu.memory_space<vmem>>, vector<32x128xf32>
    tpu.vector_store %arg20[%c0_124, %c0_125], %436 {strides = array<i32>} : memref<32x128xf32, #tpu.memory_space<vmem>>, vector<32x128xf32>,
    return
  }
}

</mosaic_0001>

<bundles_post_ra>
// kernel: graph_forecasting_expert_forward.1
= control target key start
LH: loop header
LB: loop body
LE: loop exit
PB: predicated region body
PF: predicated region fallthrough
CT: control target
= control target key end

     0   :  { %vm105_vm0 = vcmask 64512   ;;  %vm438_vm1 = vcmask 261120   ;;  %vm760_vm2 = vcmask 785408   ;;  %s9022_s2 = inlined_call_operand.vmem [shape: f32[8,32], index: 2, kind: input, shape index: {}]   ;;  %s9023_s0 = inlined_call_operand.vmem [shape: f32[256,8], index: 0, kind: input, shape index: {}]   ;;  %s9024_s3 = inlined_call_operand.vmem [shape: f32[8,32], index: 3, kind: input, shape index: {}]   ;;  %s9025_s5 = inlined_call_operand.vmem [shape: f32[32,96], index: 5, kind: input, shape index: {}]   ;;  %s9026_s1 = inlined_call_operand.vmem [shape: f32[32,8], index: 1, kind: input, shape index: {}]   ;;  %s9027_s4 = inlined_call_operand.vmem [shape: f32[1,32], index: 4, kind: input, shape index: {}]   ;;  %s9028_s7 = inlined_call_operand.vmem [shape: f32[1,96], index: 7, kind: input, shape index: {}]   ;;  %s9029_s8 = inlined_call_operand.vmem [shape: f32[1,32], index: 8, kind: input, shape index: {}]   ;;  %s9030_s9 = inlined_call_operand.vmem [shape: f32[32,96], index: 9, kind: input, shape index: {}]   ;;  %s9031_s6 = inlined_call_operand.vmem [shape: f32[32,96], index: 6, kind: input, shape index: {}]   ;;  %s9032_s11 = inlined_call_operand.vmem [shape: f32[1,96], index: 11, kind: input, shape index: {}]   ;;  %s9033_s12 = inlined_call_operand.vmem [shape: f32[1,32], index: 12, kind: input, shape index: {}]   ;;  %s9034_s10 = inlined_call_operand.vmem [shape: f32[32,96], index: 10, kind: input, shape index: {}]   ;;  %s9035_s14 = inlined_call_operand.vmem [shape: f32[32,32], index: 14, kind: input, shape index: {}]   ;;  %s9036_s13 = inlined_call_operand.vmem [shape: f32[32,32], index: 13, kind: input, shape index: {}]   ;;  %s9037_s16 = inlined_call_operand.vmem [shape: f32[32,32], index: 16, kind: input, shape index: {}]   ;;  %s9038_s15 = inlined_call_operand.vmem [shape: f32[1,32], index: 15, kind: input, shape index: {}]   ;;  %s9039_s18 = inlined_call_operand.vmem [shape: f32[32,128], index: 18, kind: input, shape index: {}]   ;;  %s9040_s17 = inlined_call_operand.vmem [shape: f32[1,32], index: 17, kind: input, shape index: {}]   ;;  %s9041_s19 = inlined_call_operand.vmem [shape: f32[1,128], index: 19, kind: input, shape index: {}]   ;;  %s9042_s20 = inlined_call_operand.vmem [shape: f32[32,128], index: 20, kind: output, shape index: {}]  }
   0x1   :  { %9046 = sst [smem:[#allocation3_spill]] %s9022_s2  ;;  %v7420_v44 = vld [vmem:[%s9027_s4] ss:$0 sm:$0xff] }
   0x2   :  { %9047 = sst [smem:[#allocation4_spill]] %s9023_s0  ;;  %s9051_s23 = sld [smem:[#allocation3_spill]] }
   0x3   :  { %9048 = sst [smem:[#allocation5_spill]] %s9024_s3  ;;  %s9052_s25 = sld [smem:[#allocation4_spill]] }
   0x4   :  { %9049 = sst [smem:[#allocation6_spill]] %s9025_s5 }
   0x5   :  { %9050 = sst [smem:[#allocation7_spill]] %s9026_s1  ;;  %s9053_s1 = sld [smem:[#allocation5_spill]] }
   0x6   :  { %s9054_s29 = sld [smem:[#allocation6_spill]]  ;;  %s9055_s30 = sld [smem:[#allocation7_spill]] }
   0x8   :  { %v97_v0 = vld [vmem:[%s9051_s23] sm:$0xff]  ;;  %s7144_s23 = smov 96  }
   0x9   :  { %v65_v1 = vld [vmem:[%s9052_s25] sm:$0xff]  ;;  %v66_v2 = vld [vmem:[%s9052_s25 + $0x8] sm:$0xff]  ;;  %6017 = vmatprep.subr.mxu0 %v97_v0  ;;  %v67_v4 = vld [vmem:[%s9052_s25 + $0x10] sm:$0xff] }
   0xa   :  { %6019 = vmatprep.mubr.msk.f32.mxu0 %vm105_vm0, %v65_v1  ;;  %6018 = vmatpush3.msra.mxu0 %v97_v0  ;;  %v68_v5 = vld [vmem:[%s9052_s25 + $0x18] sm:$0xff]  ;;  %v69_v6 = vld [vmem:[%s9052_s25 + $0x20] sm:$0xff]  ;;  %v70_v7 = vld [vmem:[%s9052_s25 + $0x28] sm:$0xff] }
   0xb   :  { %v797_v3 = vld [vmem:[%s9053_s1] sm:$0xff]  ;;  %6020 = vmatmul.mubr.msk.f32.vlgmr.msra.gmra.mrb[0].mxu0 %vm105_vm0, %v66_v2  ;;  %v71_v8 = vld [vmem:[%s9052_s25 + $0x30] sm:$0xff]  ;;  %v72_v9 = vld [vmem:[%s9052_s25 + $0x38] sm:$0xff] }
   0xc   :  { %6123 = vmatprep.subr.mxu0 %v797_v3  ;;  %6022 = vmatprep.mubr.msk.f32.mxu0 %vm105_vm0, %v67_v4  ;;  %v427_v10 = vld [vmem:[%s9054_s29] sm:$0xff]  ;;  %v428_v12 = vld [vmem:[%s9054_s29 + $0x8] sm:$0xff]  ;;  %v75_v15 = vld [vmem:[%s9052_s25 + $0x50] sm:$0xff] }
   0xd   :  { %6124 = vmatpush3.msra.mxu0 %v797_v3  ;;  %v73_v11 = vld [vmem:[%s9052_s25 + $0x40] sm:$0xff]  ;;  %v7296_v13 = vpack.c.bf16 %v428_v12, %v427_v10  ;;  %v74_v14 = vld [vmem:[%s9052_s25 + $0x48] sm:$0xff]  ;;  %v76_v16 = vld [vmem:[%s9052_s25 + $0x58] sm:$0xff] }
   0xe   :  { %v77_v17 = vld [vmem:[%s9052_s25 + $0x60] sm:$0xff]  ;;  %v78_v18 = vld [vmem:[%s9052_s25 + $0x68] sm:$0xff]  ;;  %v79_v19 = vld [vmem:[%s9052_s25 + $0x70] sm:$0xff] }
   0xf   :  { %6023 = vmatmul.mubr.msk.f32.gmra.mrb[2].mxu0 %vm105_vm0, %v68_v5  ;;  %6524 = vmatprep.subr.bf16.mxu1 %v7296_v13  ;;  %v80_v20 = vld [vmem:[%s9052_s25 + $0x78] sm:$0xff]  ;;  %v81_v21 = vld [vmem:[%s9052_s25 + $0x80] sm:$0xff]  ;;  %v82_v22 = vld [vmem:[%s9052_s25 + $0x88] sm:$0xff] }
  0x10   :  { %6025 = vmatprep.mubr.msk.f32.mxu0 %vm105_vm0, %v69_v6  ;;  %6526 = vmatpush3.bf16.msra.mxu1 %v7296_v13  ;;  %v83_v23 = vld [vmem:[%s9052_s25 + $0x90] sm:$0xff]  ;;  %v84_v24 = vld [vmem:[%s9052_s25 + $0x98] sm:$0xff]  ;;  %v85_v25 = vld [vmem:[%s9052_s25 + $0xa0] sm:$0xff] }
  0x11   :  { %v86_v26 = vld [vmem:[%s9052_s25 + $0xa8] sm:$0xff]  ;;  %v87_v27 = vld [vmem:[%s9052_s25 + $0xb0] sm:$0xff]  ;;  %v88_v28 = vld [vmem:[%s9052_s25 + $0xb8] sm:$0xff] }
  0x12   :  { %v89_v29 = vld [vmem:[%s9052_s25 + $0xc0] sm:$0xff]  ;;  %v90_v30 = vld [vmem:[%s9052_s25 + $0xc8] sm:$0xff]  ;;  %v91_v31 = vld [vmem:[%s9052_s25 + $0xd0] sm:$0xff] }
  0x13   :  { %6026 = vmatmul.mubr.msk.f32.gmra.mrb[4].mxu0 %vm105_vm0, %v70_v7  ;;  %v92_v32 = vld [vmem:[%s9052_s25 + $0xd8] sm:$0xff]  ;;  %v93_v33 = vld [vmem:[%s9052_s25 + $0xe0] sm:$0xff]  ;;  %v94_v34 = vld [vmem:[%s9052_s25 + $0xe8] sm:$0xff] }
  0x14   :  { %6028 = vmatprep.mubr.msk.f32.mxu0 %vm105_vm0, %v71_v8  ;;  %v95_v35 = vld [vmem:[%s9052_s25 + $0xf0] sm:$0xff]  ;;  %v96_v36 = vld [vmem:[%s9052_s25 + $0xf8] sm:$0xff]  ;;  %v793_v37 = vld [vmem:[%s9055_s30] sm:$0xff] }
  0x15   :  { %v794_v38 = vld [vmem:[%s9055_s30 + $0x8] sm:$0xff]  ;;  %v795_v39 = vld [vmem:[%s9055_s30 + $0x10] sm:$0xff]  ;;  %v796_v40 = vld [vmem:[%s9055_s30 + $0x18] sm:$0xff]  ;;  %s7143_s30 = smov 64  }
  0x16   :  { %v429_v41 = vld [vmem:[%s9054_s29 + $0x10] sm:$0xff]  ;;  %v430_v42 = vld [vmem:[%s9054_s29 + $0x18] sm:$0xff] }
  0x17   :  { %6029 = vmatmul.mubr.msk.f32.gmra.mrb[6].mxu0 %vm105_vm0, %v72_v9  ;;  %v6527_v43 = vpack.c.bf16 %v430_v42, %v429_v41 }
  0x18   :  { %6031 = vmatprep.mubr.msk.f32.mxu0 %vm105_vm0, %v73_v11 }
  0x19   :  { %6528 = vmatprep.subr.bf16.mxu1 %v6527_v43 }
  0x1a   :  { %6530 = vmatpush3.bf16.msra.mxu1 %v6527_v43 }
  0x1b   :  { %6032 = vmatmul.mubr.msk.f32.gmra.mrb[8].mxu0 %vm105_vm0, %v74_v14  ;;  %6532 = vmatprep.subr.bf16.mxu1 %v7296_v13 }
  0x1c   :  { %6034 = vmatprep.mubr.msk.f32.mxu0 %vm105_vm0, %v75_v15 }
  0x1f   :  { %6035 = vmatmul.mubr.msk.f32.gmra.mrb[10].mxu0 %vm105_vm0, %v76_v16 }
  0x20   :  { %6037 = vmatprep.mubr.msk.f32.mxu0 %vm105_vm0, %v77_v17 }
  0x23   :  { %6038 = vmatmul.mubr.msk.f32.gmra.mrb[12].mxu0 %vm105_vm0, %v78_v18 }
  0x24   :  { %6040 = vmatprep.mubr.msk.f32.mxu0 %vm105_vm0, %v79_v19 }
  0x27   :  { %6041 = vmatmul.mubr.msk.f32.gmra.mrb[14].mxu0 %vm105_vm0, %v80_v20 }
  0x28   :  { %6043 = vmatprep.mubr.msk.f32.mxu0 %vm105_vm0, %v81_v21 }
  0x2b   :  { %6044 = vmatmul.mubr.msk.f32.gmra.mrb[16].mxu0 %vm105_vm0, %v82_v22 }
  0x2c   :  { %6046 = vmatprep.mubr.msk.f32.mxu0 %vm105_vm0, %v83_v23 }
  0x2f   :  { %6047 = vmatmul.mubr.msk.f32.gmra.mrb[18].mxu0 %vm105_vm0, %v84_v24 }
  0x30   :  { %6049 = vmatprep.mubr.msk.f32.mxu0 %vm105_vm0, %v85_v25 }
  0x33   :  { %6050 = vmatmul.mubr.msk.f32.gmra.mrb[20].mxu0 %vm105_vm0, %v86_v26 }
  0x34   :  { %6052 = vmatprep.mubr.msk.f32.mxu0 %vm105_vm0, %v87_v27 }
  0x37   :  { %6053 = vmatmul.mubr.msk.f32.gmra.mrb[22].mxu0 %vm105_vm0, %v88_v28 }
  0x38   :  { %6055 = vmatprep.mubr.msk.f32.mxu0 %vm105_vm0, %v89_v29 }
  0x3b   :  { %6056 = vmatmul.mubr.msk.f32.gmra.mrb[24].mxu0 %vm105_vm0, %v90_v30 }
  0x3c   :  { %6058 = vmatprep.mubr.msk.f32.mxu0 %vm105_vm0, %v91_v31 }
  0x3f   :  { %6059 = vmatmul.mubr.msk.f32.gmra.mrb[26].mxu0 %vm105_vm0, %v92_v32 }
  0x40   :  { %6061 = vmatprep.mubr.msk.f32.mxu0 %vm105_vm0, %v93_v33 }
  0x43   :  { %6062 = vmatmul.mubr.msk.f32.gmra.mrb[28].mxu0 %vm105_vm0, %v94_v34 }
  0x44   :  { %6064 = vmatprep.mubr.msk.f32.mxu0 %vm105_vm0, %v95_v35 }
  0x47   :  { %6065 = vmatmul.mubr.msk.f32.gmra.mrb[30].mxu0 %vm105_vm0, %v96_v36 }
  0x48   :  { %6125 = vmatprep.mubr.msk.f32.mxu0 %vm105_vm0, %v793_v37 }
  0x4b   :  { %6126 = vmatmul.mubr.msk.f32.vlgmr.msra.gmra.mrb[32].mxu0 %vm105_vm0, %v794_v38 }
  0x4c   :  { %6128 = vmatprep.mubr.msk.f32.mxu0 %vm105_vm0, %v795_v39 }
  0x4f   :  { %6129 = vmatmul.mubr.msk.f32.gmra.mrb[34].mxu0 %vm105_vm0, %v796_v40 }
  0xde   :  { %v6021_v45 = vpop.f32.mrb[0].mxu0 }
  0xdf   :  { %v268_v46 = vpop.f32.mrb[1].mxu0  ;;  %v274_v48 = vadd.f32 %v6021_v45, %v7420_v44 }
  0xe0   :  { %v269_v47 = vadd.f32 %v7420_v44, %v268_v46 }
  0xe2   :  { %v6024_v49 = vpop.f32.mrb[2].mxu0  ;;  %6075 = vmatprep.mubr.msk.f32.mxu1 %vm438_vm1, %v269_v47 }
  0xe3   :  { %v278_v50 = vpop.f32.mrb[3].mxu0  ;;  %6076 = vmatmul.mubr.msk.f32.vlgmr.msra.gmra.mrb[0].mxu1 %vm438_vm1, %v274_v48  ;;  %v284_v52 = vadd.f32 %v6024_v49, %v7420_v44 }
  0xe4   :  { %v279_v51 = vadd.f32 %v7420_v44, %v278_v50  ;;  %6534 = vmatpush3.bf16.msra.mxu1 %v7296_v13 }
  0xe5   :  { %6536 = vmatprep.subr.bf16.mxu1 %v6527_v43 }
  0xe6   :  { %v6027_v53 = vpop.f32.mrb[4].mxu0  ;;  %6078 = vmatprep.mubr.msk.f32.mxu1 %vm438_vm1, %v279_v51 }
  0xe7   :  { %v288_v54 = vpop.f32.mrb[5].mxu0  ;;  %6079 = vmatmul.mubr.msk.f32.gmra.mrb[2].mxu1 %vm438_vm1, %v284_v52  ;;  %v294_v56 = vadd.f32 %v6027_v53, %v7420_v44 }
  0xe8   :  { %v289_v55 = vadd.f32 %v7420_v44, %v288_v54  ;;  %6538 = vmatpush3.bf16.msra.mxu1 %v6527_v43 }
  0xea   :  { %v6030_v57 = vpop.f32.mrb[6].mxu0  ;;  %6081 = vmatprep.mubr.msk.f32.mxu1 %vm438_vm1, %v289_v55 }
  0xeb   :  { %v298_v58 = vpop.f32.mrb[7].mxu0  ;;  %6082 = vmatmul.mubr.msk.f32.gmra.mrb[4].mxu1 %vm438_vm1, %v294_v56  ;;  %v304_v60 = vadd.f32 %v6030_v57, %v7420_v44 }
  0xec   :  { %v299_v59 = vadd.f32 %v7420_v44, %v298_v58 }
  0xee   :  { %v6033_v61 = vpop.f32.mrb[8].mxu0  ;;  %6084 = vmatprep.mubr.msk.f32.mxu1 %vm438_vm1, %v299_v59 }
  0xef   :  { %v308_v62 = vpop.f32.mrb[9].mxu0  ;;  %6085 = vmatmul.mubr.msk.f32.gmra.mrb[6].mxu1 %vm438_vm1, %v304_v60  ;;  %v314_v0 = vadd.f32 %v6033_v61, %v7420_v44 }
  0xf0   :  { %v309_v63 = vadd.f32 %v7420_v44, %v308_v62 }
  0xf2   :  { %v6036_v1 = vpop.f32.mrb[10].mxu0  ;;  %6087 = vmatprep.mubr.msk.f32.mxu1 %vm438_vm1, %v309_v63 }
  0xf3   :  { %v318_v2 = vpop.f32.mrb[11].mxu0  ;;  %6088 = vmatmul.mubr.msk.f32.gmra.mrb[8].mxu1 %vm438_vm1, %v314_v0  ;;  %v324_v4 = vadd.f32 %v6036_v1, %v7420_v44 }
  0xf4   :  { %v319_v3 = vadd.f32 %v7420_v44, %v318_v2 }
  0xf6   :  { %v6039_v5 = vpop.f32.mrb[12].mxu0  ;;  %6090 = vmatprep.mubr.msk.f32.mxu1 %vm438_vm1, %v319_v3 }
  0xf7   :  { %v328_v6 = vpop.f32.mrb[13].mxu0  ;;  %6091 = vmatmul.mubr.msk.f32.gmra.mrb[10].mxu1 %vm438_vm1, %v324_v4  ;;  %v334_v8 = vadd.f32 %v6039_v5, %v7420_v44 }
  0xf8   :  { %v329_v7 = vadd.f32 %v7420_v44, %v328_v6 }
  0xfa   :  { %v6042_v9 = vpop.f32.mrb[14].mxu0  ;;  %6093 = vmatprep.mubr.msk.f32.mxu1 %vm438_vm1, %v329_v7 }
  0xfb   :  { %v338_v10 = vpop.f32.mrb[15].mxu0  ;;  %6094 = vmatmul.mubr.msk.f32.gmra.mrb[12].mxu1 %vm438_vm1, %v334_v8  ;;  %v344_v12 = vadd.f32 %v6042_v9, %v7420_v44 }
  0xfc   :  { %v339_v11 = vadd.f32 %v7420_v44, %v338_v10 }
  0xfe   :  { %v6045_v13 = vpop.f32.mrb[16].mxu0  ;;  %6096 = vmatprep.mubr.msk.f32.mxu1 %vm438_vm1, %v339_v11 }
  0xff   :  { %v348_v14 = vpop.f32.mrb[17].mxu0  ;;  %6097 = vmatmul.mubr.msk.f32.gmra.mrb[14].mxu1 %vm438_vm1, %v344_v12  ;;  %v354_v16 = vadd.f32 %v6045_v13, %v7420_v44 }
 0x100   :  { %v349_v15 = vadd.f32 %v7420_v44, %v348_v14 }
 0x102   :  { %v6048_v17 = vpop.f32.mrb[18].mxu0  ;;  %6099 = vmatprep.mubr.msk.f32.mxu1 %vm438_vm1, %v349_v15 }
 0x103   :  { %v358_v18 = vpop.f32.mrb[19].mxu0  ;;  %6100 = vmatmul.mubr.msk.f32.gmra.mrb[16].mxu1 %vm438_vm1, %v354_v16  ;;  %v364_v20 = vadd.f32 %v6048_v17, %v7420_v44 }
 0x104   :  { %v359_v19 = vadd.f32 %v7420_v44, %v358_v18 }
 0x106   :  { %v6051_v21 = vpop.f32.mrb[20].mxu0  ;;  %6102 = vmatprep.mubr.msk.f32.mxu1 %vm438_vm1, %v359_v19 }
 0x107   :  { %v368_v22 = vpop.f32.mrb[21].mxu0  ;;  %6103 = vmatmul.mubr.msk.f32.gmra.mrb[18].mxu1 %vm438_vm1, %v364_v20  ;;  %v374_v24 = vadd.f32 %v6051_v21, %v7420_v44 }
 0x108   :  { %v369_v23 = vadd.f32 %v7420_v44, %v368_v22 }
 0x10a   :  { %v6054_v25 = vpop.f32.mrb[22].mxu0  ;;  %6105 = vmatprep.mubr.msk.f32.mxu1 %vm438_vm1, %v369_v23 }
 0x10b   :  { %v378_v26 = vpop.f32.mrb[23].mxu0  ;;  %6106 = vmatmul.mubr.msk.f32.gmra.mrb[20].mxu1 %vm438_vm1, %v374_v24  ;;  %v384_v28 = vadd.f32 %v6054_v25, %v7420_v44 }
 0x10c   :  { %v379_v27 = vadd.f32 %v7420_v44, %v378_v26 }
 0x10e   :  { %v6057_v29 = vpop.f32.mrb[24].mxu0  ;;  %6108 = vmatprep.mubr.msk.f32.mxu1 %vm438_vm1, %v379_v27 }
 0x10f   :  { %v388_v30 = vpop.f32.mrb[25].mxu0  ;;  %6109 = vmatmul.mubr.msk.f32.gmra.mrb[22].mxu1 %vm438_vm1, %v384_v28  ;;  %v394_v32 = vadd.f32 %v6057_v29, %v7420_v44 }
 0x110   :  { %v389_v31 = vadd.f32 %v7420_v44, %v388_v30 }
 0x112   :  { %v6060_v33 = vpop.f32.mrb[26].mxu0  ;;  %6111 = vmatprep.mubr.msk.f32.mxu1 %vm438_vm1, %v389_v31 }
 0x113   :  { %v398_v34 = vpop.f32.mrb[27].mxu0  ;;  %6112 = vmatmul.mubr.msk.f32.gmra.mrb[24].mxu1 %vm438_vm1, %v394_v32  ;;  %v404_v36 = vadd.f32 %v6060_v33, %v7420_v44 }
 0x114   :  { %v399_v35 = vadd.f32 %v7420_v44, %v398_v34 }
 0x116   :  { %v6063_v37 = vpop.f32.mrb[28].mxu0  ;;  %6114 = vmatprep.mubr.msk.f32.mxu1 %vm438_vm1, %v399_v35 }
 0x117   :  { %v408_v38 = vpop.f32.mrb[29].mxu0  ;;  %6115 = vmatmul.mubr.msk.f32.gmra.mrb[26].mxu1 %vm438_vm1, %v404_v36  ;;  %v414_v40 = vadd.f32 %v6063_v37, %v7420_v44 }
 0x118   :  { %v409_v39 = vadd.f32 %v7420_v44, %v408_v38 }
 0x11a   :  { %v6066_v41 = vpop.f32.mrb[30].mxu0  ;;  %6117 = vmatprep.mubr.msk.f32.mxu1 %vm438_vm1, %v409_v39 }
 0x11b   :  { %v418_v42 = vpop.f32.mrb[31].mxu0  ;;  %6118 = vmatmul.mubr.msk.f32.gmra.mrb[28].mxu1 %vm438_vm1, %v414_v40  ;;  %v424_v45 = vadd.f32 %v6066_v41, %v7420_v44 }
 0x11c   :  { %v419_v43 = vadd.f32 %v7420_v44, %v418_v42  ;;  %v7494_v44 = vld [vmem:[%s9028_s7] ss:$0 sm:$0xff] }
 0x11e   :  { %6120 = vmatprep.mubr.msk.f32.mxu1 %vm438_vm1, %v419_v43  ;;  %v6127_v46 = vpop.f32.mrb[32].mxu0 }
 0x11f   :  { %6121 = vmatmul.mubr.msk.f32.gmra.mrb[30].mxu1 %vm438_vm1, %v424_v45  ;;  %v876_v47 = vpop.f32.mrb[33].mxu0 }
 0x120   :  { %6139 = vmatprep.mubr.msk.f32.mxu1 %vm438_vm1, %v876_v47 }
 0x122   :  { %v6130_v48 = vpop.f32.mrb[34].mxu0 }
 0x123   :  { %6140 = vmatmul.mubr.msk.f32.vlgmr.msra.gmra.mrb[32].mxu1 %vm438_vm1, %v6127_v46  ;;  %v886_v49 = vpop.f32.mrb[35].mxu0 }
 0x124   :  { %6142 = vmatprep.mubr.msk.f32.mxu1 %vm438_vm1, %v886_v49 }
 0x127   :  { %6143 = vmatmul.mubr.msk.f32.gmra.mrb[34].mxu1 %vm438_vm1, %v6130_v48 }
 0x1b6   :  { %v6077_v50 = vpop.f32.mrb[0].mxu1 }
 0x1b7   :  { %v607_v51 = vadd.f32 %v6077_v50, %v7494_v44  ;;  %v601_v52 = vpop.f32.mrb[1].mxu1 }
 0x1b8   :  { %v602_v53 = vadd.f32 %v7494_v44, %v601_v52 }
 0x1b9   :  { %762 = vst.msk [vmem:[#allocation2 + $0x8] sm:$0xff] %vm760_vm2, %v607_v51 }
 0x1ba   :  { %761 = vst.msk [vmem:[#allocation2] sm:$0xff] %vm760_vm2, %v602_v53  ;;  %v6080_v54 = vpop.f32.mrb[2].mxu1 }
 0x1bb   :  { %v617_v55 = vadd.f32 %v6080_v54, %v7494_v44  ;;  %v611_v56 = vpop.f32.mrb[3].mxu1 }
 0x1bc   :  { %v612_v57 = vadd.f32 %v7494_v44, %v611_v56 }
 0x1bd   :  { %764 = vst.msk [vmem:[#allocation2 + $0x18] sm:$0xff] %vm760_vm2, %v617_v55 }
 0x1be   :  { %763 = vst.msk [vmem:[#allocation2 + $0x10] sm:$0xff] %vm760_vm2, %v612_v57  ;;  %v6083_v58 = vpop.f32.mrb[4].mxu1 }
 0x1bf   :  { %v627_v59 = vadd.f32 %v6083_v58, %v7494_v44  ;;  %v621_v60 = vpop.f32.mrb[5].mxu1 }
 0x1c0   :  { %v622_v61 = vadd.f32 %v7494_v44, %v621_v60  ;;  %v1030_v52 = vld [vmem:[#allocation2 + $0x8] sm:$0xff] }
 0x1c1   :  { %766 = vst.msk [vmem:[#allocation2 + $0x28] sm:$0xff] %vm760_vm2, %v627_v59  ;;  %v1029_v55 = vld [vmem:[#allocation2] sm:$0xff] }
 0x1c2   :  { %765 = vst.msk [vmem:[#allocation2 + $0x20] sm:$0xff] %vm760_vm2, %v622_v61  ;;  %v6086_v62 = vpop.f32.mrb[6].mxu1 }
 0x1c3   :  { %v637_v63 = vadd.f32 %v6086_v62, %v7494_v44  ;;  %v631_v0 = vpop.f32.mrb[7].mxu1 }
 0x1c4   :  { %v632_v1 = vadd.f32 %v7494_v44, %v631_v0 }
 0x1c5   :  { %768 = vst.msk [vmem:[#allocation2 + $0x38] sm:$0xff] %vm760_vm2, %v637_v63 }
 0x1c6   :  { %767 = vst.msk [vmem:[#allocation2 + $0x30] sm:$0xff] %vm760_vm2, %v632_v1  ;;  %v6089_v2 = vpop.f32.mrb[8].mxu1 }
 0x1c7   :  { %v647_v3 = vadd.f32 %v6089_v2, %v7494_v44  ;;  %v641_v4 = vpop.f32.mrb[9].mxu1 }
 0x1c8   :  { %v642_v5 = vadd.f32 %v7494_v44, %v641_v4 }
 0x1c9   :  { %770 = vst.msk [vmem:[#allocation2 + $0x48] sm:$0xff] %vm760_vm2, %v647_v3 }
 0x1ca   :  { %769 = vst.msk [vmem:[#allocation2 + $0x40] sm:$0xff] %vm760_vm2, %v642_v5  ;;  %v6092_v6 = vpop.f32.mrb[10].mxu1 }
 0x1cb   :  { %v657_v7 = vadd.f32 %v6092_v6, %v7494_v44  ;;  %v651_v8 = vpop.f32.mrb[11].mxu1 }
 0x1cc   :  { %v652_v9 = vadd.f32 %v7494_v44, %v651_v8 }
 0x1cd   :  { %772 = vst.msk [vmem:[#allocation2 + $0x58] sm:$0xff] %vm760_vm2, %v657_v7 }
 0x1ce   :  { %771 = vst.msk [vmem:[#allocation2 + $0x50] sm:$0xff] %vm760_vm2, %v652_v9  ;;  %v6095_v10 = vpop.f32.mrb[12].mxu1 }
 0x1cf   :  { %v667_v11 = vadd.f32 %v6095_v10, %v7494_v44  ;;  %v661_v12 = vpop.f32.mrb[13].mxu1  ;;  %v7575_v10 = vld [vmem:[%s9029_s8] ss:$0 sm:$0xff] }
 0x1d0   :  { %v662_v13 = vadd.f32 %v7494_v44, %v661_v12 }
 0x1d1   :  { %774 = vst.msk [vmem:[#allocation2 + $0x68] sm:$0xff] %vm760_vm2, %v667_v11 }
 0x1d2   :  { %773 = vst.msk [vmem:[#allocation2 + $0x60] sm:$0xff] %vm760_vm2, %v662_v13  ;;  %v6098_v14 = vpop.f32.mrb[14].mxu1 }
 0x1d3   :  { %v677_v15 = vadd.f32 %v6098_v14, %v7494_v44  ;;  %v671_v16 = vpop.f32.mrb[15].mxu1 }
 0x1d4   :  { %v672_v17 = vadd.f32 %v7494_v44, %v671_v16 }
 0x1d5   :  { %776 = vst.msk [vmem:[#allocation2 + $0x78] sm:$0xff] %vm760_vm2, %v677_v15 }
 0x1d6   :  { %775 = vst.msk [vmem:[#allocation2 + $0x70] sm:$0xff] %vm760_vm2, %v672_v17  ;;  %v6101_v18 = vpop.f32.mrb[16].mxu1 }
 0x1d7   :  { %v687_v19 = vadd.f32 %v6101_v18, %v7494_v44  ;;  %v681_v20 = vpop.f32.mrb[17].mxu1 }
 0x1d8   :  { %v682_v21 = vadd.f32 %v7494_v44, %v681_v20 }
 0x1d9   :  { %778 = vst.msk [vmem:[#allocation2 + $0x88] sm:$0xff] %vm760_vm2, %v687_v19 }
 0x1da   :  { %777 = vst.msk [vmem:[#allocation2 + $0x80] sm:$0xff] %vm760_vm2, %v682_v21  ;;  %v6104_v22 = vpop.f32.mrb[18].mxu1 }
 0x1db   :  { %v697_v23 = vadd.f32 %v6104_v22, %v7494_v44  ;;  %v691_v24 = vpop.f32.mrb[19].mxu1 }
 0x1dc   :  { %v692_v25 = vadd.f32 %v7494_v44, %v691_v24 }
 0x1dd   :  { %780 = vst.msk [vmem:[#allocation2 + $0x98] sm:$0xff] %vm760_vm2, %v697_v23 }
 0x1de   :  { %779 = vst.msk [vmem:[#allocation2 + $0x90] sm:$0xff] %vm760_vm2, %v692_v25  ;;  %v6107_v26 = vpop.f32.mrb[20].mxu1 }
 0x1df   :  { %v707_v27 = vadd.f32 %v6107_v26, %v7494_v44  ;;  %v701_v28 = vpop.f32.mrb[21].mxu1 }
 0x1e0   :  { %v702_v29 = vadd.f32 %v7494_v44, %v701_v28  ;;  %v1032_v59 = vld [vmem:[#allocation2 + $0x88] sm:$0xff]  ;;  %v996_v28 = vld [vmem:[%s9030_s9] sm:$0xff] }
 0x1e1   :  { %782 = vst.msk [vmem:[#allocation2 + $0xa8] sm:$0xff] %vm760_vm2, %v707_v27  ;;  %v1031_v62 = vld [vmem:[#allocation2 + $0x80] sm:$0xff] }
 0x1e2   :  { %781 = vst.msk [vmem:[#allocation2 + $0xa0] sm:$0xff] %vm760_vm2, %v702_v29  ;;  %v6110_v30 = vpop.f32.mrb[22].mxu1  ;;  %v997_v29 = vld [vmem:[%s9030_s9 + $0x8] sm:$0xff] }
 0x1e3   :  { %v717_v31 = vadd.f32 %v6110_v30, %v7494_v44  ;;  %v711_v32 = vpop.f32.mrb[23].mxu1  ;;  %v1000_v30 = vld [vmem:[%s9031_s6] sm:$0xff] }
 0x1e4   :  { %v712_v33 = vadd.f32 %v7494_v44, %v711_v32  ;;  %v1001_v32 = vld [vmem:[%s9031_s6 + $0x8] sm:$0xff] }
 0x1e5   :  { %784 = vst.msk [vmem:[#allocation2 + $0xb8] sm:$0xff] %vm760_vm2, %v717_v31  ;;  %v7601_v31 = vpack.c.bf16 %v997_v29, %v996_v28 }
 0x1e6   :  { %783 = vst.msk [vmem:[#allocation2 + $0xb0] sm:$0xff] %vm760_vm2, %v712_v33  ;;  %v6113_v34 = vpop.f32.mrb[24].mxu1  ;;  %v7606_v33 = vpack.c.bf16 %v1001_v32, %v1000_v30 }
 0x1e7   :  { %v727_v35 = vadd.f32 %v6113_v34, %v7494_v44  ;;  %v721_v36 = vpop.f32.mrb[25].mxu1  ;;  %6540 = vmatprep.subr.bf16.mxu0 %v7601_v31 }
 0x1e8   :  { %v722_v37 = vadd.f32 %v7494_v44, %v721_v36  ;;  %6548 = vmatprep.subr.bf16.mxu1 %v7606_v33  ;;  %6542 = vmatpush3.bf16.msra.mxu0 %v7601_v31 }
 0x1e9   :  { %786 = vst.msk [vmem:[#allocation2 + $0xc8] sm:$0xff] %vm760_vm2, %v727_v35  ;;  %6550 = vmatpush3.bf16.msra.mxu1 %v7606_v33 }
 0x1ea   :  { %785 = vst.msk [vmem:[#allocation2 + $0xc0] sm:$0xff] %vm760_vm2, %v722_v37  ;;  %v6116_v38 = vpop.f32.mrb[26].mxu1  ;;  %v998_v37 = vld [vmem:[%s9030_s9 + $0x10] sm:$0xff] }
 0x1eb   :  { %v737_v39 = vadd.f32 %v6116_v38, %v7494_v44  ;;  %v731_v40 = vpop.f32.mrb[27].mxu1  ;;  %v999_v38 = vld [vmem:[%s9030_s9 + $0x18] sm:$0xff] }
 0x1ec   :  { %v732_v41 = vadd.f32 %v7494_v44, %v731_v40  ;;  %v7624_v40 = vpack.c.bf16 %v999_v38, %v998_v37 }
 0x1ed   :  { %788 = vst.msk [vmem:[#allocation2 + $0xd8] sm:$0xff] %vm760_vm2, %v737_v39  ;;  %v1002_v39 = vld [vmem:[%s9031_s6 + $0x10] sm:$0xff] }
 0x1ee   :  { %787 = vst.msk [vmem:[#allocation2 + $0xd0] sm:$0xff] %vm760_vm2, %v732_v41  ;;  %v6119_v42 = vpop.f32.mrb[28].mxu1  ;;  %v1003_v41 = vld [vmem:[%s9031_s6 + $0x18] sm:$0xff]  ;;  %6544 = vmatprep.subr.bf16.mxu0 %v7624_v40 }
 0x1ef   :  { %v747_v43 = vadd.f32 %v6119_v42, %v7494_v44  ;;  %v741_v45 = vpop.f32.mrb[29].mxu1  ;;  %v7629_v42 = vpack.c.bf16 %v1003_v41, %v1002_v39  ;;  %6546 = vmatpush3.bf16.msra.mxu0 %v7624_v40 }
 0x1f0   :  { %v742_v46 = vadd.f32 %v7494_v44, %v741_v45  ;;  %6556 = vmatprep.subr.bf16.mxu0 %v7601_v31 }
 0x1f1   :  { %790 = vst.msk [vmem:[#allocation2 + $0xe8] sm:$0xff] %vm760_vm2, %v747_v43  ;;  %6552 = vmatprep.subr.bf16.mxu1 %v7629_v42 }
 0x1f2   :  { %789 = vst.msk [vmem:[#allocation2 + $0xe0] sm:$0xff] %vm760_vm2, %v742_v46  ;;  %v6122_v47 = vpop.f32.mrb[30].mxu1  ;;  %6554 = vmatpush3.bf16.msra.mxu1 %v7629_v42 }
 0x1f3   :  { %v757_v48 = vadd.f32 %v6122_v47, %v7494_v44  ;;  %v751_v49 = vpop.f32.mrb[31].mxu1 }
 0x1f4   :  { %v752_v50 = vadd.f32 %v7494_v44, %v751_v49 }
 0x1f5   :  { %792 = vst.msk [vmem:[#allocation2 + $0xf8] sm:$0xff] %vm760_vm2, %v757_v48 }
 0x1f6   :  { %791 = vst.msk [vmem:[#allocation2 + $0xf0] sm:$0xff] %vm760_vm2, %v752_v50  ;;  %v7560_v51 = vpop.f32.mrb[32].mxu1 }
 0x1f7   :  { %v1034_v53 = vadd.f32 %v7560_v51, %v1030_v52  ;;  %v7563_v54 = vpop.f32.mrb[33].mxu1 }
 0x1f8   :  { %v1033_v56 = vadd.f32 %v1029_v55, %v7563_v54 }
 0x1f9   :  { %v5545_v57 = vmul.f32 -1.442695, %v1034_v53 }
 0x1fa   :  { %v7566_v58 = vpop.f32.mrb[34].mxu1  ;;  %v5544_v60 = vmul.f32 -1.442695, %v1033_v56 }
 0x1fb   :  { %v1036_v44 = vadd.f32 %v7566_v58, %v1032_v59  ;;  %v7569_v61 = vpop.f32.mrb[35].mxu1  ;;  %6757 = vpow2.f32 %v5545_v57 }
 0x1fc   :  { %6759 = vpow2.f32 %v5544_v60  ;;  %v1035_v63 = vadd.f32 %v1031_v62, %v7569_v61 }
 0x1fd   :  { %v5547_v0 = vmul.f32 -1.442695, %v1036_v44 }
 0x1fe   :  { %v5546_v1 = vmul.f32 -1.442695, %v1035_v63 }
 0x1ff   :  { %6761 = vpow2.f32 %v5547_v0 }
 0x200   :  { %6763 = vpow2.f32 %v5546_v1 }
 0x205   :  { %v6758_v2 = vpop.eup %6757 }
 0x206   :  { %v6760_v3 = vpop.eup %6759  ;;  %v1050_v5 = vadd.f32 1.0, %v6758_v2 }
 0x207   :  { %v1049_v4 = vadd.f32 1.0, %v6760_v3 }
 0x209   :  { %v6762_v6 = vpop.eup %6761  ;;  %6765 = vrcp.f32 %v1049_v4 }
 0x20a   :  { %v6764_v7 = vpop.eup %6763  ;;  %6767 = vrcp.f32 %v1050_v5  ;;  %v1052_v9 = vadd.f32 1.0, %v6762_v6 }
 0x20b   :  { %v1051_v8 = vadd.f32 1.0, %v6764_v7 }
 0x20d   :  { %6769 = vrcp.f32 %v1051_v8 }
 0x20e   :  { %6771 = vrcp.f32 %v1052_v9 }
 0x213   :  { %v6766_v11 = vpop.eup %6765 }
 0x214   :  { %v1061_v12 = vmul.f32 %v6766_v11, %v7575_v10  ;;  %v7578_v13 = vpop.eup %6767  ;;  %v1089_v43 = vsub.f32 1.0, %v6766_v11 }
 0x215   :  { %v1062_v16 = vmul.f32 %v7578_v13, %v7575_v10  ;;  %v1090_v48 = vsub.f32 1.0, %v7578_v13 }
 0x216   :  { %1069 = vrot.lane.b32.xlu0 %v1061_v12, %s7143_s30  ;;  %v1295_v12 = vld [vmem:[#allocation2 + $0x18] sm:$0xff] }
 0x217   :  { %v6770_v14 = vpop.eup %6769  ;;  %v7679_v13 = vadd.f32 %v7560_v51, %v1295_v12 }
 0x218   :  { %v1063_v15 = vmul.f32 %v6770_v14, %v7575_v10  ;;  %v7584_v17 = vpop.eup %6771  ;;  %v1091_v47 = vsub.f32 1.0, %v6770_v14  ;;  %v1294_v14 = vld [vmem:[#allocation2 + $0x10] sm:$0xff] }
 0x219   :  { %v1064_v18 = vmul.f32 %v7584_v17, %v7575_v10  ;;  %v1092_v55 = vsub.f32 1.0, %v7584_v17 }
 0x21a   :  { %1073 = vrot.lane.b32.xlu1 %v1063_v15, %s7143_s30  ;;  %1071 = vrot.lane.b32.xlu0 %v1062_v16, %s7143_s30  ;;  %v7682_v15 = vadd.f32 %v1294_v14, %v7563_v54 }
 0x21e   :  { %1075 = vrot.lane.b32.xlu1 %v1064_v18, %s7143_s30  ;;  %v1297_v18 = vld [vmem:[#allocation2 + $0x98] sm:$0xff] }
 0x288   :  { %v1070_v19 = vpop.permute.xlu0 %1069 }
 0x289   :  { %v1081_v20 = vadd.f32 %v1070_v19, %v1033_v56  ;;  %v7687_v19 = vadd.f32 %v7566_v58, %v1297_v18 }
 0x28b   :  { %6773 = vtanh.f32 %v1081_v20  ;;  %v1296_v20 = vld [vmem:[#allocation2 + $0x90] sm:$0xff] }
 0x28c   :  { %v1074_v21 = vpop.permute.xlu1 %1073  ;;  %v1072_v22 = vpop.permute.xlu0 %1071 }
 0x28d   :  { %v1083_v23 = vadd.f32 %v1074_v21, %v1035_v63  ;;  %v1082_v24 = vadd.f32 %v1072_v22, %v1034_v53  ;;  %v7692_v21 = vld [vmem:[%s9032_s11] ss:$0 sm:$0xff]  ;;  %v7695_v22 = vadd.f32 %v1296_v20, %v7569_v61 }
 0x28f   :  { %6775 = vtanh.f32 %v1083_v23 }
 0x290   :  { %6777 = vtanh.f32 %v1082_v24  ;;  %v1076_v25 = vpop.permute.xlu1 %1075 }
 0x291   :  { %v1084_v26 = vadd.f32 %v1076_v25, %v1036_v44 }
 0x293   :  { %6779 = vtanh.f32 %v1084_v26 }
 0x295   :  { %v6774_v27 = vpop.eup %6773 }
 0x296   :  { %1097 = vrot.lane.b32.xlu0 %v6774_v27, %s7144_s23 }
 0x299   :  { %v6776_v34 = vpop.eup %6775 }
 0x29a   :  { %v6778_v35 = vpop.eup %6777  ;;  %1101 = vrot.lane.b32.xlu0 %v6776_v34, %s7144_s23 }
 0x29b   :  { %1099 = vrot.lane.b32.xlu1 %v6778_v35, %s7144_s23 }
 0x29d   :  { %v6780_v36 = vpop.eup %6779 }
 0x29f   :  { %1103 = vrot.lane.b32.xlu1 %v6780_v36, %s7144_s23 }
 0x308   :  { %v1098_v45 = vpop.permute.xlu0 %1097 }
 0x309   :  { %v7636_v46 = vmul.f32 %v1098_v45, %v1089_v43 }
 0x30b   :  { %1117 = vrot.lane.b32.xlu0 %v7636_v46, %s7144_s23 }
 0x30c   :  { %v1102_v49 = vpop.permute.xlu0 %1101 }
 0x30d   :  { %v1100_v50 = vpop.permute.xlu1 %1099  ;;  %v7641_v52 = vmul.f32 %v1102_v49, %v1091_v47 }
 0x30e   :  { %v7643_v53 = vmul.f32 %v1100_v50, %v1090_v48 }
 0x30f   :  { %1121 = vrot.lane.b32.xlu0 %v7641_v52, %s7144_s23 }
 0x310   :  { %1119 = vrot.lane.b32.xlu1 %v7643_v53, %s7144_s23 }
 0x311   :  { %v1104_v56 = vpop.permute.xlu1 %1103 }
 0x312   :  { %v7650_v57 = vmul.f32 %v1104_v56, %v1092_v55 }
 0x313   :  { %1415 = vrot.lane.b32.xlu0 %v7575_v10, %s7143_s30 }
 0x314   :  { %1123 = vrot.lane.b32.xlu1 %v7650_v57, %s7144_s23 }
 0x37d   :  { %v1118_v59 = vpop.permute.xlu0 %1117 }
 0x37e   :  { %6153 = vmatprep.mubr.msk.f32.mxu0 %vm438_vm1, %v1118_v59  ;;  %6167 = vmatprep.mubr.msk.f32.mxu1 %vm438_vm1, %v1118_v59 }
 0x381   :  { %v1122_v60 = vpop.permute.xlu0 %1121 }
 0x382   :  { %v1120_v44 = vpop.permute.xlu1 %1119 }
 0x383   :  { %6154 = vmatmul.mubr.msk.f32.vlgmr.msra.gmra.mrb[36].mxu0 %vm438_vm1, %v1120_v44  ;;  %6168 = vmatmul.mubr.msk.f32.vlgmr.msra.gmra.mrb[36].mxu1 %vm438_vm1, %v1120_v44 }
 0x384   :  { %6156 = vmatprep.mubr.msk.f32.mxu0 %vm438_vm1, %v1122_v60  ;;  %6170 = vmatprep.mubr.msk.f32.mxu1 %vm438_vm1, %v1122_v60 }
 0x385   :  { %6558 = vmatpush3.bf16.msra.mxu0 %v7601_v31  ;;  %v7668_v63 = vpop.permute.xlu0 %1415 }
 0x386   :  { %v1124_v62 = vpop.permute.xlu1 %1123  ;;  %6560 = vmatprep.subr.bf16.mxu0 %v7624_v40 }
 0x387   :  { %6157 = vmatmul.mubr.msk.f32.gmra.mrb[38].mxu0 %vm438_vm1, %v1124_v62  ;;  %6171 = vmatmul.mubr.msk.f32.gmra.mrb[38].mxu1 %vm438_vm1, %v1124_v62 }
 0x389   :  { %6562 = vmatpush3.bf16.msra.mxu0 %v7624_v40 }
 0x38a   :  { %6572 = vmatprep.subr.bf16.mxu0 %v7606_v33 }
 0x456   :  { %v6155_v0 = vpop.f32.mrb[36].mxu0  ;;  %v6169_v1 = vpop.f32.mrb[36].mxu1 }
 0x457   :  { %v1199_v2 = vpop.f32.mrb[37].mxu0  ;;  %v1368_v3 = vpop.f32.mrb[37].mxu1  ;;  %v1419_v4 = vadd.f32 %v6169_v1, %v7668_v63  ;;  %v1388_v16 = vadd.f32 %v6169_v1, %v7679_v13  ;;  %v7700_v27 = vadd.f32 %v6155_v0, %v7692_v21 }
 0x458   :  { %v1418_v5 = vadd.f32 %v7668_v63, %v1368_v3  ;;  %v1387_v17 = vadd.f32 %v1368_v3, %v7682_v15  ;;  %v7703_v28 = vadd.f32 %v7692_v21, %v1199_v2 }
 0x459   :  { %1428 = vrot.lane.b32.xlu0 %v1419_v4, %s7143_s30  ;;  %v5561_v23 = vmul.f32 -1.442695, %v1388_v16  ;;  %v5553_v32 = vmul.f32 -1.442695, %v7700_v27 }
 0x45a   :  { %v6158_v6 = vpop.f32.mrb[38].mxu0  ;;  %v6172_v7 = vpop.f32.mrb[38].mxu1  ;;  %1426 = vrot.lane.b32.xlu1 %v1418_v5, %s7143_s30  ;;  %v5560_v25 = vmul.f32 -1.442695, %v1387_v17  ;;  %v5552_v35 = vmul.f32 -1.442695, %v7703_v28 }
 0x45b   :  { %v1421_v8 = vadd.f32 %v6172_v7, %v7668_v63  ;;  %v1209_v9 = vpop.f32.mrb[39].mxu0  ;;  %v1378_v10 = vpop.f32.mrb[39].mxu1  ;;  %v1390_v24 = vadd.f32 %v6172_v7, %v7687_v19  ;;  %6781 = vpow2.f32 %v5561_v23  ;;  %v7707_v34 = vadd.f32 %v6158_v6, %v7692_v21  ;;  %v7734_v17 = vld [vmem:[%s9033_s12] ss:$0 sm:$0xff] }
 0x45c   :  { %v1420_v11 = vadd.f32 %v7668_v63, %v1378_v10  ;;  %v1389_v26 = vadd.f32 %v1378_v10, %v7695_v22  ;;  %6783 = vpow2.f32 %v5560_v25  ;;  %v7711_v36 = vadd.f32 %v7692_v21, %v1209_v9 }
 0x45d   :  { %1432 = vrot.lane.b32.xlu0 %v1421_v8, %s7143_s30  ;;  %v5563_v29 = vmul.f32 -1.442695, %v1390_v24  ;;  %v5555_v37 = vmul.f32 -1.442695, %v7707_v34 }
 0x45e   :  { %1430 = vrot.lane.b32.xlu1 %v1420_v11, %s7143_s30  ;;  %v5562_v30 = vmul.f32 -1.442695, %v1389_v26  ;;  %v5554_v38 = vmul.f32 -1.442695, %v7711_v36 }
 0x45f   :  { %6785 = vpow2.f32 %v5563_v29 }
 0x460   :  { %6787 = vpow2.f32 %v5562_v30 }
 0x461   :  { %6789 = vpow2.f32 %v5553_v32 }
 0x462   :  { %6791 = vpow2.f32 %v5552_v35 }
 0x463   :  { %6793 = vpow2.f32 %v5555_v37 }
 0x464   :  { %6795 = vpow2.f32 %v5554_v38 }
 0x465   :  { %v6782_v39 = vpop.eup %6781 }
 0x466   :  { %v6784_v41 = vpop.eup %6783  ;;  %v1404_v43 = vadd.f32 1.0, %v6782_v39 }
 0x467   :  { %v1403_v47 = vadd.f32 1.0, %v6784_v41 }
 0x468   :  { %6797 = vrcp.f32 %v1404_v43 }
 0x469   :  { %v6786_v45 = vpop.eup %6785  ;;  %6799 = vrcp.f32 %v1403_v47 }
 0x46a   :  { %v6788_v48 = vpop.eup %6787  ;;  %v1406_v55 = vadd.f32 1.0, %v6786_v45 }
 0x46b   :  { %v6790_v49 = vpop.eup %6789  ;;  %v1405_v56 = vadd.f32 1.0, %v6788_v48 }
 0x46c   :  { %v6792_v50 = vpop.eup %6791  ;;  %v1231_v59 = vadd.f32 1.0, %v6790_v49  ;;  %6801 = vrcp.f32 %v1406_v55 }
 0x46d   :  { %v6794_v60 = vpop.eup %6793  ;;  %v1230_v44 = vadd.f32 1.0, %v6792_v50  ;;  %6803 = vrcp.f32 %v1405_v56 }
 0x46e   :  { %v6796_v62 = vpop.eup %6795  ;;  %6805 = vrcp.f32 %v1231_v59  ;;  %v1233_v0 = vadd.f32 1.0, %v6794_v60  ;;  %v1004_v60 = vld [vmem:[%s9034_s10] sm:$0xff] }
 0x46f   :  { %6807 = vrcp.f32 %v1230_v44  ;;  %v1232_v1 = vadd.f32 1.0, %v6796_v62  ;;  %v1005_v44 = vld [vmem:[%s9034_s10 + $0x8] sm:$0xff] }
 0x470   :  { %6809 = vrcp.f32 %v1233_v0  ;;  %v7778_v62 = vpack.c.bf16 %v1005_v44, %v1004_v60  ;;  %v1006_v0 = vld [vmem:[%s9034_s10 + $0x10] sm:$0xff] }
 0x471   :  { %6811 = vrcp.f32 %v1232_v1  ;;  %v1007_v1 = vld [vmem:[%s9034_s10 + $0x18] sm:$0xff] }
 0x472   :  { %v7715_v2 = vpop.eup %6797  ;;  %6564 = vmatprep.subr.bf16.mxu1 %v7778_v62 }
 0x473   :  { %v7717_v4 = vpop.eup %6799  ;;  %6566 = vmatpush3.bf16.msra.mxu1 %v7778_v62 }
 0x476   :  { %v7722_v8 = vpop.eup %6801 }
 0x477   :  { %v7725_v10 = vpop.eup %6803 }
 0x478   :  { %v7728_v14 = vpop.eup %6805 }
 0x479   :  { %v7736_v18 = vpop.eup %6807  ;;  %v1243_v20 = vmul.f32 %v7728_v14, %v7734_v17 }
 0x47a   :  { %v7742_v23 = vpop.eup %6809  ;;  %v1242_v24 = vmul.f32 %v7736_v18, %v7734_v17 }
 0x47b   :  { %v7746_v25 = vpop.eup %6811  ;;  %v1245_v26 = vmul.f32 %v7742_v23, %v7734_v17 }
 0x47c   :  { %v1244_v29 = vmul.f32 %v7746_v25, %v7734_v17 }
 0x4cb   :  { %v1429_v3 = vpop.permute.xlu0 %1428 }
 0x4cc   :  { %v1439_v5 = vmul.f32 %v7715_v2, %v1429_v3  ;;  %v1427_v6 = vpop.permute.xlu1 %1426  ;;  %v7788_v3 = vpack.c.bf16 %v1007_v1, %v1006_v0 }
 0x4cd   :  { %v1438_v7 = vmul.f32 %v7717_v4, %v1427_v6 }
 0x4ce   :  { %1448 = vrot.lane.b32.xlu0 %v1439_v5, %s7143_s30  ;;  %v1467_v5 = vsub.f32 1.0, %v7715_v2  ;;  %6568 = vmatprep.subr.bf16.mxu1 %v7788_v3 }
 0x4cf   :  { %v1433_v9 = vpop.permute.xlu0 %1432  ;;  %1446 = vrot.lane.b32.xlu1 %v1438_v7, %s7143_s30  ;;  %v1466_v7 = vsub.f32 1.0, %v7717_v4  ;;  %6570 = vmatpush3.bf16.msra.mxu1 %v7788_v3 }
 0x4d0   :  { %v1441_v11 = vmul.f32 %v7722_v8, %v1433_v9  ;;  %v1431_v12 = vpop.permute.xlu1 %1430  ;;  %v1491_v9 = vmul.f32 %v7715_v2, %v7643_v53  ;;  %6580 = vmatprep.subr.bf16.mxu1 %v7601_v31  ;;  %v1493_v53 = vmul.f32 %v7722_v8, %v7650_v57 }
 0x4d1   :  { %v1440_v16 = vmul.f32 %v7725_v10, %v1431_v12 }
 0x4d2   :  { %1452 = vrot.lane.b32.xlu0 %v1441_v11, %s7143_s30 }
 0x4d3   :  { %1450 = vrot.lane.b32.xlu1 %v1440_v16, %s7143_s30  ;;  %v1490_v16 = vmul.f32 %v7717_v4, %v7636_v46  ;;  %v1492_v4 = vmul.f32 %v7725_v10, %v7641_v52 }
 0x4d6   :  { %1252 = vrot.lane.b32.xlu0 %v1243_v20, %s7143_s30 }
 0x4d7   :  { %1250 = vrot.lane.b32.xlu1 %v1242_v24, %s7143_s30 }
 0x4da   :  { %1256 = vrot.lane.b32.xlu0 %v1245_v26, %s7143_s30  ;;  %v1469_v26 = vsub.f32 1.0, %v7722_v8  ;;  %v1270_v8 = vsub.f32 1.0, %v7736_v18 }
 0x4db   :  { %1254 = vrot.lane.b32.xlu1 %v1244_v29, %s7143_s30 }
 0x540   :  { %v1449_v30 = vpop.permute.xlu0 %1448 }
 0x541   :  { %v1459_v32 = vadd.f32 %v1449_v30, %v7679_v13  ;;  %v1447_v35 = vpop.permute.xlu1 %1446 }
 0x542   :  { %v1458_v37 = vadd.f32 %v1447_v35, %v7682_v15 }
 0x543   :  { %6813 = vtanh.f32 %v1459_v32  ;;  %v1468_v32 = vsub.f32 1.0, %v7725_v10 }
 0x544   :  { %6815 = vtanh.f32 %v1458_v37  ;;  %v1453_v38 = vpop.permute.xlu0 %1452 }
 0x545   :  { %v1461_v39 = vadd.f32 %v1453_v38, %v7687_v19  ;;  %v1451_v41 = vpop.permute.xlu1 %1450 }
 0x546   :  { %v1460_v43 = vadd.f32 %v1451_v41, %v7695_v22  ;;  %v1271_v41 = vsub.f32 1.0, %v7728_v14 }
 0x547   :  { %6817 = vtanh.f32 %v1461_v39 }
 0x548   :  { %6819 = vtanh.f32 %v1460_v43  ;;  %v1253_v45 = vpop.permute.xlu0 %1252 }
 0x549   :  { %v1263_v47 = vadd.f32 %v1253_v45, %v7700_v27  ;;  %v1251_v48 = vpop.permute.xlu1 %1250  ;;  %v1273_v45 = vsub.f32 1.0, %v7742_v23 }
 0x54a   :  { %v1262_v49 = vadd.f32 %v1251_v48, %v7703_v28 }
 0x54b   :  { %6821 = vtanh.f32 %v1263_v47  ;;  %v1272_v47 = vsub.f32 1.0, %v7746_v25 }
 0x54c   :  { %6823 = vtanh.f32 %v1262_v49  ;;  %v1257_v13 = vpop.permute.xlu0 %1256 }
 0x54d   :  { %v6814_v15 = vpop.eup %6813  ;;  %v1265_v50 = vadd.f32 %v1257_v13, %v7707_v34  ;;  %v1255_v55 = vpop.permute.xlu1 %1254 }
 0x54e   :  { %v6816_v56 = vpop.eup %6815  ;;  %v1264_v19 = vadd.f32 %v1255_v55, %v7711_v36  ;;  %1476 = vrot.lane.b32.xlu0 %v6814_v15, %s7144_s23 }
 0x54f   :  { %6825 = vtanh.f32 %v1265_v50  ;;  %1474 = vrot.lane.b32.xlu1 %v6816_v56, %s7144_s23 }
 0x550   :  { %6827 = vtanh.f32 %v1264_v19 }
 0x551   :  { %v6818_v22 = vpop.eup %6817 }
 0x552   :  { %v6820_v27 = vpop.eup %6819  ;;  %1480 = vrot.lane.b32.xlu0 %v6818_v22, %s7144_s23 }
 0x553   :  { %1478 = vrot.lane.b32.xlu1 %v6820_v27, %s7144_s23 }
 0x555   :  { %v6822_v28 = vpop.eup %6821 }
 0x556   :  { %v6824_v59 = vpop.eup %6823  ;;  %1280 = vrot.lane.b32.xlu0 %v6822_v28, %s7144_s23 }
 0x557   :  { %1278 = vrot.lane.b32.xlu1 %v6824_v59, %s7144_s23 }
 0x559   :  { %v6826_v34 = vpop.eup %6825 }
 0x55a   :  { %v6828_v36 = vpop.eup %6827  ;;  %1284 = vrot.lane.b32.xlu0 %v6826_v34, %s7144_s23 }
 0x55b   :  { %1282 = vrot.lane.b32.xlu1 %v6828_v36, %s7144_s23 }
 0x5c0   :  { %v1477_v6 = vpop.permute.xlu0 %1476 }
 0x5c1   :  { %v1487_v11 = vmul.f32 %v1477_v6, %v1467_v5  ;;  %v1475_v12 = vpop.permute.xlu1 %1474 }
 0x5c2   :  { %v1486_v20 = vmul.f32 %v1475_v12, %v1466_v7 }
 0x5c3   :  { %v7799_v24 = vadd.f32 %v1491_v9, %v1487_v11 }
 0x5c4   :  { %v7802_v29 = vadd.f32 %v1490_v16, %v1486_v20  ;;  %v1481_v30 = vpop.permute.xlu0 %1480 }
 0x5c5   :  { %v1489_v2 = vmul.f32 %v1481_v30, %v1469_v26  ;;  %1504 = vrot.lane.b32.xlu0 %v7799_v24, %s7144_s23  ;;  %v1479_v46 = vpop.permute.xlu1 %1478  ;;  %v1820_v30 = vld [vmem:[#allocation2 + $0x28] sm:$0xff] }
 0x5c6   :  { %v1488_v35 = vmul.f32 %v1479_v46, %v1468_v32  ;;  %1502 = vrot.lane.b32.xlu1 %v7802_v29, %s7144_s23  ;;  %v7886_v32 = vadd.f32 %v7560_v51, %v1820_v30 }
 0x5c7   :  { %v7813_v37 = vadd.f32 %v1493_v53, %v1489_v2  ;;  %v1819_v53 = vld [vmem:[#allocation2 + $0x20] sm:$0xff] }
 0x5c8   :  { %v7815_v38 = vadd.f32 %v1492_v4, %v1488_v35  ;;  %v1281_v39 = vpop.permute.xlu0 %1280  ;;  %v7889_v2 = vadd.f32 %v1819_v53, %v7563_v54  ;;  %v1822_v35 = vld [vmem:[#allocation2 + $0xa8] sm:$0xff] }
 0x5c9   :  { %1508 = vrot.lane.b32.xlu0 %v7813_v37, %s7144_s23  ;;  %v1279_v57 = vpop.permute.xlu1 %1278  ;;  %v7823_v52 = vmul.f32 %v1281_v39, %v1271_v41  ;;  %v7894_v39 = vadd.f32 %v7566_v58, %v1822_v35 }
 0x5ca   :  { %1506 = vrot.lane.b32.xlu1 %v7815_v38, %s7144_s23  ;;  %v7825_v10 = vmul.f32 %v1279_v57, %v1270_v8  ;;  %v1821_v57 = vld [vmem:[#allocation2 + $0xa0] sm:$0xff] }
 0x5cc   :  { %v1285_v43 = vpop.permute.xlu0 %1284 }
 0x5cd   :  { %1609 = vrot.lane.b32.xlu0 %v7823_v52, %s7144_s23  ;;  %v1283_v14 = vpop.permute.xlu1 %1282  ;;  %v7833_v18 = vmul.f32 %v1285_v43, %v1273_v45  ;;  %v7898_v45 = vadd.f32 %v1821_v57, %v7569_v61 }
 0x5ce   :  { %1607 = vrot.lane.b32.xlu1 %v7825_v10, %s7144_s23  ;;  %v7835_v48 = vmul.f32 %v1283_v14, %v1272_v47 }
 0x5d1   :  { %1613 = vrot.lane.b32.xlu0 %v7833_v18, %s7144_s23 }
 0x5d2   :  { %1611 = vrot.lane.b32.xlu1 %v7835_v48, %s7144_s23 }
 0x5d6   :  { %1736 = vrot.lane.b32.xlu1 %v7734_v17, %s7143_s30 }
 0x637   :  { %v1505_v23 = vpop.permute.xlu0 %1504 }
 0x638   :  { %v1503_v49 = vpop.permute.xlu1 %1502 }
 0x639   :  { %6181 = vmatprep.mubr.msk.f32.mxu0 %vm438_vm1, %v1503_v49 }
 0x63a   :  { %6182 = vmatmul.mubr.msk.f32.vlgmr.msra.gmra.mrb[40].mxu0 %vm438_vm1, %v1505_v23 }
 0x63b   :  { %v1509_v25 = vpop.permute.xlu0 %1508  ;;  %6574 = vmatpush3.bf16.msra.mxu0 %v7606_v33 }
 0x63c   :  { %v1507_v13 = vpop.permute.xlu1 %1506  ;;  %6576 = vmatprep.subr.bf16.mxu0 %v7629_v42 }
 0x63d   :  { %6184 = vmatprep.mubr.msk.f32.mxu0 %vm438_vm1, %v1507_v13 }
 0x63e   :  { %6185 = vmatmul.mubr.msk.f32.gmra.mrb[42].mxu0 %vm438_vm1, %v1509_v25 }
 0x63f   :  { %v1610_v15 = vpop.permute.xlu0 %1609  ;;  %6578 = vmatpush3.bf16.msra.mxu0 %v7629_v42  ;;  %6209 = vmatprep.mubr.msk.f32.mxu0 %vm438_vm1, %v1503_v49 }
 0x640   :  { %v1608_v17 = vpop.permute.xlu1 %1607  ;;  %6588 = vmatprep.subr.bf16.mxu0 %v7778_v62 }
 0x641   :  { %6195 = vmatprep.mubr.msk.f32.mxu1 %vm438_vm1, %v1608_v17 }
 0x642   :  { %6196 = vmatmul.mubr.msk.f32.vlgmr.msra.gmra.mrb[40].mxu1 %vm438_vm1, %v1610_v15  ;;  %6210 = vmatmul.mubr.msk.f32.vlgmr.msra.gmra.mrb[44].mxu0 %vm438_vm1, %v1505_v23 }
 0x643   :  { %6212 = vmatprep.mubr.msk.f32.mxu0 %vm438_vm1, %v1507_v13  ;;  %6582 = vmatpush3.bf16.msra.mxu1 %v7601_v31  ;;  %v1614_v55 = vpop.permute.xlu0 %1613 }
 0x644   :  { %v1612_v50 = vpop.permute.xlu1 %1611  ;;  %6584 = vmatprep.subr.bf16.mxu1 %v7624_v40  ;;  %6590 = vmatpush3.bf16.msra.mxu0 %v7778_v62 }
 0x645   :  { %6198 = vmatprep.mubr.msk.f32.mxu1 %vm438_vm1, %v1612_v50  ;;  %6592 = vmatprep.subr.bf16.mxu0 %v7788_v3 }
 0x646   :  { %6199 = vmatmul.mubr.msk.f32.gmra.mrb[42].mxu1 %vm438_vm1, %v1614_v55  ;;  %6213 = vmatmul.mubr.msk.f32.gmra.mrb[46].mxu0 %vm438_vm1, %v1509_v25 }
 0x647   :  { %6586 = vmatpush3.bf16.msra.mxu1 %v7624_v40 }
 0x648   :  { %6596 = vmatprep.subr.bf16.mxu1 %v7606_v33  ;;  %6594 = vmatpush3.bf16.msra.mxu0 %v7788_v3  ;;  %v7872_v9 = vpop.permute.xlu1 %1736 }
 0x649   :  { %6604 = vmatprep.subr.bf16.mxu0 %v7601_v31 }
 0x70d   :  { %v6183_v56 = vpop.f32.mrb[40].mxu0 }
 0x70e   :  { %v1584_v19 = vpop.f32.mrb[41].mxu0  ;;  %v7901_v14 = vadd.f32 %v6183_v56, %v7692_v21 }
 0x70f   :  { %v7905_v23 = vadd.f32 %v7692_v21, %v1584_v19 }
 0x711   :  { %v6186_v22 = vpop.f32.mrb[42].mxu0 }
 0x712   :  { %v1594_v27 = vpop.f32.mrb[43].mxu0  ;;  %v7909_v13 = vadd.f32 %v6186_v22, %v7692_v21 }
 0x713   :  { %v7913_v50 = vadd.f32 %v7692_v21, %v1594_v27 }
 0x715   :  { %v6197_v28 = vpop.f32.mrb[40].mxu1  ;;  %v6211_v59 = vpop.f32.mrb[44].mxu0 }
 0x716   :  { %v1941_v34 = vadd.f32 %v6211_v59, %v7668_v63  ;;  %v1689_v36 = vpop.f32.mrb[41].mxu1  ;;  %v1893_v60 = vpop.f32.mrb[45].mxu0  ;;  %v1740_v12 = vadd.f32 %v6197_v28, %v7872_v9  ;;  %v1913_v46 = vadd.f32 %v6211_v59, %v7886_v32  ;;  %v1709_v49 = vadd.f32 %v6197_v28, %v7901_v14 }
 0x717   :  { %v1940_v44 = vadd.f32 %v1893_v60, %v7668_v63  ;;  %v1739_v16 = vadd.f32 %v7872_v9, %v1689_v36  ;;  %v1912_v4 = vadd.f32 %v1893_v60, %v7889_v2  ;;  %v1708_v15 = vadd.f32 %v1689_v36, %v7905_v23 }
 0x718   :  { %1950 = vrot.lane.b32.xlu1 %v1941_v34, %s7143_s30  ;;  %v5581_v41 = vmul.f32 -1.442695, %v1913_v46  ;;  %v5573_v55 = vmul.f32 -1.442695, %v1709_v49 }
 0x719   :  { %1948 = vrot.lane.b32.xlu0 %v1940_v44, %s7143_s30  ;;  %v6200_v0 = vpop.f32.mrb[42].mxu1  ;;  %v6214_v1 = vpop.f32.mrb[46].mxu0  ;;  %v5580_v8 = vmul.f32 -1.442695, %v1912_v4  ;;  %v5572_v59 = vmul.f32 -1.442695, %v1708_v15 }
 0x71a   :  { %v1699_v5 = vpop.f32.mrb[43].mxu1  ;;  %v1903_v6 = vpop.f32.mrb[47].mxu0  ;;  %v1943_v7 = vadd.f32 %v6214_v1, %v7668_v63  ;;  %v1742_v20 = vadd.f32 %v6200_v0, %v7872_v9  ;;  %v1915_v43 = vadd.f32 %v6214_v1, %v7894_v39  ;;  %6829 = vpow2.f32 %v5581_v41 }
 0x71b   :  { %v1942_v11 = vadd.f32 %v1903_v6, %v7668_v63  ;;  %v1741_v26 = vadd.f32 %v7872_v9, %v1699_v5  ;;  %v1914_v47 = vadd.f32 %v1903_v6, %v7898_v45  ;;  %6831 = vpow2.f32 %v5580_v8 }
 0x71c   :  { %1954 = vrot.lane.b32.xlu1 %v1943_v7, %s7143_s30  ;;  %v5583_v25 = vmul.f32 -1.442695, %v1915_v43  ;;  %v1711_v56 = vadd.f32 %v6200_v0, %v7909_v13  ;;  %v1710_v19 = vadd.f32 %v1699_v5, %v7913_v50 }
 0x71d   :  { %1952 = vrot.lane.b32.xlu0 %v1942_v11, %s7143_s30  ;;  %v5582_v17 = vmul.f32 -1.442695, %v1914_v47 }
 0x71e   :  { %6833 = vpow2.f32 %v5583_v25  ;;  %v5575_v28 = vmul.f32 -1.442695, %v1711_v56  ;;  %v5574_v22 = vmul.f32 -1.442695, %v1710_v19 }
 0x71f   :  { %6835 = vpow2.f32 %v5582_v17 }
 0x720   :  { %1749 = vrot.lane.b32.xlu1 %v1740_v12, %s7143_s30  ;;  %6837 = vpow2.f32 %v5573_v55 }
 0x721   :  { %1747 = vrot.lane.b32.xlu0 %v1739_v16, %s7143_s30  ;;  %6839 = vpow2.f32 %v5572_v59 }
 0x722   :  { %6841 = vpow2.f32 %v5575_v28 }
 0x723   :  { %6843 = vpow2.f32 %v5574_v22 }
 0x724   :  { %1753 = vrot.lane.b32.xlu1 %v1742_v20, %s7143_s30  ;;  %v6830_v34 = vpop.eup %6829 }
 0x725   :  { %1751 = vrot.lane.b32.xlu0 %v1741_v26, %s7143_s30  ;;  %v6832_v60 = vpop.eup %6831  ;;  %v1929_v44 = vadd.f32 1.0, %v6830_v34 }
 0x726   :  { %v1928_v36 = vadd.f32 1.0, %v6832_v60 }
 0x727   :  { %6845 = vrcp.f32 %v1929_v44 }
 0x728   :  { %v6834_v1 = vpop.eup %6833  ;;  %6847 = vrcp.f32 %v1928_v36 }
 0x729   :  { %v6836_v27 = vpop.eup %6835  ;;  %v1931_v0 = vadd.f32 1.0, %v6834_v1 }
 0x72a   :  { %v6838_v6 = vpop.eup %6837  ;;  %v1930_v7 = vadd.f32 1.0, %v6836_v27 }
 0x72b   :  { %v6840_v11 = vpop.eup %6839  ;;  %v1725_v5 = vadd.f32 1.0, %v6838_v6  ;;  %6849 = vrcp.f32 %v1931_v0 }
 0x72c   :  { %v6842_v12 = vpop.eup %6841  ;;  %v1724_v16 = vadd.f32 1.0, %v6840_v11  ;;  %6851 = vrcp.f32 %v1930_v7 }
 0x72d   :  { %v6844_v20 = vpop.eup %6843  ;;  %6853 = vrcp.f32 %v1725_v5  ;;  %v1727_v26 = vadd.f32 1.0, %v6842_v12 }
 0x72e   :  { %6855 = vrcp.f32 %v1724_v16  ;;  %v1726_v4 = vadd.f32 1.0, %v6844_v20 }
 0x72f   :  { %6857 = vrcp.f32 %v1727_v26 }
 0x730   :  { %6859 = vrcp.f32 %v1726_v4 }
 0x731   :  { %v7917_v30 = vpop.eup %6845 }
 0x732   :  { %v7919_v46 = vpop.eup %6847 }
 0x735   :  { %v7925_v8 = vpop.eup %6849 }
 0x736   :  { %v7928_v49 = vpop.eup %6851 }
 0x737   :  { %v7932_v17 = vpop.eup %6853 }
 0x738   :  { %v7936_v59 = vpop.eup %6855 }
 0x739   :  { %v7940_v34 = vpop.eup %6857 }
 0x73a   :  { %v7944_v44 = vpop.eup %6859 }
 0x78a   :  { %v1951_v53 = vpop.permute.xlu1 %1950 }
 0x78b   :  { %v1961_v35 = vmul.f32 %v7917_v30, %v1951_v53  ;;  %v1949_v41 = vpop.permute.xlu0 %1948 }
 0x78c   :  { %v1960_v57 = vmul.f32 %v7919_v46, %v1949_v41 }
 0x78d   :  { %1970 = vrot.lane.b32.xlu1 %v1961_v35, %s7143_s30 }
 0x78e   :  { %1968 = vrot.lane.b32.xlu0 %v1960_v57, %s7143_s30  ;;  %v1955_v43 = vpop.permute.xlu1 %1954 }
 0x78f   :  { %v1963_v47 = vmul.f32 %v7925_v8, %v1955_v43  ;;  %v1953_v25 = vpop.permute.xlu0 %1952 }
 0x790   :  { %v1962_v15 = vmul.f32 %v7928_v49, %v1953_v25 }
 0x791   :  { %1974 = vrot.lane.b32.xlu1 %v1963_v47, %s7143_s30 }
 0x792   :  { %v1750_v55 = vpop.permute.xlu1 %1749  ;;  %1972 = vrot.lane.b32.xlu0 %v1962_v15, %s7143_s30  ;;  %v1988_v15 = vsub.f32 1.0, %v7919_v46 }
 0x793   :  { %v1760_v56 = vmul.f32 %v7932_v17, %v1750_v55  ;;  %v1748_v19 = vpop.permute.xlu0 %1747  ;;  %v2013_v55 = vmul.f32 %v7917_v30, %v7799_v24 }
 0x794   :  { %v1759_v28 = vmul.f32 %v7936_v59, %v1748_v19 }
 0x795   :  { %1769 = vrot.lane.b32.xlu1 %v1760_v56, %s7143_s30 }
 0x796   :  { %v1754_v60 = vpop.permute.xlu1 %1753  ;;  %1767 = vrot.lane.b32.xlu0 %v1759_v28, %s7143_s30  ;;  %v2012_v28 = vmul.f32 %v7919_v46, %v7802_v29 }
 0x797   :  { %v1762_v22 = vmul.f32 %v7940_v34, %v1754_v60  ;;  %v1752_v36 = vpop.permute.xlu0 %1751 }
 0x798   :  { %v1761_v1 = vmul.f32 %v7944_v44, %v1752_v36 }
 0x799   :  { %1773 = vrot.lane.b32.xlu1 %v1762_v22, %s7143_s30 }
 0x79a   :  { %1771 = vrot.lane.b32.xlu0 %v1761_v1, %s7143_s30  ;;  %v1991_v1 = vsub.f32 1.0, %v7925_v8 }
 0x7ff   :  { %v1971_v27 = vpop.permute.xlu1 %1970 }
 0x800   :  { %v1981_v0 = vadd.f32 %v1971_v27, %v7886_v32  ;;  %v1969_v6 = vpop.permute.xlu0 %1968 }
 0x801   :  { %v1980_v7 = vadd.f32 %v1969_v6, %v7889_v2  ;;  %v2014_v6 = vmul.f32 %v7928_v49, %v7815_v38  ;;  %v1811_v38 = vmul.f32 %v7936_v59, %v7825_v10 }
 0x802   :  { %6861 = vtanh.f32 %v1981_v0  ;;  %v2015_v0 = vmul.f32 %v7925_v8, %v7813_v37  ;;  %v1812_v37 = vmul.f32 %v7932_v17, %v7823_v52 }
 0x803   :  { %6863 = vtanh.f32 %v1980_v7  ;;  %v1975_v11 = vpop.permute.xlu1 %1974 }
 0x804   :  { %v1983_v5 = vadd.f32 %v1975_v11, %v7894_v39  ;;  %v1973_v12 = vpop.permute.xlu0 %1972  ;;  %v1788_v11 = vsub.f32 1.0, %v7932_v17  ;;  %v1814_v17 = vmul.f32 %v7940_v34, %v7833_v18 }
 0x805   :  { %v1982_v16 = vadd.f32 %v1973_v12, %v7898_v45 }
 0x806   :  { %6865 = vtanh.f32 %v1983_v5 }
 0x807   :  { %v1770_v20 = vpop.permute.xlu1 %1769  ;;  %6867 = vtanh.f32 %v1982_v16  ;;  %v1787_v16 = vsub.f32 1.0, %v7936_v59  ;;  %v1813_v59 = vmul.f32 %v7944_v44, %v7835_v48 }
 0x808   :  { %v1780_v26 = vadd.f32 %v1770_v20, %v7901_v14  ;;  %v1768_v53 = vpop.permute.xlu0 %1767 }
 0x809   :  { %v1779_v32 = vadd.f32 %v1768_v53, %v7905_v23  ;;  %v1790_v53 = vsub.f32 1.0, %v7940_v34 }
 0x80a   :  { %6869 = vtanh.f32 %v1780_v26 }
 0x80b   :  { %v1774_v35 = vpop.permute.xlu1 %1773  ;;  %6871 = vtanh.f32 %v1779_v32 }
 0x80c   :  { %v6862_v4 = vpop.eup %6861  ;;  %v1782_v41 = vadd.f32 %v1774_v35, %v7909_v13  ;;  %v1772_v39 = vpop.permute.xlu0 %1771  ;;  %v1789_v35 = vsub.f32 1.0, %v7944_v44 }
 0x80d   :  { %v6864_v2 = vpop.eup %6863  ;;  %1998 = vrot.lane.b32.xlu1 %v6862_v4, %s7144_s23  ;;  %v1781_v45 = vadd.f32 %v1772_v39, %v7913_v50  ;;  %v1989_v50 = vsub.f32 1.0, %v7917_v30  ;;  %v1990_v30 = vsub.f32 1.0, %v7928_v49 }
 0x80e   :  { %1996 = vrot.lane.b32.xlu0 %v6864_v2, %s7144_s23  ;;  %6873 = vtanh.f32 %v1782_v41 }
 0x80f   :  { %6875 = vtanh.f32 %v1781_v45 }
 0x810   :  { %v6866_v57 = vpop.eup %6865 }
 0x811   :  { %2002 = vrot.lane.b32.xlu1 %v6866_v57, %s7144_s23  ;;  %v6868_v14 = vpop.eup %6867 }
 0x812   :  { %2000 = vrot.lane.b32.xlu0 %v6868_v14, %s7144_s23 }
 0x814   :  { %v6870_v23 = vpop.eup %6869 }
 0x815   :  { %1797 = vrot.lane.b32.xlu1 %v6870_v23, %s7144_s23  ;;  %v6872_v43 = vpop.eup %6871 }
 0x816   :  { %1795 = vrot.lane.b32.xlu0 %v6872_v43, %s7144_s23 }
 0x818   :  { %v6874_v13 = vpop.eup %6873 }
 0x819   :  { %1801 = vrot.lane.b32.xlu1 %v6874_v13, %s7144_s23  ;;  %v6876_v47 = vpop.eup %6875 }
 0x81a   :  { %1799 = vrot.lane.b32.xlu0 %v6876_v47, %s7144_s23 }
 0x87f   :  { %v1999_v25 = vpop.permute.xlu1 %1998 }
 0x880   :  { %v2009_v56 = vmul.f32 %v1999_v25, %v1989_v50  ;;  %v1997_v19 = vpop.permute.xlu0 %1996 }
 0x881   :  { %v2008_v60 = vmul.f32 %v1997_v19, %v1988_v15 }
 0x882   :  { %v7971_v22 = vadd.f32 %v2013_v55, %v2009_v56 }
 0x883   :  { %v7973_v36 = vadd.f32 %v2012_v28, %v2008_v60  ;;  %v2003_v27 = vpop.permute.xlu1 %2002 }
 0x884   :  { %2026 = vrot.lane.b32.xlu1 %v7971_v22, %s7144_s23  ;;  %v2011_v24 = vmul.f32 %v2003_v27, %v1991_v1  ;;  %v2001_v29 = vpop.permute.xlu0 %2000 }
 0x885   :  { %2024 = vrot.lane.b32.xlu0 %v7973_v36, %s7144_s23  ;;  %v2010_v7 = vmul.f32 %v2001_v29, %v1990_v30 }
 0x886   :  { %v7983_v46 = vadd.f32 %v2015_v0, %v2011_v24 }
 0x887   :  { %v1798_v5 = vpop.permute.xlu1 %1797  ;;  %v7988_v12 = vadd.f32 %v2014_v6, %v2010_v7 }
 0x888   :  { %v1808_v8 = vmul.f32 %v1798_v5, %v1788_v11  ;;  %2030 = vrot.lane.b32.xlu1 %v7983_v46, %s7144_s23  ;;  %v1796_v20 = vpop.permute.xlu0 %1795 }
 0x889   :  { %v1807_v49 = vmul.f32 %v1796_v20, %v1787_v16  ;;  %2028 = vrot.lane.b32.xlu0 %v7988_v12, %s7144_s23  ;;  %v2339_v16 = vld [vmem:[#allocation2 + $0x38] sm:$0xff] }
 0x88a   :  { %v7995_v26 = vadd.f32 %v1812_v37, %v1808_v8 }
 0x88b   :  { %v1802_v32 = vpop.permute.xlu1 %1801  ;;  %v8002_v52 = vadd.f32 %v1811_v38, %v1807_v49  ;;  %v8070_v38 = vadd.f32 %v7560_v51, %v2339_v16  ;;  %v2338_v49 = vld [vmem:[#allocation2 + $0x30] sm:$0xff] }
 0x88c   :  { %v1810_v4 = vmul.f32 %v1802_v32, %v1790_v53  ;;  %2131 = vrot.lane.b32.xlu1 %v7995_v26, %s7144_s23  ;;  %v1800_v2 = vpop.permute.xlu0 %1799  ;;  %v8073_v53 = vadd.f32 %v2338_v49, %v7563_v54 }
 0x88d   :  { %v1809_v41 = vmul.f32 %v1800_v2, %v1789_v35  ;;  %2129 = vrot.lane.b32.xlu0 %v8002_v52, %s7144_s23  ;;  %v2341_v2 = vld [vmem:[#allocation2 + $0xb8] sm:$0xff] }
 0x88e   :  { %v8009_v10 = vadd.f32 %v1814_v17, %v1810_v4 }
 0x88f   :  { %v8015_v39 = vadd.f32 %v1813_v59, %v1809_v41  ;;  %v8078_v59 = vadd.f32 %v7566_v58, %v2341_v2  ;;  %v2340_v41 = vld [vmem:[#allocation2 + $0xb0] sm:$0xff] }
 0x890   :  { %2135 = vrot.lane.b32.xlu1 %v8009_v10, %s7144_s23 }
 0x891   :  { %2133 = vrot.lane.b32.xlu0 %v8015_v39, %s7144_s23 }
 0x8f6   :  { %v2027_v18 = vpop.permute.xlu1 %2026 }
 0x8f7   :  { %v2025_v34 = vpop.permute.xlu0 %2024 }
 0x8f8   :  { %6223 = vmatprep.mubr.msk.f32.mxu1 %vm438_vm1, %v2025_v34 }
 0x8f9   :  { %6224 = vmatmul.mubr.msk.f32.vlgmr.msra.gmra.mrb[44].mxu1 %vm438_vm1, %v2027_v18 }
 0x8fa   :  { %6598 = vmatpush3.bf16.msra.mxu1 %v7606_v33  ;;  %v2031_v48 = vpop.permute.xlu1 %2030 }
 0x8fb   :  { %6600 = vmatprep.subr.bf16.mxu1 %v7629_v42  ;;  %v2029_v44 = vpop.permute.xlu0 %2028 }
 0x8fc   :  { %6226 = vmatprep.mubr.msk.f32.mxu1 %vm438_vm1, %v2029_v44 }
 0x8fd   :  { %6227 = vmatmul.mubr.msk.f32.gmra.mrb[46].mxu1 %vm438_vm1, %v2031_v48 }
 0x8fe   :  { %6602 = vmatpush3.bf16.msra.mxu1 %v7629_v42  ;;  %6251 = vmatprep.mubr.msk.f32.mxu1 %vm438_vm1, %v2025_v34  ;;  %v2132_v45 = vpop.permute.xlu1 %2131 }
 0x8ff   :  { %6612 = vmatprep.subr.bf16.mxu1 %v7778_v62  ;;  %v2130_v57 = vpop.permute.xlu0 %2129 }
 0x900   :  { %6237 = vmatprep.mubr.msk.f32.mxu0 %vm438_vm1, %v2130_v57 }
 0x901   :  { %6238 = vmatmul.mubr.msk.f32.vlgmr.msra.gmra.mrb[48].mxu0 %vm438_vm1, %v2132_v45  ;;  %6252 = vmatmul.mubr.msk.f32.vlgmr.msra.gmra.mrb[48].mxu1 %vm438_vm1, %v2027_v18  ;;  %v8081_v18 = vadd.f32 %v2340_v41, %v7569_v61 }
 0x902   :  { %6254 = vmatprep.mubr.msk.f32.mxu1 %vm438_vm1, %v2029_v44  ;;  %6614 = vmatpush3.bf16.msra.mxu1 %v7778_v62  ;;  %v2136_v23 = vpop.permute.xlu1 %2135 }
 0x903   :  { %v2134_v14 = vpop.permute.xlu0 %2133  ;;  %6616 = vmatprep.subr.bf16.mxu1 %v7788_v3  ;;  %6606 = vmatpush3.bf16.msra.mxu0 %v7601_v31 }
 0x904   :  { %6240 = vmatprep.mubr.msk.f32.mxu0 %vm438_vm1, %v2134_v14  ;;  %6608 = vmatprep.subr.bf16.mxu0 %v7624_v40 }
 0x905   :  { %6241 = vmatmul.mubr.msk.f32.gmra.mrb[50].mxu0 %vm438_vm1, %v2136_v23  ;;  %6255 = vmatmul.mubr.msk.f32.gmra.mrb[50].mxu1 %vm438_vm1, %v2031_v48 }
 0x906   :  { %6618 = vmatpush3.bf16.msra.mxu1 %v7788_v3 }
 0x907   :  { %6610 = vmatpush3.bf16.msra.mxu0 %v7624_v40  ;;  %6628 = vmatprep.subr.bf16.mxu1 %v7601_v31 }
 0x908   :  { %6620 = vmatprep.subr.bf16.mxu0 %v7606_v33 }
 0x9cc   :  { %v6225_v43 = vpop.f32.mrb[44].mxu1 }
 0x9cd   :  { %v2106_v13 = vpop.f32.mrb[45].mxu1  ;;  %v8062_v5 = vadd.f32 %v6225_v43, %v7692_v21 }
 0x9ce   :  { %v8065_v37 = vadd.f32 %v7692_v21, %v2106_v13 }
 0x9d0   :  { %v6228_v47 = vpop.f32.mrb[46].mxu1 }
 0x9d1   :  { %v2116_v50 = vpop.f32.mrb[47].mxu1  ;;  %v8086_v57 = vadd.f32 %v6228_v47, %v7692_v21 }
 0x9d2   :  { %v8089_v14 = vadd.f32 %v7692_v21, %v2116_v50 }
 0x9d4   :  { %v6239_v25 = vpop.f32.mrb[48].mxu0  ;;  %v6253_v15 = vpop.f32.mrb[48].mxu1 }
 0x9d5   :  { %v2259_v55 = vadd.f32 %v6239_v25, %v7872_v9  ;;  %v2211_v56 = vpop.f32.mrb[49].mxu0  ;;  %v2412_v19 = vpop.f32.mrb[49].mxu1  ;;  %v2460_v27 = vadd.f32 %v6253_v15, %v7668_v63  ;;  %v2231_v8 = vadd.f32 %v6239_v25, %v8062_v5  ;;  %v2432_v17 = vadd.f32 %v6253_v15, %v8070_v38 }
 0x9d6   :  { %v2258_v28 = vadd.f32 %v2211_v56, %v7872_v9  ;;  %v2459_v30 = vadd.f32 %v2412_v19, %v7668_v63  ;;  %v2230_v20 = vadd.f32 %v2211_v56, %v8065_v37  ;;  %v2431_v35 = vadd.f32 %v2412_v19, %v8073_v53 }
 0x9d7   :  { %2268 = vrot.lane.b32.xlu1 %v2259_v55, %s7143_s30  ;;  %v5593_v32 = vmul.f32 -1.442695, %v2231_v8  ;;  %v5601_v34 = vmul.f32 -1.442695, %v2432_v17 }
 0x9d8   :  { %v6256_v60 = vpop.f32.mrb[50].mxu1  ;;  %2266 = vrot.lane.b32.xlu0 %v2258_v28, %s7143_s30  ;;  %v6242_v1 = vpop.f32.mrb[50].mxu0  ;;  %v5592_v4 = vmul.f32 -1.442695, %v2230_v20  ;;  %v5600_v44 = vmul.f32 -1.442695, %v2431_v35 }
 0x9d9   :  { %v2221_v0 = vpop.f32.mrb[51].mxu0  ;;  %v2422_v24 = vpop.f32.mrb[51].mxu1  ;;  %v2462_v29 = vadd.f32 %v6256_v60, %v7668_v63  ;;  %v2261_v7 = vadd.f32 %v6242_v1, %v7872_v9  ;;  %6877 = vpow2.f32 %v5593_v32  ;;  %v2434_v48 = vadd.f32 %v6256_v60, %v8078_v59 }
 0x9da   :  { %v2461_v6 = vadd.f32 %v2422_v24, %v7668_v63  ;;  %v2260_v11 = vadd.f32 %v2221_v0, %v7872_v9  ;;  %6879 = vpow2.f32 %v5592_v4  ;;  %v2433_v45 = vadd.f32 %v2422_v24, %v8081_v18 }
 0x9db   :  { %2469 = vrot.lane.b32.xlu1 %v2460_v27, %s7143_s30  ;;  %6881 = vpow2.f32 %v5601_v34  ;;  %v5603_v23 = vmul.f32 -1.442695, %v2434_v48  ;;  %v2233_v43 = vadd.f32 %v6242_v1, %v8086_v57  ;;  %v2232_v13 = vadd.f32 %v2221_v0, %v8089_v14 }
 0x9dc   :  { %2467 = vrot.lane.b32.xlu0 %v2459_v30, %s7143_s30  ;;  %6883 = vpow2.f32 %v5600_v44  ;;  %v5602_v25 = vmul.f32 -1.442695, %v2433_v45 }
 0x9dd   :  { %6885 = vpow2.f32 %v5603_v23  ;;  %v5595_v15 = vmul.f32 -1.442695, %v2233_v43  ;;  %v5594_v55 = vmul.f32 -1.442695, %v2232_v13 }
 0x9de   :  { %6887 = vpow2.f32 %v5602_v25 }
 0x9df   :  { %2473 = vrot.lane.b32.xlu1 %v2462_v29, %s7143_s30  ;;  %6889 = vpow2.f32 %v5595_v15 }
 0x9e0   :  { %2471 = vrot.lane.b32.xlu0 %v2461_v6, %s7143_s30  ;;  %6891 = vpow2.f32 %v5594_v55 }
 0x9e3   :  { %2272 = vrot.lane.b32.xlu1 %v2261_v7, %s7143_s30  ;;  %v6878_v56 = vpop.eup %6877 }
 0x9e4   :  { %2270 = vrot.lane.b32.xlu0 %v2260_v11, %s7143_s30  ;;  %v6880_v19 = vpop.eup %6879  ;;  %v2247_v47 = vadd.f32 1.0, %v6878_v56 }
 0x9e5   :  { %v6882_v28 = vpop.eup %6881  ;;  %v2246_v21 = vadd.f32 1.0, %v6880_v19 }
 0x9e6   :  { %v6884_v50 = vpop.eup %6883  ;;  %6893 = vrcp.f32 %v2247_v47  ;;  %v2448_v60 = vadd.f32 1.0, %v6882_v28 }
 0x9e7   :  { %v6886_v27 = vpop.eup %6885  ;;  %6895 = vrcp.f32 %v2246_v21  ;;  %v2447_v1 = vadd.f32 1.0, %v6884_v50 }
 0x9e8   :  { %v6888_v24 = vpop.eup %6887  ;;  %6897 = vrcp.f32 %v2448_v60  ;;  %v2450_v0 = vadd.f32 1.0, %v6886_v27 }
 0x9e9   :  { %v6890_v30 = vpop.eup %6889  ;;  %6899 = vrcp.f32 %v2447_v1  ;;  %v2449_v29 = vadd.f32 1.0, %v6888_v24 }
 0x9ea   :  { %v6892_v6 = vpop.eup %6891  ;;  %6901 = vrcp.f32 %v2450_v0  ;;  %v2249_v7 = vadd.f32 1.0, %v6890_v30 }
 0x9eb   :  { %v2248_v11 = vadd.f32 1.0, %v6892_v6  ;;  %6903 = vrcp.f32 %v2449_v29 }
 0x9ec   :  { %6905 = vrcp.f32 %v2249_v7 }
 0x9ed   :  { %6907 = vrcp.f32 %v2248_v11 }
 0x9f0   :  { %v8093_v8 = vpop.eup %6893 }
 0x9f1   :  { %v8095_v20 = vpop.eup %6895 }
 0x9f2   :  { %v8100_v4 = vpop.eup %6897 }
 0x9f3   :  { %v8103_v2 = vpop.eup %6899 }
 0x9f4   :  { %v8108_v44 = vpop.eup %6901 }
 0x9f5   :  { %v8111_v23 = vpop.eup %6903 }
 0x9f6   :  { %v8116_v15 = vpop.eup %6905 }
 0x9f7   :  { %v8119_v56 = vpop.eup %6907 }
 0xa49   :  { %v2269_v16 = vpop.permute.xlu1 %2268 }
 0xa4a   :  { %v2279_v49 = vmul.f32 %v8093_v8, %v2269_v16  ;;  %v2267_v32 = vpop.permute.xlu0 %2266 }
 0xa4b   :  { %v2278_v17 = vmul.f32 %v8095_v20, %v2267_v32 }
 0xa4c   :  { %2288 = vrot.lane.b32.xlu1 %v2279_v49, %s7143_s30 }
 0xa4d   :  { %2286 = vrot.lane.b32.xlu0 %v2278_v17, %s7143_s30  ;;  %v2470_v35 = vpop.permute.xlu1 %2469 }
 0xa4e   :  { %v2480_v41 = vmul.f32 %v8100_v4, %v2470_v35  ;;  %v2468_v34 = vpop.permute.xlu0 %2467  ;;  %v2307_v35 = vsub.f32 1.0, %v8093_v8 }
 0xa4f   :  { %v2479_v48 = vmul.f32 %v8103_v2, %v2468_v34  ;;  %v2306_v34 = vsub.f32 1.0, %v8095_v20 }
 0xa50   :  { %2489 = vrot.lane.b32.xlu1 %v2480_v41, %s7143_s30 }
 0xa51   :  { %2487 = vrot.lane.b32.xlu0 %v2479_v48, %s7143_s30  ;;  %v2474_v45 = vpop.permute.xlu1 %2473  ;;  %v2331_v48 = vmul.f32 %v8093_v8, %v7995_v26 }
 0xa52   :  { %v2482_v43 = vmul.f32 %v8108_v44, %v2474_v45  ;;  %v2472_v13 = vpop.permute.xlu0 %2471 }
 0xa53   :  { %v2481_v25 = vmul.f32 %v8111_v23, %v2472_v13  ;;  %v2330_v13 = vmul.f32 %v8095_v20, %v8002_v52  ;;  %v2531_v52 = vmul.f32 %v8103_v2, %v7973_v36  ;;  %v2533_v36 = vmul.f32 %v8111_v23, %v7988_v12 }
 0xa54   :  { %2493 = vrot.lane.b32.xlu1 %v2482_v43, %s7143_s30  ;;  %v2332_v12 = vmul.f32 %v8119_v56, %v8015_v39 }
 0xa55   :  { %2491 = vrot.lane.b32.xlu0 %v2481_v25, %s7143_s30  ;;  %v2273_v55 = vpop.permute.xlu1 %2272 }
 0xa56   :  { %v2281_v19 = vmul.f32 %v8116_v15, %v2273_v55  ;;  %v2271_v47 = vpop.permute.xlu0 %2270 }
 0xa57   :  { %v2280_v28 = vmul.f32 %v8119_v56, %v2271_v47 }
 0xa58   :  { %2292 = vrot.lane.b32.xlu1 %v2281_v19, %s7143_s30  ;;  %v2508_v19 = vsub.f32 1.0, %v8100_v4 }
 0xa59   :  { %2290 = vrot.lane.b32.xlu0 %v2280_v28, %s7143_s30 }
 0xabe   :  { %v2289_v21 = vpop.permute.xlu1 %2288 }
 0xabf   :  { %v2299_v50 = vadd.f32 %v2289_v21, %v8062_v5  ;;  %v2287_v60 = vpop.permute.xlu0 %2286  ;;  %v2507_v21 = vsub.f32 1.0, %v8103_v2 }
 0xac0   :  { %v2298_v27 = vadd.f32 %v2287_v60, %v8065_v37 }
 0xac1   :  { %6909 = vtanh.f32 %v2299_v50  ;;  %v2532_v50 = vmul.f32 %v8100_v4, %v7971_v22  ;;  %v2509_v22 = vsub.f32 1.0, %v8111_v23  ;;  %v2534_v4 = vmul.f32 %v8108_v44, %v7983_v46 }
 0xac2   :  { %6911 = vtanh.f32 %v2298_v27  ;;  %v2490_v1 = vpop.permute.xlu1 %2489  ;;  %v2510_v27 = vsub.f32 1.0, %v8108_v44  ;;  %v2308_v46 = vsub.f32 1.0, %v8119_v56  ;;  %v2333_v44 = vmul.f32 %v8116_v15, %v8009_v10 }
 0xac3   :  { %v2500_v24 = vadd.f32 %v2490_v1, %v8070_v38  ;;  %v2488_v0 = vpop.permute.xlu0 %2487 }
 0xac4   :  { %v2499_v30 = vadd.f32 %v2488_v0, %v8073_v53 }
 0xac5   :  { %6913 = vtanh.f32 %v2500_v24 }
 0xac6   :  { %6915 = vtanh.f32 %v2499_v30  ;;  %v2494_v29 = vpop.permute.xlu1 %2493 }
 0xac7   :  { %v2502_v6 = vadd.f32 %v2494_v29, %v8078_v59  ;;  %v2492_v7 = vpop.permute.xlu0 %2491 }
 0xac8   :  { %v2501_v11 = vadd.f32 %v2492_v7, %v8081_v18 }
 0xac9   :  { %6917 = vtanh.f32 %v2502_v6  ;;  %v2309_v6 = vsub.f32 1.0, %v8116_v15 }
 0xaca   :  { %6919 = vtanh.f32 %v2501_v11  ;;  %v2293_v5 = vpop.permute.xlu1 %2292 }
 0xacb   :  { %v6910_v37 = vpop.eup %6909  ;;  %v2301_v16 = vadd.f32 %v2293_v5, %v8086_v57  ;;  %v2291_v49 = vpop.permute.xlu0 %2290 }
 0xacc   :  { %v6912_v32 = vpop.eup %6911  ;;  %v2300_v38 = vadd.f32 %v2291_v49, %v8089_v14  ;;  %2316 = vrot.lane.b32.xlu1 %v6910_v37, %s7144_s23 }
 0xacd   :  { %6921 = vtanh.f32 %v2301_v16  ;;  %2314 = vrot.lane.b32.xlu0 %v6912_v32, %s7144_s23 }
 0xace   :  { %6923 = vtanh.f32 %v2300_v38 }
 0xacf   :  { %v6914_v53 = vpop.eup %6913 }
 0xad0   :  { %v6916_v59 = vpop.eup %6915  ;;  %2517 = vrot.lane.b32.xlu1 %v6914_v53, %s7144_s23 }
 0xad1   :  { %2515 = vrot.lane.b32.xlu0 %v6916_v59, %s7144_s23 }
 0xad3   :  { %v6918_v18 = vpop.eup %6917 }
 0xad4   :  { %v6920_v17 = vpop.eup %6919  ;;  %2521 = vrot.lane.b32.xlu1 %v6918_v18, %s7144_s23 }
 0xad5   :  { %2519 = vrot.lane.b32.xlu0 %v6920_v17, %s7144_s23 }
 0xad7   :  { %v6922_v57 = vpop.eup %6921 }
 0xad8   :  { %v6924_v14 = vpop.eup %6923  ;;  %2320 = vrot.lane.b32.xlu1 %v6922_v57, %s7144_s23 }
 0xad9   :  { %2318 = vrot.lane.b32.xlu0 %v6924_v14, %s7144_s23 }
 0xb3e   :  { %v2317_v41 = vpop.permute.xlu1 %2316 }
 0xb3f   :  { %v2327_v45 = vmul.f32 %v2317_v41, %v2307_v35  ;;  %v2315_v43 = vpop.permute.xlu0 %2314 }
 0xb40   :  { %v2326_v25 = vmul.f32 %v2315_v43, %v2306_v34 }
 0xb41   :  { %v8147_v55 = vadd.f32 %v2331_v48, %v2327_v45 }
 0xb42   :  { %v8150_v47 = vadd.f32 %v2330_v13, %v2326_v25  ;;  %v2518_v28 = vpop.permute.xlu1 %2517 }
 0xb43   :  { %v2528_v60 = vmul.f32 %v2518_v28, %v2508_v19  ;;  %v2516_v26 = vpop.permute.xlu0 %2515  ;;  %2650 = vrot.lane.b32.xlu1 %v8147_v55, %s7144_s23 }
 0xb44   :  { %v2527_v8 = vmul.f32 %v2516_v26, %v2507_v21  ;;  %2648 = vrot.lane.b32.xlu0 %v8150_v47, %s7144_s23 }
 0xb45   :  { %v8161_v20 = vadd.f32 %v2532_v50, %v2528_v60 }
 0xb46   :  { %v8164_v1 = vadd.f32 %v2531_v52, %v2527_v8  ;;  %v2522_v24 = vpop.permute.xlu1 %2521 }
 0xb47   :  { %v2530_v0 = vmul.f32 %v2522_v24, %v2510_v27  ;;  %v2520_v30 = vpop.permute.xlu0 %2519  ;;  %2545 = vrot.lane.b32.xlu1 %v8161_v20, %s7144_s23  ;;  %v8240_v27 = vld [vmem:[%s9032_s11] ss:$0 sm:$0xff] }
 0xb48   :  { %v2529_v2 = vmul.f32 %v2520_v30, %v2509_v22  ;;  %2543 = vrot.lane.b32.xlu0 %v8164_v1, %s7144_s23 }
 0xb49   :  { %v8175_v29 = vadd.f32 %v2534_v4, %v2530_v0 }
 0xb4a   :  { %v8178_v7 = vadd.f32 %v2533_v36, %v2529_v2  ;;  %v2321_v11 = vpop.permute.xlu1 %2320 }
 0xb4b   :  { %v2329_v5 = vmul.f32 %v2321_v11, %v2309_v6  ;;  %v2319_v37 = vpop.permute.xlu0 %2318  ;;  %2549 = vrot.lane.b32.xlu1 %v8175_v29, %s7144_s23 }
 0xb4c   :  { %v2328_v23 = vmul.f32 %v2319_v37, %v2308_v46  ;;  %2547 = vrot.lane.b32.xlu0 %v8178_v7, %s7144_s23  ;;  %v2858_v46 = vld [vmem:[#allocation2 + $0x48] sm:$0xff]  ;;  %v2857_v37 = vld [vmem:[#allocation2 + $0x40] sm:$0xff] }
 0xb4d   :  { %v8189_v16 = vadd.f32 %v2333_v44, %v2329_v5  ;;  %v8258_v44 = vadd.f32 %v7560_v51, %v2858_v46 }
 0xb4e   :  { %v8191_v49 = vadd.f32 %v2332_v12, %v2328_v23  ;;  %v8262_v12 = vadd.f32 %v2857_v37, %v7563_v54 }
 0xb4f   :  { %2654 = vrot.lane.b32.xlu1 %v8189_v16, %s7144_s23 }
 0xb50   :  { %2652 = vrot.lane.b32.xlu0 %v8191_v49, %s7144_s23 }
 0xbb5   :  { %v2651_v10 = vpop.permute.xlu1 %2650 }
 0xbb6   :  { %v2649_v15 = vpop.permute.xlu0 %2648 }
 0xbb7   :  { %6279 = vmatprep.mubr.msk.f32.mxu1 %vm438_vm1, %v2649_v15 }
 0xbb8   :  { %6280 = vmatmul.mubr.msk.f32.vlgmr.msra.gmra.mrb[52].mxu1 %vm438_vm1, %v2651_v10 }
 0xbb9   :  { %v2546_v39 = vpop.permute.xlu1 %2545  ;;  %6630 = vmatpush3.bf16.msra.mxu1 %v7601_v31 }
 0xbba   :  { %v2544_v56 = vpop.permute.xlu0 %2543  ;;  %6632 = vmatprep.subr.bf16.mxu1 %v7624_v40 }
 0xbbb   :  { %6265 = vmatprep.mubr.msk.f32.mxu0 %vm438_vm1, %v2544_v56 }
 0xbbc   :  { %6266 = vmatmul.mubr.msk.f32.vlgmr.msra.gmra.mrb[52].mxu0 %vm438_vm1, %v2546_v39 }
 0xbbd   :  { %6622 = vmatpush3.bf16.msra.mxu0 %v7606_v33  ;;  %v2550_v32 = vpop.permute.xlu1 %2549  ;;  %6634 = vmatpush3.bf16.msra.mxu1 %v7624_v40 }
 0xbbe   :  { %v2548_v38 = vpop.permute.xlu0 %2547  ;;  %6624 = vmatprep.subr.bf16.mxu0 %v7629_v42  ;;  %6644 = vmatprep.subr.bf16.mxu1 %v7606_v33 }
 0xbbf   :  { %6268 = vmatprep.mubr.msk.f32.mxu0 %vm438_vm1, %v2548_v38 }
 0xbc0   :  { %6269 = vmatmul.mubr.msk.f32.gmra.mrb[54].mxu0 %vm438_vm1, %v2550_v32 }
 0xbc1   :  { %6626 = vmatpush3.bf16.msra.mxu0 %v7629_v42  ;;  %6293 = vmatprep.mubr.msk.f32.mxu0 %vm438_vm1, %v2544_v56  ;;  %v2655_v59 = vpop.permute.xlu1 %2654  ;;  %v2860_v56 = vld [vmem:[#allocation2 + $0xc8] sm:$0xff] }
 0xbc2   :  { %v2653_v53 = vpop.permute.xlu0 %2652  ;;  %6636 = vmatprep.subr.bf16.mxu0 %v7778_v62 }
 0xbc3   :  { %6282 = vmatprep.mubr.msk.f32.mxu1 %vm438_vm1, %v2653_v53  ;;  %v2859_v53 = vld [vmem:[#allocation2 + $0xc0] sm:$0xff] }
 0xbc4   :  { %6283 = vmatmul.mubr.msk.f32.gmra.mrb[54].mxu1 %vm438_vm1, %v2655_v59  ;;  %6294 = vmatmul.mubr.msk.f32.vlgmr.msra.gmra.mrb[56].mxu0 %vm438_vm1, %v2546_v39 }
 0xbc5   :  { %6296 = vmatprep.mubr.msk.f32.mxu0 %vm438_vm1, %v2548_v38  ;;  %6638 = vmatpush3.bf16.msra.mxu0 %v7778_v62  ;;  %v8267_v38 = vadd.f32 %v7566_v58, %v2860_v56 }
 0xbc6   :  { %6640 = vmatprep.subr.bf16.mxu0 %v7788_v3 }
 0xbc8   :  { %6297 = vmatmul.mubr.msk.f32.gmra.mrb[58].mxu0 %vm438_vm1, %v2550_v32 }
 0xbc9   :  { %6642 = vmatpush3.bf16.msra.mxu0 %v7788_v3 }
 0xbca   :  { %6652 = vmatprep.subr.bf16.mxu0 %v7601_v31 }
 0xc8b   :  { %v6281_v18 = vpop.f32.mrb[52].mxu1 }
 0xc8c   :  { %v2778_v17 = vadd.f32 %v6281_v18, %v7872_v9  ;;  %v2730_v57 = vpop.f32.mrb[53].mxu1 }
 0xc8d   :  { %v2777_v14 = vadd.f32 %v2730_v57, %v7872_v9 }
 0xc8e   :  { %2787 = vrot.lane.b32.xlu1 %v2778_v17, %s7143_s30  ;;  %v8270_v17 = vadd.f32 %v2859_v53, %v7569_v61 }
 0xc8f   :  { %2785 = vrot.lane.b32.xlu0 %v2777_v14, %s7143_s30  ;;  %v6267_v35 = vpop.f32.mrb[52].mxu0 }
 0xc90   :  { %v2625_v41 = vpop.f32.mrb[53].mxu0  ;;  %v8243_v24 = vadd.f32 %v8240_v27, %v6267_v35 }
 0xc91   :  { %v8246_v22 = vadd.f32 %v8240_v27, %v2625_v41 }
 0xc92   :  { %v2750_v4 = vadd.f32 %v6281_v18, %v8243_v24 }
 0xc93   :  { %v6270_v34 = vpop.f32.mrb[54].mxu0  ;;  %v2749_v0 = vadd.f32 %v2730_v57, %v8246_v22 }
 0xc94   :  { %v2635_v48 = vpop.f32.mrb[55].mxu0  ;;  %v5613_v30 = vmul.f32 -1.442695, %v2750_v4  ;;  %v8251_v2 = vadd.f32 %v8240_v27, %v6270_v34 }
 0xc95   :  { %v5612_v36 = vmul.f32 -1.442695, %v2749_v0  ;;  %v8254_v6 = vadd.f32 %v8240_v27, %v2635_v48 }
 0xc96   :  { %6925 = vpow2.f32 %v5613_v30 }
 0xc97   :  { %v6284_v45 = vpop.f32.mrb[54].mxu1  ;;  %v6295_v43 = vpop.f32.mrb[56].mxu0  ;;  %6927 = vpow2.f32 %v5612_v36 }
 0xc98   :  { %v2780_v13 = vadd.f32 %v6284_v45, %v7872_v9  ;;  %v2740_v25 = vpop.f32.mrb[55].mxu1  ;;  %v2931_v19 = vpop.f32.mrb[57].mxu0  ;;  %v2979_v50 = vadd.f32 %v6295_v43, %v7668_v63  ;;  %v2752_v11 = vadd.f32 %v6284_v45, %v8251_v2  ;;  %v2951_v23 = vadd.f32 %v6295_v43, %v8258_v44 }
 0xc99   :  { %v2779_v28 = vadd.f32 %v2740_v25, %v7872_v9  ;;  %v2978_v26 = vadd.f32 %v2931_v19, %v7668_v63  ;;  %v2751_v5 = vadd.f32 %v2740_v25, %v8254_v6  ;;  %v2950_v15 = vadd.f32 %v2931_v19, %v8262_v12 }
 0xc9a   :  { %2791 = vrot.lane.b32.xlu1 %v2780_v13, %s7143_s30  ;;  %v5615_v10 = vmul.f32 -1.442695, %v2752_v11  ;;  %v5621_v18 = vmul.f32 -1.442695, %v2951_v23 }
 0xc9b   :  { %v6298_v21 = vpop.f32.mrb[58].mxu0  ;;  %2789 = vrot.lane.b32.xlu0 %v2779_v28, %s7143_s30  ;;  %v5614_v39 = vmul.f32 -1.442695, %v2751_v5  ;;  %v5620_v57 = vmul.f32 -1.442695, %v2950_v15 }
 0xc9c   :  { %v2941_v60 = vpop.f32.mrb[59].mxu0  ;;  %v2981_v52 = vadd.f32 %v6298_v21, %v7668_v63  ;;  %6929 = vpow2.f32 %v5615_v10  ;;  %v2953_v14 = vadd.f32 %v6298_v21, %v8267_v38 }
 0xc9d   :  { %v2980_v8 = vadd.f32 %v2941_v60, %v7668_v63  ;;  %6931 = vpow2.f32 %v5614_v39  ;;  %v2952_v41 = vadd.f32 %v2941_v60, %v8270_v17 }
 0xc9e   :  { %2988 = vrot.lane.b32.xlu1 %v2979_v50, %s7143_s30  ;;  %6933 = vpow2.f32 %v5621_v18  ;;  %v5623_v48 = vmul.f32 -1.442695, %v2953_v14 }
 0xc9f   :  { %2986 = vrot.lane.b32.xlu0 %v2978_v26, %s7143_s30  ;;  %6935 = vpow2.f32 %v5620_v57  ;;  %v5622_v45 = vmul.f32 -1.442695, %v2952_v41 }
 0xca0   :  { %v6926_v32 = vpop.eup %6925 }
 0xca1   :  { %v6928_v59 = vpop.eup %6927  ;;  %v2766_v35 = vadd.f32 1.0, %v6926_v32 }
 0xca2   :  { %2992 = vrot.lane.b32.xlu1 %v2981_v52, %s7143_s30  ;;  %v2765_v34 = vadd.f32 1.0, %v6928_v59 }
 0xca3   :  { %2990 = vrot.lane.b32.xlu0 %v2980_v8, %s7143_s30  ;;  %6937 = vrcp.f32 %v2766_v35 }
 0xca4   :  { %6939 = vrcp.f32 %v2765_v34 }
 0xca5   :  { %6941 = vpow2.f32 %v5623_v48 }
 0xca6   :  { %6943 = vpow2.f32 %v5622_v45  ;;  %v6930_v43 = vpop.eup %6929 }
 0xca7   :  { %v6932_v13 = vpop.eup %6931  ;;  %v2768_v19 = vadd.f32 1.0, %v6930_v43 }
 0xca8   :  { %v6934_v25 = vpop.eup %6933  ;;  %v2767_v50 = vadd.f32 1.0, %v6932_v13 }
 0xca9   :  { %v6936_v28 = vpop.eup %6935  ;;  %6945 = vrcp.f32 %v2768_v19  ;;  %v2967_v4 = vadd.f32 1.0, %v6934_v25 }
 0xcaa   :  { %6947 = vrcp.f32 %v2767_v50  ;;  %v2966_v36 = vadd.f32 1.0, %v6936_v28 }
 0xcab   :  { %6949 = vrcp.f32 %v2967_v4 }
 0xcac   :  { %6951 = vrcp.f32 %v2966_v36 }
 0xcad   :  { %v8274_v21 = vpop.eup %6937 }
 0xcae   :  { %v8276_v52 = vpop.eup %6939 }
 0xcaf   :  { %v6942_v30 = vpop.eup %6941 }
 0xcb0   :  { %v6944_v11 = vpop.eup %6943  ;;  %v2969_v46 = vadd.f32 1.0, %v6942_v30 }
 0xcb1   :  { %v2968_v5 = vadd.f32 1.0, %v6944_v11 }
 0xcb2   :  { %6953 = vrcp.f32 %v2969_v46 }
 0xcb3   :  { %6955 = vrcp.f32 %v2968_v5  ;;  %v8282_v37 = vpop.eup %6945 }
 0xcb4   :  { %v8284_v10 = vpop.eup %6947 }
 0xcb5   :  { %v8289_v32 = vpop.eup %6949 }
 0xcb6   :  { %v8292_v59 = vpop.eup %6951 }
 0xcbc   :  { %v8297_v35 = vpop.eup %6953 }
 0xcbd   :  { %v8300_v34 = vpop.eup %6955 }
 0xd00   :  { %v2788_v26 = vpop.permute.xlu1 %2787 }
 0xd01   :  { %v2798_v60 = vmul.f32 %v8274_v21, %v2788_v26  ;;  %v2786_v8 = vpop.permute.xlu0 %2785 }
 0xd02   :  { %v2797_v0 = vmul.f32 %v8276_v52, %v2786_v8 }
 0xd03   :  { %2807 = vrot.lane.b32.xlu1 %v2798_v60, %s7143_s30 }
 0xd04   :  { %2805 = vrot.lane.b32.xlu0 %v2797_v0, %s7143_s30 }
 0xd0c   :  { %v2792_v23 = vpop.permute.xlu1 %2791 }
 0xd0d   :  { %v2800_v15 = vmul.f32 %v8282_v37, %v2792_v23  ;;  %v2790_v39 = vpop.permute.xlu0 %2789 }
 0xd0e   :  { %v2799_v56 = vmul.f32 %v8284_v10, %v2790_v39 }
 0xd0f   :  { %2811 = vrot.lane.b32.xlu1 %v2800_v15, %s7143_s30 }
 0xd10   :  { %2809 = vrot.lane.b32.xlu0 %v2799_v56, %s7143_s30  ;;  %v2989_v53 = vpop.permute.xlu1 %2988  ;;  %v2825_v56 = vsub.f32 1.0, %v8276_v52 }
 0xd11   :  { %v2999_v18 = vmul.f32 %v8289_v32, %v2989_v53  ;;  %v2987_v57 = vpop.permute.xlu0 %2986  ;;  %v2850_v53 = vmul.f32 %v8274_v21, %v8147_v55  ;;  %v2827_v55 = vsub.f32 1.0, %v8284_v10 }
 0xd12   :  { %v2998_v14 = vmul.f32 %v8292_v59, %v2987_v57 }
 0xd13   :  { %3008 = vrot.lane.b32.xlu1 %v2999_v18, %s7143_s30 }
 0xd14   :  { %3006 = vrot.lane.b32.xlu0 %v2998_v14, %s7143_s30  ;;  %v2993_v41 = vpop.permute.xlu1 %2992  ;;  %v2849_v14 = vmul.f32 %v8276_v52, %v8150_v47 }
 0xd15   :  { %v3001_v48 = vmul.f32 %v8297_v35, %v2993_v41  ;;  %v2991_v45 = vpop.permute.xlu0 %2990 }
 0xd16   :  { %v3000_v43 = vmul.f32 %v8300_v34, %v2991_v45 }
 0xd17   :  { %3012 = vrot.lane.b32.xlu1 %v3001_v48, %s7143_s30 }
 0xd18   :  { %3010 = vrot.lane.b32.xlu0 %v3000_v43, %s7143_s30  ;;  %v2828_v43 = vsub.f32 1.0, %v8282_v37 }
 0xd75   :  { %v2808_v13 = vpop.permute.xlu1 %2807 }
 0xd76   :  { %v2818_v25 = vadd.f32 %v2808_v13, %v8243_v24  ;;  %v2806_v19 = vpop.permute.xlu0 %2805 }
 0xd77   :  { %v2817_v28 = vadd.f32 %v2806_v19, %v8246_v22 }
 0xd78   :  { %6957 = vtanh.f32 %v2818_v25  ;;  %v2851_v25 = vmul.f32 %v8284_v10, %v8191_v49  ;;  %v3050_v49 = vmul.f32 %v8292_v59, %v8164_v1  ;;  %v3052_v1 = vmul.f32 %v8300_v34, %v8178_v7 }
 0xd79   :  { %6959 = vtanh.f32 %v2817_v28 }
 0xd81   :  { %v2812_v50 = vpop.permute.xlu1 %2811 }
 0xd82   :  { %v6958_v26 = vpop.eup %6957  ;;  %v2820_v60 = vadd.f32 %v2812_v50, %v8251_v2  ;;  %v2810_v8 = vpop.permute.xlu0 %2809  ;;  %v3027_v50 = vsub.f32 1.0, %v8289_v32 }
 0xd83   :  { %v6960_v4 = vpop.eup %6959  ;;  %v2819_v0 = vadd.f32 %v2810_v8, %v8254_v6  ;;  %2835 = vrot.lane.b32.xlu1 %v6958_v26, %s7144_s23  ;;  %v3026_v8 = vsub.f32 1.0, %v8292_v59 }
 0xd84   :  { %6961 = vtanh.f32 %v2820_v60  ;;  %2833 = vrot.lane.b32.xlu0 %v6960_v4, %s7144_s23  ;;  %v3051_v4 = vmul.f32 %v8289_v32, %v8161_v20  ;;  %v3028_v20 = vsub.f32 1.0, %v8300_v34  ;;  %v3053_v32 = vmul.f32 %v8297_v35, %v8175_v29 }
 0xd85   :  { %6963 = vtanh.f32 %v2819_v0  ;;  %v3009_v24 = vpop.permute.xlu1 %3008 }
 0xd86   :  { %v3019_v30 = vadd.f32 %v3009_v24, %v8258_v44  ;;  %v3007_v22 = vpop.permute.xlu0 %3006  ;;  %v3029_v24 = vsub.f32 1.0, %v8297_v35 }
 0xd87   :  { %v3018_v36 = vadd.f32 %v3007_v22, %v8262_v12 }
 0xd88   :  { %6965 = vtanh.f32 %v3019_v30 }
 0xd89   :  { %6967 = vtanh.f32 %v3018_v36  ;;  %v3013_v11 = vpop.permute.xlu1 %3012 }
 0xd8a   :  { %v3021_v2 = vadd.f32 %v3013_v11, %v8267_v38  ;;  %v3011_v46 = vpop.permute.xlu0 %3010  ;;  %v2826_v38 = vsub.f32 1.0, %v8274_v21  ;;  %v2852_v21 = vmul.f32 %v8282_v37, %v8189_v16 }
 0xd8b   :  { %v3020_v6 = vadd.f32 %v3011_v46, %v8270_v17 }
 0xd8c   :  { %6969 = vtanh.f32 %v3021_v2 }
 0xd8d   :  { %6971 = vtanh.f32 %v3020_v6 }
 0xd8e   :  { %v6962_v5 = vpop.eup %6961 }
 0xd8f   :  { %v6964_v23 = vpop.eup %6963  ;;  %2839 = vrot.lane.b32.xlu1 %v6962_v5, %s7144_s23 }
 0xd90   :  { %2837 = vrot.lane.b32.xlu0 %v6964_v23, %s7144_s23 }
 0xd92   :  { %v6966_v44 = vpop.eup %6965 }
 0xd93   :  { %v6968_v15 = vpop.eup %6967  ;;  %3036 = vrot.lane.b32.xlu1 %v6966_v44, %s7144_s23 }
 0xd94   :  { %3034 = vrot.lane.b32.xlu0 %v6968_v15, %s7144_s23 }
 0xd96   :  { %v6970_v12 = vpop.eup %6969 }
 0xd97   :  { %v6972_v39 = vpop.eup %6971  ;;  %3040 = vrot.lane.b32.xlu1 %v6970_v12, %s7144_s23 }
 0xd98   :  { %3038 = vrot.lane.b32.xlu0 %v6972_v39, %s7144_s23 }
 0xdf5   :  { %v2836_v17 = vpop.permute.xlu1 %2835 }
 0xdf6   :  { %v2846_v18 = vmul.f32 %v2836_v17, %v2826_v38  ;;  %v2834_v57 = vpop.permute.xlu0 %2833 }
 0xdf7   :  { %v2845_v41 = vmul.f32 %v2834_v57, %v2825_v56 }
 0xdf8   :  { %v8328_v48 = vadd.f32 %v2850_v53, %v2846_v18 }
 0xdf9   :  { %v8330_v45 = vadd.f32 %v2849_v14, %v2845_v41 }
 0xdfa   :  { %3169 = vrot.lane.b32.xlu1 %v8328_v48, %s7144_s23 }
 0xdfb   :  { %3167 = vrot.lane.b32.xlu0 %v8330_v45, %s7144_s23 }
 0xe01   :  { %v2840_v13 = vpop.permute.xlu1 %2839 }
 0xe02   :  { %v2848_v47 = vmul.f32 %v2840_v13, %v2828_v43  ;;  %v2838_v52 = vpop.permute.xlu0 %2837 }
 0xe03   :  { %v2847_v19 = vmul.f32 %v2838_v52, %v2827_v55 }
 0xe04   :  { %v8342_v28 = vadd.f32 %v2852_v21, %v2848_v47 }
 0xe05   :  { %v8345_v26 = vadd.f32 %v2851_v25, %v2847_v19  ;;  %v3037_v60 = vpop.permute.xlu1 %3036 }
 0xe06   :  { %v3047_v0 = vmul.f32 %v3037_v60, %v3027_v50  ;;  %v3035_v16 = vpop.permute.xlu0 %3034  ;;  %3173 = vrot.lane.b32.xlu1 %v8342_v28, %s7144_s23 }
 0xe07   :  { %v3046_v37 = vmul.f32 %v3035_v16, %v3026_v8  ;;  %3171 = vrot.lane.b32.xlu0 %v8345_v26, %s7144_s23 }
 0xe08   :  { %v8356_v10 = vadd.f32 %v3051_v4, %v3047_v0 }
 0xe09   :  { %v8359_v30 = vadd.f32 %v3050_v49, %v3046_v37  ;;  %v3041_v22 = vpop.permute.xlu1 %3040 }
 0xe0a   :  { %v3049_v36 = vmul.f32 %v3041_v22, %v3029_v24  ;;  %v3039_v11 = vpop.permute.xlu0 %3038  ;;  %3064 = vrot.lane.b32.xlu1 %v8356_v10, %s7144_s23 }
 0xe0b   :  { %v3048_v59 = vmul.f32 %v3039_v11, %v3028_v20  ;;  %3062 = vrot.lane.b32.xlu0 %v8359_v30, %s7144_s23 }
 0xe0c   :  { %v8370_v2 = vadd.f32 %v3053_v32, %v3049_v36 }
 0xe0d   :  { %v8372_v46 = vadd.f32 %v3052_v1, %v3048_v59 }
 0xe0e   :  { %3068 = vrot.lane.b32.xlu1 %v8370_v2, %s7144_s23 }
 0xe0f   :  { %3066 = vrot.lane.b32.xlu0 %v8372_v46, %s7144_s23 }
 0xe6c   :  { %v3170_v35 = vpop.permute.xlu1 %3169 }
 0xe6d   :  { %v3168_v29 = vpop.permute.xlu0 %3167 }
 0xe6e   :  { %6321 = vmatprep.mubr.msk.f32.mxu0 %vm438_vm1, %v3168_v29  ;;  %v3377_v29 = vld [vmem:[#allocation2 + $0x58] sm:$0xff] }
 0xe6f   :  { %6322 = vmatmul.mubr.msk.f32.vlgmr.msra.gmra.mrb[60].mxu0 %vm438_vm1, %v3170_v35 }
 0xe70   :  { %6654 = vmatpush3.bf16.msra.mxu0 %v7601_v31 }
 0xe71   :  { %6656 = vmatprep.subr.bf16.mxu0 %v7624_v40 }
 0xe74   :  { %6658 = vmatpush3.bf16.msra.mxu0 %v7624_v40 }
 0xe75   :  { %6668 = vmatprep.subr.bf16.mxu0 %v7606_v33 }
 0xe78   :  { %v3174_v7 = vpop.permute.xlu1 %3173 }
 0xe79   :  { %v3172_v34 = vpop.permute.xlu0 %3171 }
 0xe7a   :  { %6324 = vmatprep.mubr.msk.f32.mxu0 %vm438_vm1, %v3172_v34  ;;  %v3376_v34 = vld [vmem:[#allocation2 + $0x50] sm:$0xff] }
 0xe7b   :  { %6325 = vmatmul.mubr.msk.f32.gmra.mrb[62].mxu0 %vm438_vm1, %v3174_v7  ;;  %v8435_v7 = vadd.f32 %v7560_v51, %v3377_v29 }
 0xe7c   :  { %v3065_v6 = vpop.permute.xlu1 %3064 }
 0xe7d   :  { %v3063_v5 = vpop.permute.xlu0 %3062 }
 0xe7e   :  { %6307 = vmatprep.mubr.msk.f32.mxu1 %vm438_vm1, %v3063_v5 }
 0xe7f   :  { %6308 = vmatmul.mubr.msk.f32.vlgmr.msra.gmra.mrb[56].mxu1 %vm438_vm1, %v3065_v6 }
 0xe80   :  { %6646 = vmatpush3.bf16.msra.mxu1 %v7606_v33  ;;  %v3069_v44 = vpop.permute.xlu1 %3068 }
 0xe81   :  { %v3067_v23 = vpop.permute.xlu0 %3066  ;;  %6648 = vmatprep.subr.bf16.mxu1 %v7629_v42 }
 0xe82   :  { %6310 = vmatprep.mubr.msk.f32.mxu1 %vm438_vm1, %v3067_v23 }
 0xe83   :  { %6311 = vmatmul.mubr.msk.f32.gmra.mrb[58].mxu1 %vm438_vm1, %v3069_v44 }
 0xe84   :  { %6650 = vmatpush3.bf16.msra.mxu1 %v7629_v42  ;;  %6335 = vmatprep.mubr.msk.f32.mxu1 %vm438_vm1, %v3063_v5 }
 0xe85   :  { %6660 = vmatprep.subr.bf16.mxu1 %v7778_v62 }
 0xe87   :  { %6336 = vmatmul.mubr.msk.f32.vlgmr.msra.gmra.mrb[60].mxu1 %vm438_vm1, %v3065_v6  ;;  %v8438_v6 = vadd.f32 %v3376_v34, %v7563_v54 }
 0xe88   :  { %6338 = vmatprep.mubr.msk.f32.mxu1 %vm438_vm1, %v3067_v23  ;;  %6662 = vmatpush3.bf16.msra.mxu1 %v7778_v62  ;;  %v3379_v23 = vld [vmem:[#allocation2 + $0xd8] sm:$0xff] }
 0xe89   :  { %6664 = vmatprep.subr.bf16.mxu1 %v7788_v3 }
 0xe8b   :  { %6339 = vmatmul.mubr.msk.f32.gmra.mrb[62].mxu1 %vm438_vm1, %v3069_v44 }
 0xe8c   :  { %6666 = vmatpush3.bf16.msra.mxu1 %v7788_v3 }
 0xe8d   :  { %6676 = vmatprep.subr.bf16.mxu1 %v7601_v31 }
 0xf42   :  { %v6323_v15 = vpop.f32.mrb[60].mxu0 }
 0xf43   :  { %v3297_v12 = vadd.f32 %v6323_v15, %v7872_v9  ;;  %v3249_v39 = vpop.f32.mrb[61].mxu0 }
 0xf44   :  { %v3296_v38 = vadd.f32 %v3249_v39, %v7872_v9 }
 0xf45   :  { %3306 = vrot.lane.b32.xlu1 %v3297_v12, %s7143_s30  ;;  %v3378_v12 = vld [vmem:[#allocation2 + $0xd0] sm:$0xff] }
 0xf46   :  { %3304 = vrot.lane.b32.xlu0 %v3296_v38, %s7143_s30 }
 0xf4e   :  { %v6326_v17 = vpop.f32.mrb[62].mxu0 }
 0xf4f   :  { %v3299_v56 = vadd.f32 %v6326_v17, %v7872_v9  ;;  %v3259_v53 = vpop.f32.mrb[63].mxu0 }
 0xf50   :  { %v3298_v18 = vadd.f32 %v3259_v53, %v7872_v9 }
 0xf51   :  { %3310 = vrot.lane.b32.xlu1 %v3299_v56, %s7143_s30 }
 0xf52   :  { %3308 = vrot.lane.b32.xlu0 %v3298_v18, %s7143_s30  ;;  %v6309_v57 = vpop.f32.mrb[56].mxu1 }
 0xf53   :  { %v3144_v14 = vpop.f32.mrb[57].mxu1  ;;  %v8419_v60 = vadd.f32 %v8240_v27, %v6309_v57 }
 0xf54   :  { %v8422_v8 = vadd.f32 %v8240_v27, %v3144_v14 }
 0xf55   :  { %v3269_v4 = vadd.f32 %v6323_v15, %v8419_v60  ;;  %v8443_v15 = vadd.f32 %v7566_v58, %v3379_v23 }
 0xf56   :  { %v6312_v41 = vpop.f32.mrb[58].mxu1  ;;  %v3268_v0 = vadd.f32 %v3249_v39, %v8422_v8  ;;  %v8446_v39 = vadd.f32 %v3378_v12, %v7569_v61 }
 0xf57   :  { %v3154_v43 = vpop.f32.mrb[59].mxu1  ;;  %v5633_v16 = vmul.f32 -1.442695, %v3269_v4  ;;  %v8427_v37 = vadd.f32 %v8240_v27, %v6312_v41 }
 0xf58   :  { %v5632_v49 = vmul.f32 -1.442695, %v3268_v0  ;;  %v8430_v24 = vadd.f32 %v8240_v27, %v3154_v43 }
 0xf59   :  { %6973 = vpow2.f32 %v5633_v16  ;;  %v3271_v22 = vadd.f32 %v6326_v17, %v8427_v37 }
 0xf5a   :  { %v6337_v13 = vpop.f32.mrb[60].mxu1  ;;  %6975 = vpow2.f32 %v5632_v49  ;;  %v3270_v20 = vadd.f32 %v3259_v53, %v8430_v24 }
 0xf5b   :  { %v3498_v55 = vadd.f32 %v6337_v13, %v7668_v63  ;;  %v3450_v21 = vpop.f32.mrb[61].mxu1  ;;  %v5635_v32 = vmul.f32 -1.442695, %v3271_v22  ;;  %v3470_v5 = vadd.f32 %v6337_v13, %v8435_v7 }
 0xf5c   :  { %v3497_v47 = vadd.f32 %v3450_v21, %v7668_v63  ;;  %v5634_v36 = vmul.f32 -1.442695, %v3270_v20  ;;  %v3469_v44 = vadd.f32 %v3450_v21, %v8438_v6 }
 0xf5d   :  { %3507 = vrot.lane.b32.xlu1 %v3498_v55, %s7143_s30  ;;  %6977 = vpow2.f32 %v5635_v32  ;;  %v5641_v17 = vmul.f32 -1.442695, %v3470_v5 }
 0xf5e   :  { %3505 = vrot.lane.b32.xlu0 %v3497_v47, %s7143_s30  ;;  %v6340_v52 = vpop.f32.mrb[62].mxu1  ;;  %6979 = vpow2.f32 %v5634_v36  ;;  %v5640_v53 = vmul.f32 -1.442695, %v3469_v44 }
 0xf5f   :  { %v3500_v25 = vadd.f32 %v6340_v52, %v7668_v63  ;;  %v3460_v19 = vpop.f32.mrb[63].mxu1  ;;  %v3472_v38 = vadd.f32 %v6340_v52, %v8443_v15 }
 0xf60   :  { %v3499_v50 = vadd.f32 %v3460_v19, %v7668_v63  ;;  %v3471_v56 = vadd.f32 %v3460_v19, %v8446_v39 }
 0xf61   :  { %3511 = vrot.lane.b32.xlu1 %v3500_v25, %s7143_s30  ;;  %v5643_v14 = vmul.f32 -1.442695, %v3472_v38 }
 0xf62   :  { %3509 = vrot.lane.b32.xlu0 %v3499_v50, %s7143_s30  ;;  %v5642_v41 = vmul.f32 -1.442695, %v3471_v56 }
 0xf63   :  { %v6974_v11 = vpop.eup %6973 }
 0xf64   :  { %v6976_v1 = vpop.eup %6975  ;;  %v3285_v59 = vadd.f32 1.0, %v6974_v11 }
 0xf65   :  { %v3284_v35 = vadd.f32 1.0, %v6976_v1 }
 0xf66   :  { %6981 = vrcp.f32 %v3285_v59 }
 0xf67   :  { %6983 = vrcp.f32 %v3284_v35  ;;  %v6978_v18 = vpop.eup %6977 }
 0xf68   :  { %v6980_v57 = vpop.eup %6979  ;;  %6985 = vpow2.f32 %v5641_v17  ;;  %v3287_v43 = vadd.f32 1.0, %v6978_v18 }
 0xf69   :  { %6987 = vpow2.f32 %v5640_v53  ;;  %v3286_v13 = vadd.f32 1.0, %v6980_v57 }
 0xf6a   :  { %6989 = vpow2.f32 %v5643_v14 }
 0xf6b   :  { %6991 = vpow2.f32 %v5642_v41 }
 0xf6c   :  { %6993 = vrcp.f32 %v3287_v43 }
 0xf6d   :  { %6995 = vrcp.f32 %v3286_v13 }
 0xf70   :  { %v8450_v55 = vpop.eup %6981 }
 0xf71   :  { %v8452_v47 = vpop.eup %6983 }
 0xf72   :  { %v6986_v50 = vpop.eup %6985 }
 0xf73   :  { %v6988_v4 = vpop.eup %6987  ;;  %v3486_v16 = vadd.f32 1.0, %v6986_v50 }
 0xf74   :  { %v6990_v0 = vpop.eup %6989  ;;  %v3485_v22 = vadd.f32 1.0, %v6988_v4 }
 0xf75   :  { %v6992_v49 = vpop.eup %6991  ;;  %6997 = vrcp.f32 %v3486_v16  ;;  %v3488_v59 = vadd.f32 1.0, %v6990_v0 }
 0xf76   :  { %v8458_v20 = vpop.eup %6993  ;;  %6999 = vrcp.f32 %v3485_v22  ;;  %v3487_v35 = vadd.f32 1.0, %v6992_v49 }
 0xf77   :  { %v8460_v36 = vpop.eup %6995  ;;  %7001 = vrcp.f32 %v3488_v59 }
 0xf78   :  { %7003 = vrcp.f32 %v3487_v35  ;;  %v3345_v35 = vsub.f32 1.0, %v8450_v55 }
 0xf7f   :  { %v8466_v34 = vpop.eup %6997 }
 0xf80   :  { %v8468_v23 = vpop.eup %6999 }
 0xf81   :  { %v8473_v17 = vpop.eup %7001 }
 0xf82   :  { %v8476_v53 = vpop.eup %7003 }
 0xfb7   :  { %v3307_v21 = vpop.permute.xlu1 %3306 }
 0xfb8   :  { %v3317_v52 = vmul.f32 %v8450_v55, %v3307_v21  ;;  %v3305_v25 = vpop.permute.xlu0 %3304 }
 0xfb9   :  { %v3316_v19 = vmul.f32 %v8452_v47, %v3305_v25 }
 0xfba   :  { %3326 = vrot.lane.b32.xlu1 %v3317_v52, %s7143_s30 }
 0xfbb   :  { %3324 = vrot.lane.b32.xlu0 %v3316_v19, %s7143_s30 }
 0xfc3   :  { %v3311_v32 = vpop.permute.xlu1 %3310 }
 0xfc4   :  { %v3319_v11 = vmul.f32 %v8458_v20, %v3311_v32  ;;  %v3309_v1 = vpop.permute.xlu0 %3308 }
 0xfc5   :  { %v3318_v29 = vmul.f32 %v8460_v36, %v3309_v1 }
 0xfc6   :  { %3330 = vrot.lane.b32.xlu1 %v3319_v11, %s7143_s30 }
 0xfc7   :  { %3328 = vrot.lane.b32.xlu0 %v3318_v29, %s7143_s30 }
 0xfcf   :  { %v3508_v5 = vpop.permute.xlu1 %3507 }
 0xfd0   :  { %v3518_v44 = vmul.f32 %v8466_v34, %v3508_v5  ;;  %v3506_v12 = vpop.permute.xlu0 %3505  ;;  %v3344_v5 = vsub.f32 1.0, %v8452_v47 }
 0xfd1   :  { %v3517_v38 = vmul.f32 %v8468_v23, %v3506_v12 }
 0xfd2   :  { %3527 = vrot.lane.b32.xlu1 %v3518_v44, %s7143_s30 }
 0xfd3   :  { %3525 = vrot.lane.b32.xlu0 %v3517_v38, %s7143_s30  ;;  %v3512_v56 = vpop.permute.xlu1 %3511  ;;  %v3368_v38 = vmul.f32 %v8452_v47, %v8330_v45 }
 0xfd4   :  { %v3520_v18 = vmul.f32 %v8473_v17, %v3512_v56  ;;  %v3510_v57 = vpop.permute.xlu0 %3509 }
 0xfd5   :  { %v3519_v14 = vmul.f32 %v8476_v53, %v3510_v57 }
 0xfd6   :  { %3531 = vrot.lane.b32.xlu1 %v3520_v18, %s7143_s30 }
 0xfd7   :  { %3529 = vrot.lane.b32.xlu0 %v3519_v14, %s7143_s30  ;;  %v3347_v14 = vsub.f32 1.0, %v8458_v20 }
0x102c   :  { %v3327_v41 = vpop.permute.xlu1 %3326 }
0x102d   :  { %v3337_v43 = vadd.f32 %v3327_v41, %v8419_v60  ;;  %v3325_v13 = vpop.permute.xlu0 %3324 }
0x102e   :  { %v3336_v21 = vadd.f32 %v3325_v13, %v8422_v8 }
0x102f   :  { %7005 = vtanh.f32 %v3337_v43  ;;  %v3370_v43 = vmul.f32 %v8460_v36, %v8345_v26 }
0x1030   :  { %7007 = vtanh.f32 %v3336_v21 }
0x1038   :  { %v3331_v52 = vpop.permute.xlu1 %3330 }
0x1039   :  { %v7006_v25 = vpop.eup %7005  ;;  %v3339_v19 = vadd.f32 %v3331_v52, %v8427_v37  ;;  %v3329_v50 = vpop.permute.xlu0 %3328 }
0x103a   :  { %v7008_v4 = vpop.eup %7007  ;;  %v3338_v0 = vadd.f32 %v3329_v50, %v8430_v24  ;;  %3354 = vrot.lane.b32.xlu1 %v7006_v25, %s7144_s23  ;;  %v3546_v25 = vsub.f32 1.0, %v8466_v34  ;;  %v3569_v50 = vmul.f32 %v8468_v23, %v8359_v30  ;;  %v3571_v30 = vmul.f32 %v8476_v53, %v8372_v46 }
0x103b   :  { %7009 = vtanh.f32 %v3339_v19  ;;  %3352 = vrot.lane.b32.xlu0 %v7008_v4, %s7144_s23 }
0x103c   :  { %7011 = vtanh.f32 %v3338_v0 }
0x1044   :  { %v3528_v60 = vpop.permute.xlu1 %3527 }
0x1045   :  { %v7010_v16 = vpop.eup %7009  ;;  %v3538_v8 = vadd.f32 %v3528_v60, %v8435_v7  ;;  %v3526_v49 = vpop.permute.xlu0 %3525  ;;  %v3548_v60 = vsub.f32 1.0, %v8473_v17 }
0x1046   :  { %v7012_v22 = vpop.eup %7011  ;;  %v3537_v32 = vadd.f32 %v3526_v49, %v8438_v6  ;;  %3358 = vrot.lane.b32.xlu1 %v7010_v16, %s7144_s23  ;;  %v3547_v49 = vsub.f32 1.0, %v8476_v53 }
0x1047   :  { %7013 = vtanh.f32 %v3538_v8  ;;  %3356 = vrot.lane.b32.xlu0 %v7012_v22, %s7144_s23  ;;  %v3572_v22 = vmul.f32 %v8473_v17, %v8370_v2 }
0x1048   :  { %7015 = vtanh.f32 %v3537_v32  ;;  %v3532_v37 = vpop.permute.xlu1 %3531 }
0x1049   :  { %v3540_v24 = vadd.f32 %v3532_v37, %v8443_v15  ;;  %v3530_v11 = vpop.permute.xlu0 %3529 }
0x104a   :  { %v3539_v1 = vadd.f32 %v3530_v11, %v8446_v39  ;;  %v3369_v39 = vmul.f32 %v8450_v55, %v8328_v48  ;;  %v3346_v48 = vsub.f32 1.0, %v8460_v36  ;;  %v3371_v55 = vmul.f32 %v8458_v20, %v8342_v28 }
0x104b   :  { %7017 = vtanh.f32 %v3540_v24  ;;  %v3545_v28 = vsub.f32 1.0, %v8468_v23  ;;  %v3570_v20 = vmul.f32 %v8466_v34, %v8356_v10 }
0x104c   :  { %7019 = vtanh.f32 %v3539_v1 }
0x1051   :  { %v7014_v59 = vpop.eup %7013 }
0x1052   :  { %v7016_v7 = vpop.eup %7015  ;;  %3555 = vrot.lane.b32.xlu1 %v7014_v59, %s7144_s23 }
0x1053   :  { %3553 = vrot.lane.b32.xlu0 %v7016_v7, %s7144_s23 }
0x1055   :  { %v7018_v6 = vpop.eup %7017 }
0x1056   :  { %v7020_v29 = vpop.eup %7019  ;;  %3559 = vrot.lane.b32.xlu1 %v7018_v6, %s7144_s23 }
0x1057   :  { %3557 = vrot.lane.b32.xlu0 %v7020_v29, %s7144_s23 }
0x10ac   :  { %v3355_v15 = vpop.permute.xlu1 %3354 }
0x10ad   :  { %v3365_v44 = vmul.f32 %v3355_v15, %v3345_v35  ;;  %v3353_v12 = vpop.permute.xlu0 %3352 }
0x10ae   :  { %v3364_v56 = vmul.f32 %v3353_v12, %v3344_v5 }
0x10af   :  { %v8504_v18 = vadd.f32 %v3369_v39, %v3365_v44 }
0x10b0   :  { %v8506_v57 = vadd.f32 %v3368_v38, %v3364_v56 }
0x10b1   :  { %3688 = vrot.lane.b32.xlu1 %v8504_v18, %s7144_s23 }
0x10b2   :  { %3686 = vrot.lane.b32.xlu0 %v8506_v57, %s7144_s23 }
0x10b8   :  { %v3359_v41 = vpop.permute.xlu1 %3358 }
0x10b9   :  { %v3367_v45 = vmul.f32 %v3359_v41, %v3347_v14  ;;  %v3357_v47 = vpop.permute.xlu0 %3356 }
0x10ba   :  { %v3366_v13 = vmul.f32 %v3357_v47, %v3346_v48 }
0x10bb   :  { %v8518_v21 = vadd.f32 %v3371_v55, %v3367_v45 }
0x10bc   :  { %v8520_v52 = vadd.f32 %v3370_v43, %v3366_v13 }
0x10bd   :  { %3692 = vrot.lane.b32.xlu1 %v8518_v21, %s7144_s23 }
0x10be   :  { %3690 = vrot.lane.b32.xlu0 %v8520_v52, %s7144_s23 }
0x10c4   :  { %v3556_v19 = vpop.permute.xlu1 %3555 }
0x10c5   :  { %v3566_v26 = vmul.f32 %v3556_v19, %v3546_v25  ;;  %v3554_v36 = vpop.permute.xlu0 %3553 }
0x10c6   :  { %v3565_v4 = vmul.f32 %v3554_v36, %v3545_v28 }
0x10c7   :  { %v8532_v0 = vadd.f32 %v3570_v20, %v3566_v26 }
0x10c8   :  { %v8535_v16 = vadd.f32 %v3569_v50, %v3565_v4  ;;  %v3560_v8 = vpop.permute.xlu1 %3559 }
0x10c9   :  { %v3568_v32 = vmul.f32 %v3560_v8, %v3548_v60  ;;  %v3558_v10 = vpop.permute.xlu0 %3557  ;;  %3583 = vrot.lane.b32.xlu1 %v8532_v0, %s7144_s23 }
0x10ca   :  { %v3567_v34 = vmul.f32 %v3558_v10, %v3547_v49  ;;  %3581 = vrot.lane.b32.xlu0 %v8535_v16, %s7144_s23 }
0x10cb   :  { %v8546_v23 = vadd.f32 %v3572_v22, %v3568_v32 }
0x10cc   :  { %v8548_v37 = vadd.f32 %v3571_v30, %v3567_v34 }
0x10cd   :  { %3587 = vrot.lane.b32.xlu1 %v8546_v23, %s7144_s23 }
0x10ce   :  { %3585 = vrot.lane.b32.xlu0 %v8548_v37, %s7144_s23 }
0x1123   :  { %v3689_v17 = vpop.permute.xlu1 %3688 }
0x1124   :  { %v3687_v2 = vpop.permute.xlu0 %3686 }
0x1125   :  { %6363 = vmatprep.mubr.msk.f32.mxu1 %vm438_vm1, %v3687_v2 }
0x1126   :  { %6364 = vmatmul.mubr.msk.f32.vlgmr.msra.gmra.mrb[64].mxu1 %vm438_vm1, %v3689_v17  ;;  %v3896_v17 = vld [vmem:[#allocation2 + $0x68] sm:$0xff] }
0x1127   :  { %6678 = vmatpush3.bf16.msra.mxu1 %v7601_v31 }
0x1128   :  { %6680 = vmatprep.subr.bf16.mxu1 %v7624_v40 }
0x112b   :  { %6682 = vmatpush3.bf16.msra.mxu1 %v7624_v40 }
0x112c   :  { %6692 = vmatprep.subr.bf16.mxu1 %v7606_v33 }
0x112f   :  { %v3693_v53 = vpop.permute.xlu1 %3692 }
0x1130   :  { %v3691_v46 = vpop.permute.xlu0 %3690 }
0x1131   :  { %6366 = vmatprep.mubr.msk.f32.mxu1 %vm438_vm1, %v3691_v46 }
0x1132   :  { %6367 = vmatmul.mubr.msk.f32.gmra.mrb[66].mxu1 %vm438_vm1, %v3693_v53  ;;  %v8611_v53 = vadd.f32 %v7560_v51, %v3896_v17 }
0x113b   :  { %v3584_v24 = vpop.permute.xlu1 %3583 }
0x113c   :  { %v3582_v11 = vpop.permute.xlu0 %3581 }
0x113d   :  { %6349 = vmatprep.mubr.msk.f32.mxu0 %vm438_vm1, %v3582_v11 }
0x113e   :  { %6350 = vmatmul.mubr.msk.f32.vlgmr.msra.gmra.mrb[64].mxu0 %vm438_vm1, %v3584_v24 }
0x113f   :  { %6670 = vmatpush3.bf16.msra.mxu0 %v7606_v33  ;;  %v3588_v59 = vpop.permute.xlu1 %3587 }
0x1140   :  { %v3586_v1 = vpop.permute.xlu0 %3585  ;;  %6672 = vmatprep.subr.bf16.mxu0 %v7629_v42 }
0x1141   :  { %6352 = vmatprep.mubr.msk.f32.mxu0 %vm438_vm1, %v3586_v1 }
0x1142   :  { %6353 = vmatmul.mubr.msk.f32.gmra.mrb[66].mxu0 %vm438_vm1, %v3588_v59 }
0x1143   :  { %6674 = vmatpush3.bf16.msra.mxu0 %v7629_v42  ;;  %6377 = vmatprep.mubr.msk.f32.mxu0 %vm438_vm1, %v3582_v11 }
0x1144   :  { %6684 = vmatprep.subr.bf16.mxu0 %v7778_v62 }
0x1146   :  { %6378 = vmatmul.mubr.msk.f32.vlgmr.msra.gmra.mrb[68].mxu0 %vm438_vm1, %v3584_v24 }
0x1147   :  { %6380 = vmatprep.mubr.msk.f32.mxu0 %vm438_vm1, %v3586_v1  ;;  %6686 = vmatpush3.bf16.msra.mxu0 %v7778_v62 }
0x1148   :  { %6688 = vmatprep.subr.bf16.mxu0 %v7788_v3 }
0x114a   :  { %6381 = vmatmul.mubr.msk.f32.gmra.mrb[70].mxu0 %vm438_vm1, %v3588_v59 }
0x114b   :  { %6690 = vmatpush3.bf16.msra.mxu0 %v7788_v3 }
0x114c   :  { %6700 = vmatprep.subr.bf16.mxu0 %v7601_v31 }
0x11f9   :  { %v6365_v7 = vpop.f32.mrb[64].mxu1 }
0x11fa   :  { %v3816_v6 = vadd.f32 %v6365_v7, %v7872_v9  ;;  %v3768_v29 = vpop.f32.mrb[65].mxu1 }
0x11fb   :  { %v3815_v35 = vadd.f32 %v3768_v29, %v7872_v9 }
0x11fc   :  { %3825 = vrot.lane.b32.xlu1 %v3816_v6, %s7143_s30  ;;  %v3898_v6 = vld [vmem:[#allocation2 + $0xe8] sm:$0xff] }
0x11fd   :  { %3823 = vrot.lane.b32.xlu0 %v3815_v35, %s7143_s30  ;;  %v8619_v35 = vadd.f32 %v7566_v58, %v3898_v6 }
0x1205   :  { %v6368_v15 = vpop.f32.mrb[66].mxu1 }
0x1206   :  { %v3818_v5 = vadd.f32 %v6368_v15, %v7872_v9  ;;  %v3778_v39 = vpop.f32.mrb[67].mxu1 }
0x1207   :  { %v3817_v44 = vadd.f32 %v3778_v39, %v7872_v9 }
0x1208   :  { %3829 = vrot.lane.b32.xlu1 %v3818_v5, %s7143_s30 }
0x1209   :  { %3827 = vrot.lane.b32.xlu0 %v3817_v44, %s7143_s30 }
0x1211   :  { %v6351_v12 = vpop.f32.mrb[64].mxu0 }
0x1212   :  { %v3663_v38 = vpop.f32.mrb[65].mxu0  ;;  %v8595_v19 = vadd.f32 %v8240_v27, %v6351_v12 }
0x1213   :  { %v8598_v28 = vadd.f32 %v8240_v27, %v3663_v38 }
0x1214   :  { %v3788_v20 = vadd.f32 %v6365_v7, %v8595_v19 }
0x1215   :  { %v6354_v56 = vpop.f32.mrb[66].mxu0  ;;  %v3787_v26 = vadd.f32 %v3768_v29, %v8598_v28 }
0x1216   :  { %v3673_v14 = vpop.f32.mrb[67].mxu0  ;;  %v5653_v36 = vmul.f32 -1.442695, %v3788_v20  ;;  %v8603_v4 = vadd.f32 %v8240_v27, %v6354_v56 }
0x1217   :  { %v5652_v50 = vmul.f32 -1.442695, %v3787_v26  ;;  %v8606_v60 = vadd.f32 %v8240_v27, %v3673_v14  ;;  %v3895_v27 = vld [vmem:[#allocation2 + $0x60] sm:$0xff] }
0x1218   :  { %7021 = vpow2.f32 %v5653_v36  ;;  %v3790_v8 = vadd.f32 %v6368_v15, %v8603_v4  ;;  %v8614_v11 = vadd.f32 %v3895_v27, %v7563_v54  ;;  %v3897_v15 = vld [vmem:[#allocation2 + $0xe0] sm:$0xff] }
0x1219   :  { %v6379_v41 = vpop.f32.mrb[68].mxu0  ;;  %7023 = vpow2.f32 %v5652_v50  ;;  %v3789_v49 = vadd.f32 %v3778_v39, %v8606_v60  ;;  %v8624_v39 = vadd.f32 %v3897_v15, %v7569_v61 }
0x121a   :  { %v4017_v48 = vadd.f32 %v6379_v41, %v7668_v63  ;;  %v3969_v55 = vpop.f32.mrb[69].mxu0  ;;  %v5655_v22 = vmul.f32 -1.442695, %v3790_v8  ;;  %v3989_v1 = vadd.f32 %v6379_v41, %v8611_v53 }
0x121b   :  { %v4016_v45 = vadd.f32 %v3969_v55, %v7668_v63  ;;  %v5654_v32 = vmul.f32 -1.442695, %v3789_v49  ;;  %v3988_v7 = vadd.f32 %v3969_v55, %v8614_v11 }
0x121c   :  { %4026 = vrot.lane.b32.xlu1 %v4017_v48, %s7143_s30  ;;  %7025 = vpow2.f32 %v5655_v22  ;;  %v5661_v38 = vmul.f32 -1.442695, %v3989_v1 }
0x121d   :  { %4024 = vrot.lane.b32.xlu0 %v4016_v45, %s7143_s30  ;;  %v6382_v47 = vpop.f32.mrb[70].mxu0  ;;  %7027 = vpow2.f32 %v5654_v32  ;;  %v5660_v48 = vmul.f32 -1.442695, %v3988_v7 }
0x121e   :  { %v4019_v43 = vadd.f32 %v6382_v47, %v7668_v63  ;;  %v3979_v13 = vpop.f32.mrb[71].mxu0  ;;  %v3991_v56 = vadd.f32 %v6382_v47, %v8619_v35 }
0x121f   :  { %v4018_v25 = vadd.f32 %v3979_v13, %v7668_v63  ;;  %v3990_v55 = vadd.f32 %v3979_v13, %v8624_v39 }
0x1220   :  { %4030 = vrot.lane.b32.xlu1 %v4019_v43, %s7143_s30  ;;  %v5663_v43 = vmul.f32 -1.442695, %v3991_v56 }
0x1221   :  { %4028 = vrot.lane.b32.xlu0 %v4018_v25, %s7143_s30  ;;  %v5662_v25 = vmul.f32 -1.442695, %v3990_v55 }
0x1222   :  { %v7022_v10 = vpop.eup %7021 }
0x1223   :  { %v7024_v30 = vpop.eup %7023  ;;  %v3804_v34 = vadd.f32 1.0, %v7022_v10 }
0x1224   :  { %v3803_v2 = vadd.f32 1.0, %v7024_v30 }
0x1225   :  { %7029 = vrcp.f32 %v3804_v34 }
0x1226   :  { %7031 = vrcp.f32 %v3803_v2  ;;  %v7026_v46 = vpop.eup %7025 }
0x1227   :  { %v7028_v24 = vpop.eup %7027  ;;  %v3806_v59 = vadd.f32 1.0, %v7026_v46 }
0x1228   :  { %v3805_v29 = vadd.f32 1.0, %v7028_v24 }
0x1229   :  { %7033 = vrcp.f32 %v3806_v59 }
0x122a   :  { %7035 = vrcp.f32 %v3805_v29 }
0x122b   :  { %7037 = vpow2.f32 %v5661_v38 }
0x122c   :  { %7039 = vpow2.f32 %v5660_v48 }
0x122d   :  { %7041 = vpow2.f32 %v5663_v43 }
0x122e   :  { %7043 = vpow2.f32 %v5662_v25 }
0x122f   :  { %v8621_v5 = vpop.eup %7029 }
0x1230   :  { %v8626_v12 = vpop.eup %7031 }
0x1233   :  { %v8634_v47 = vpop.eup %7033 }
0x1234   :  { %v8636_v26 = vpop.eup %7035 }
0x1235   :  { %v7038_v8 = vpop.eup %7037 }
0x1236   :  { %v7040_v49 = vpop.eup %7039  ;;  %v4005_v22 = vadd.f32 1.0, %v7038_v8 }
0x1237   :  { %v7042_v32 = vpop.eup %7041  ;;  %v4004_v10 = vadd.f32 1.0, %v7040_v49 }
0x1238   :  { %v7044_v30 = vpop.eup %7043  ;;  %7045 = vrcp.f32 %v4005_v22  ;;  %v4007_v34 = vadd.f32 1.0, %v7042_v32 }
0x1239   :  { %7047 = vrcp.f32 %v4004_v10  ;;  %v4006_v2 = vadd.f32 1.0, %v7044_v30 }
0x123a   :  { %7049 = vrcp.f32 %v4007_v34 }
0x123b   :  { %7051 = vrcp.f32 %v4006_v2  ;;  %v3863_v2 = vsub.f32 1.0, %v8626_v12 }
0x1242   :  { %v8642_v17 = vpop.eup %7045 }
0x1243   :  { %v8644_v27 = vpop.eup %7047 }
0x1244   :  { %v8649_v7 = vpop.eup %7049 }
0x1245   :  { %v8652_v29 = vpop.eup %7051 }
0x126e   :  { %v3826_v44 = vpop.permute.xlu1 %3825 }
0x126f   :  { %v3836_v14 = vmul.f32 %v8621_v5, %v3826_v44  ;;  %v3824_v41 = vpop.permute.xlu0 %3823 }
0x1270   :  { %v3835_v45 = vmul.f32 %v8626_v12, %v3824_v41 }
0x1271   :  { %3845 = vrot.lane.b32.xlu1 %v3836_v14, %s7143_s30 }
0x1272   :  { %3843 = vrot.lane.b32.xlu0 %v3835_v45, %s7143_s30 }
0x127a   :  { %v3830_v20 = vpop.permute.xlu1 %3829 }
0x127b   :  { %v3838_v13 = vmul.f32 %v8634_v47, %v3830_v20  ;;  %v3828_v36 = vpop.permute.xlu0 %3827 }
0x127c   :  { %v3837_v50 = vmul.f32 %v8636_v26, %v3828_v36 }
0x127d   :  { %3849 = vrot.lane.b32.xlu1 %v3838_v13, %s7143_s30 }
0x127e   :  { %3847 = vrot.lane.b32.xlu0 %v3837_v50, %s7143_s30 }
0x128e   :  { %v4027_v46 = vpop.permute.xlu1 %4026 }
0x128f   :  { %v4037_v24 = vmul.f32 %v8642_v17, %v4027_v46  ;;  %v4025_v1 = vpop.permute.xlu0 %4024 }
0x1290   :  { %v4036_v59 = vmul.f32 %v8644_v27, %v4025_v1  ;;  %v3887_v1 = vmul.f32 %v8626_v12, %v8506_v57 }
0x1291   :  { %4046 = vrot.lane.b32.xlu1 %v4037_v24, %s7143_s30 }
0x1292   :  { %4044 = vrot.lane.b32.xlu0 %v4036_v59, %s7143_s30  ;;  %v4031_v6 = vpop.permute.xlu1 %4030 }
0x1293   :  { %v4039_v15 = vmul.f32 %v8649_v7, %v4031_v6  ;;  %v4029_v44 = vpop.permute.xlu0 %4028 }
0x1294   :  { %v4038_v38 = vmul.f32 %v8652_v29, %v4029_v44  ;;  %v3866_v44 = vsub.f32 1.0, %v8634_v47 }
0x1295   :  { %4050 = vrot.lane.b32.xlu1 %v4039_v15, %s7143_s30 }
0x1296   :  { %4048 = vrot.lane.b32.xlu0 %v4038_v38, %s7143_s30 }
0x12e3   :  { %v3846_v56 = vpop.permute.xlu1 %3845 }
0x12e4   :  { %v3856_v14 = vadd.f32 %v3846_v56, %v8595_v19  ;;  %v3844_v41 = vpop.permute.xlu0 %3843  ;;  %v3889_v56 = vmul.f32 %v8636_v26, %v8520_v52 }
0x12e5   :  { %v3855_v48 = vadd.f32 %v3844_v41, %v8598_v28 }
0x12e6   :  { %7053 = vtanh.f32 %v3856_v14 }
0x12e7   :  { %7055 = vtanh.f32 %v3855_v48 }
0x12ef   :  { %v3850_v55 = vpop.permute.xlu1 %3849 }
0x12f0   :  { %v7054_v45 = vpop.eup %7053  ;;  %v3858_v43 = vadd.f32 %v3850_v55, %v8603_v4  ;;  %v3848_v25 = vpop.permute.xlu0 %3847  ;;  %v4065_v55 = vsub.f32 1.0, %v8642_v17 }
0x12f1   :  { %v7056_v20 = vpop.eup %7055  ;;  %v3857_v13 = vadd.f32 %v3848_v25, %v8606_v60  ;;  %3873 = vrot.lane.b32.xlu1 %v7054_v45, %s7144_s23 }
0x12f2   :  { %7057 = vtanh.f32 %v3858_v43  ;;  %3871 = vrot.lane.b32.xlu0 %v7056_v20, %s7144_s23  ;;  %v4088_v43 = vmul.f32 %v8644_v27, %v8535_v16  ;;  %v4090_v16 = vmul.f32 %v8652_v29, %v8548_v37 }
0x12f3   :  { %7059 = vtanh.f32 %v3857_v13  ;;  %v4067_v13 = vsub.f32 1.0, %v8649_v7 }
0x12fc   :  { %v7058_v19 = vpop.eup %7057 }
0x12fd   :  { %v7060_v36 = vpop.eup %7059  ;;  %3877 = vrot.lane.b32.xlu1 %v7058_v19, %s7144_s23 }
0x12fe   :  { %3875 = vrot.lane.b32.xlu0 %v7060_v36, %s7144_s23 }
0x1303   :  { %v4047_v28 = vpop.permute.xlu1 %4046 }
0x1304   :  { %v4057_v50 = vadd.f32 %v4047_v28, %v8611_v53  ;;  %v4045_v4 = vpop.permute.xlu0 %4044  ;;  %v4066_v28 = vsub.f32 1.0, %v8652_v29 }
0x1305   :  { %v4056_v8 = vadd.f32 %v4045_v4, %v8614_v11  ;;  %v3864_v11 = vsub.f32 1.0, %v8621_v5 }
0x1306   :  { %7061 = vtanh.f32 %v4057_v50  ;;  %v4091_v50 = vmul.f32 %v8649_v7, %v8546_v23 }
0x1307   :  { %7063 = vtanh.f32 %v4056_v8  ;;  %v4051_v60 = vpop.permute.xlu1 %4050 }
0x1308   :  { %v4059_v49 = vadd.f32 %v4051_v60, %v8619_v35  ;;  %v4049_v22 = vpop.permute.xlu0 %4048 }
0x1309   :  { %v4058_v32 = vadd.f32 %v4049_v22, %v8624_v39  ;;  %v3888_v39 = vmul.f32 %v8621_v5, %v8504_v18  ;;  %v3865_v18 = vsub.f32 1.0, %v8636_v26  ;;  %v3890_v5 = vmul.f32 %v8634_v47, %v8518_v21 }
0x130a   :  { %7065 = vtanh.f32 %v4059_v49  ;;  %v4064_v21 = vsub.f32 1.0, %v8644_v27  ;;  %v4089_v47 = vmul.f32 %v8642_v17, %v8532_v0 }
0x130b   :  { %7067 = vtanh.f32 %v4058_v32 }
0x1310   :  { %v7062_v10 = vpop.eup %7061 }
0x1311   :  { %v7064_v30 = vpop.eup %7063  ;;  %4074 = vrot.lane.b32.xlu1 %v7062_v10, %s7144_s23 }
0x1312   :  { %4072 = vrot.lane.b32.xlu0 %v7064_v30, %s7144_s23 }
0x1314   :  { %v7066_v53 = vpop.eup %7065 }
0x1315   :  { %v7068_v34 = vpop.eup %7067  ;;  %4078 = vrot.lane.b32.xlu1 %v7066_v53, %s7144_s23 }
0x1316   :  { %4076 = vrot.lane.b32.xlu0 %v7068_v34, %s7144_s23 }
0x1363   :  { %v3874_v35 = vpop.permute.xlu1 %3873 }
0x1364   :  { %v3884_v46 = vmul.f32 %v3874_v35, %v3864_v11  ;;  %v3872_v24 = vpop.permute.xlu0 %3871 }
0x1365   :  { %v3883_v59 = vmul.f32 %v3872_v24, %v3863_v2 }
0x1366   :  { %v8680_v6 = vadd.f32 %v3888_v39, %v3884_v46 }
0x1367   :  { %v8682_v15 = vadd.f32 %v3887_v1, %v3883_v59 }
0x1368   :  { %4207 = vrot.lane.b32.xlu1 %v8680_v6, %s7144_s23 }
0x1369   :  { %4205 = vrot.lane.b32.xlu0 %v8682_v15, %s7144_s23 }
0x136f   :  { %v3878_v38 = vpop.permute.xlu1 %3877 }
0x1370   :  { %v3886_v57 = vmul.f32 %v3878_v38, %v3866_v44  ;;  %v3876_v12 = vpop.permute.xlu0 %3875 }
0x1371   :  { %v3885_v14 = vmul.f32 %v3876_v12, %v3865_v18  ;;  %v8771_v18 = vld [vmem:[%s9032_s11] ss:$0 sm:$0xff] }
0x1372   :  { %v8694_v41 = vadd.f32 %v3890_v5, %v3886_v57 }
0x1373   :  { %v8696_v48 = vadd.f32 %v3889_v56, %v3885_v14 }
0x1374   :  { %4211 = vrot.lane.b32.xlu1 %v8694_v41, %s7144_s23 }
0x1375   :  { %4209 = vrot.lane.b32.xlu0 %v8696_v48, %s7144_s23 }
0x1383   :  { %v4075_v45 = vpop.permute.xlu1 %4074 }
0x1384   :  { %v4085_v52 = vmul.f32 %v4075_v45, %v4065_v55  ;;  %v4073_v26 = vpop.permute.xlu0 %4072 }
0x1385   :  { %v4084_v25 = vmul.f32 %v4073_v26, %v4064_v21 }
0x1386   :  { %v8708_v20 = vadd.f32 %v4089_v47, %v4085_v52 }
0x1387   :  { %v8711_v19 = vadd.f32 %v4088_v43, %v4084_v25  ;;  %v4079_v36 = vpop.permute.xlu1 %4078 }
0x1388   :  { %v4087_v4 = vmul.f32 %v4079_v36, %v4067_v13  ;;  %v4077_v0 = vpop.permute.xlu0 %4076  ;;  %4102 = vrot.lane.b32.xlu1 %v8708_v20, %s7144_s23 }
0x1389   :  { %v4086_v17 = vmul.f32 %v4077_v0, %v4066_v28  ;;  %4100 = vrot.lane.b32.xlu0 %v8711_v19, %s7144_s23 }
0x138a   :  { %v8722_v27 = vadd.f32 %v4091_v50, %v4087_v4 }
0x138b   :  { %v8724_v8 = vadd.f32 %v4090_v16, %v4086_v17 }
0x138c   :  { %4106 = vrot.lane.b32.xlu1 %v8722_v27, %s7144_s23 }
0x138d   :  { %4104 = vrot.lane.b32.xlu0 %v8724_v8, %s7144_s23 }
0x13da   :  { %v4208_v7 = vpop.permute.xlu1 %4207 }
0x13db   :  { %v4206_v23 = vpop.permute.xlu0 %4205 }
0x13dc   :  { %6405 = vmatprep.mubr.msk.f32.mxu0 %vm438_vm1, %v4206_v23 }
0x13dd   :  { %6406 = vmatmul.mubr.msk.f32.vlgmr.msra.gmra.mrb[72].mxu0 %vm438_vm1, %v4208_v7 }
0x13de   :  { %6702 = vmatpush3.bf16.msra.mxu0 %v7601_v31 }
0x13df   :  { %6704 = vmatprep.subr.bf16.mxu0 %v7624_v40 }
0x13e2   :  { %6706 = vmatpush3.bf16.msra.mxu0 %v7624_v40 }
0x13e6   :  { %v4212_v29 = vpop.permute.xlu1 %4211 }
0x13e7   :  { %v4210_v37 = vpop.permute.xlu0 %4209 }
0x13e8   :  { %6408 = vmatprep.mubr.msk.f32.mxu0 %vm438_vm1, %v4210_v37 }
0x13e9   :  { %6409 = vmatmul.mubr.msk.f32.gmra.mrb[74].mxu0 %vm438_vm1, %v4212_v29  ;;  %v4415_v29 = vld [vmem:[#allocation2 + $0x78] sm:$0xff] }
0x13fa   :  { %v4103_v60 = vpop.permute.xlu1 %4102 }
0x13fb   :  { %v4101_v49 = vpop.permute.xlu0 %4100 }
0x13fc   :  { %6391 = vmatprep.mubr.msk.f32.mxu1 %vm438_vm1, %v4101_v49 }
0x13fd   :  { %6392 = vmatmul.mubr.msk.f32.vlgmr.msra.gmra.mrb[68].mxu1 %vm438_vm1, %v4103_v60 }
0x13fe   :  { %6694 = vmatpush3.bf16.msra.mxu1 %v7606_v33  ;;  %v4107_v31 = vpop.permute.xlu1 %4106 }
0x13ff   :  { %v4105_v22 = vpop.permute.xlu0 %4104  ;;  %6696 = vmatprep.subr.bf16.mxu1 %v7629_v42 }
0x1400   :  { %6394 = vmatprep.mubr.msk.f32.mxu1 %vm438_vm1, %v4105_v22 }
0x1401   :  { %6395 = vmatmul.mubr.msk.f32.gmra.mrb[70].mxu1 %vm438_vm1, %v4107_v31 }
0x1402   :  { %6698 = vmatpush3.bf16.msra.mxu1 %v7629_v42  ;;  %6419 = vmatprep.mubr.msk.f32.mxu1 %vm438_vm1, %v4101_v49  ;;  %v8796_v49 = vadd.f32 %v7560_v51, %v4415_v29 }
0x1403   :  { %6708 = vmatprep.subr.bf16.mxu1 %v7778_v62 }
0x1405   :  { %6420 = vmatmul.mubr.msk.f32.vlgmr.msra.gmra.mrb[72].mxu1 %vm438_vm1, %v4103_v60 }
0x1406   :  { %6422 = vmatprep.mubr.msk.f32.mxu1 %vm438_vm1, %v4105_v22  ;;  %6710 = vmatpush3.bf16.msra.mxu1 %v7778_v62  ;;  %v4414_v22 = vld [vmem:[#allocation2 + $0x70] sm:$0xff] }
0x1407   :  { %6712 = vmatprep.subr.bf16.mxu1 %v7788_v3 }
0x1409   :  { %6423 = vmatmul.mubr.msk.f32.gmra.mrb[74].mxu1 %vm438_vm1, %v4107_v31  ;;  %v8800_v31 = vadd.f32 %v4414_v22, %v7563_v54 }
0x140a   :  { %6714 = vmatpush3.bf16.msra.mxu1 %v7788_v3 }
0x14b0   :  { %v6407_v33 = vpop.f32.mrb[72].mxu0 }
0x14b1   :  { %v4335_v40 = vadd.f32 %v6407_v33, %v7872_v9  ;;  %v4287_v42 = vpop.f32.mrb[73].mxu0 }
0x14b2   :  { %v4334_v32 = vadd.f32 %v4287_v42, %v7872_v9 }
0x14b3   :  { %4344 = vrot.lane.b32.xlu1 %v4335_v40, %s7143_s30 }
0x14b4   :  { %4342 = vrot.lane.b32.xlu0 %v4334_v32, %s7143_s30 }
0x14bc   :  { %v6410_v10 = vpop.f32.mrb[74].mxu0 }
0x14bd   :  { %v4337_v30 = vadd.f32 %v6410_v10, %v7872_v9  ;;  %v4297_v62 = vpop.f32.mrb[75].mxu0 }
0x14be   :  { %v4336_v53 = vadd.f32 %v4297_v62, %v7872_v9 }
0x14bf   :  { %4348 = vrot.lane.b32.xlu1 %v4337_v30, %s7143_s30 }
0x14c0   :  { %4346 = vrot.lane.b32.xlu0 %v4336_v53, %s7143_s30 }
0x14d0   :  { %v6393_v3 = vpop.f32.mrb[68].mxu1 }
0x14d1   :  { %v4182_v34 = vpop.f32.mrb[69].mxu1  ;;  %v8774_v5 = vadd.f32 %v8771_v18, %v6393_v3 }
0x14d2   :  { %v8777_v57 = vadd.f32 %v8771_v18, %v4182_v34 }
0x14d3   :  { %v4307_v12 = vadd.f32 %v6407_v33, %v8774_v5  ;;  %v4417_v33 = vld [vmem:[#allocation2 + $0xf8] sm:$0xff] }
0x14d4   :  { %v6396_v11 = vpop.f32.mrb[70].mxu1  ;;  %v4306_v56 = vadd.f32 %v4287_v42, %v8777_v57  ;;  %v4416_v42 = vld [vmem:[#allocation2 + $0xf0] sm:$0xff] }
0x14d5   :  { %v4192_v35 = vpop.f32.mrb[71].mxu1  ;;  %v8782_v55 = vadd.f32 %v8771_v18, %v6396_v11  ;;  %v8809_v51 = vadd.f32 %v4416_v42, %v7569_v61 }
0x14d6   :  { %v5672_v14 = vmul.f32 -1.442695, %v4306_v56  ;;  %v8785_v45 = vadd.f32 %v8771_v18, %v4192_v35 }
0x14d7   :  { %v4309_v21 = vadd.f32 %v6410_v10, %v8782_v55  ;;  %v8806_v10 = vadd.f32 %v7566_v58, %v4417_v33 }
0x14d8   :  { %v6421_v2 = vpop.f32.mrb[72].mxu1  ;;  %v4308_v47 = vadd.f32 %v4297_v62, %v8785_v45 }
0x14d9   :  { %v4536_v39 = vadd.f32 %v6421_v2, %v7668_v63  ;;  %v4488_v46 = vpop.f32.mrb[73].mxu1  ;;  %v5675_v52 = vmul.f32 -1.442695, %v4309_v21  ;;  %v4508_v40 = vadd.f32 %v6421_v2, %v8796_v49 }
0x14da   :  { %v4535_v24 = vadd.f32 %v4488_v46, %v7668_v63  ;;  %v5674_v26 = vmul.f32 -1.442695, %v4308_v47  ;;  %v4507_v32 = vadd.f32 %v4488_v46, %v8800_v31 }
0x14db   :  { %4545 = vrot.lane.b32.xlu1 %v4536_v39, %s7143_s30  ;;  %v5681_v30 = vmul.f32 -1.442695, %v4508_v40 }
0x14dc   :  { %4543 = vrot.lane.b32.xlu0 %v4535_v24, %s7143_s30  ;;  %v6424_v1 = vpop.f32.mrb[74].mxu1  ;;  %v5680_v53 = vmul.f32 -1.442695, %v4507_v32 }
0x14dd   :  { %v4538_v59 = vadd.f32 %v6424_v1, %v7668_v63  ;;  %v4498_v44 = vpop.f32.mrb[75].mxu1  ;;  %v4510_v62 = vadd.f32 %v6424_v1, %v8806_v10 }
0x14de   :  { %v4537_v38 = vadd.f32 %v4498_v44, %v7668_v63  ;;  %v5673_v63 = vmul.f32 -1.442695, %v4307_v12  ;;  %v4509_v54 = vadd.f32 %v4498_v44, %v8809_v51 }
0x14df   :  { %4549 = vrot.lane.b32.xlu1 %v4538_v59, %s7143_s30  ;;  %v5683_v35 = vmul.f32 -1.442695, %v4510_v62 }
0x14e0   :  { %4547 = vrot.lane.b32.xlu0 %v4537_v38, %s7143_s30  ;;  %7069 = vpow2.f32 %v5673_v63  ;;  %v5682_v39 = vmul.f32 -1.442695, %v4509_v54 }
0x14e1   :  { %7071 = vpow2.f32 %v5672_v14 }
0x14e2   :  { %7073 = vpow2.f32 %v5675_v52 }
0x14e3   :  { %7075 = vpow2.f32 %v5674_v26 }
0x14ea   :  { %v7070_v43 = vpop.eup %7069 }
0x14eb   :  { %v7072_v25 = vpop.eup %7071  ;;  %v4323_v13 = vadd.f32 1.0, %v7070_v43 }
0x14ec   :  { %v4322_v36 = vadd.f32 1.0, %v7072_v25  ;;  %v7074_v28 = vpop.eup %7073 }
0x14ed   :  { %7077 = vrcp.f32 %v4323_v13  ;;  %v7076_v50 = vpop.eup %7075  ;;  %v4325_v4 = vadd.f32 1.0, %v7074_v28 }
0x14ee   :  { %7079 = vrcp.f32 %v4322_v36  ;;  %v4324_v0 = vadd.f32 1.0, %v7076_v50 }
0x14ef   :  { %7081 = vrcp.f32 %v4325_v4 }
0x14f0   :  { %7083 = vrcp.f32 %v4324_v0 }
0x14f1   :  { %7085 = vpow2.f32 %v5681_v30 }
0x14f2   :  { %7087 = vpow2.f32 %v5680_v53 }
0x14f3   :  { %7089 = vpow2.f32 %v5683_v35 }
0x14f4   :  { %7091 = vpow2.f32 %v5682_v39 }
0x14f7   :  { %v8789_v16 = vpop.eup %7077 }
0x14f8   :  { %v8791_v23 = vpop.eup %7079 }
0x14f9   :  { %v8813_v3 = vpop.eup %7081 }
0x14fa   :  { %v8815_v11 = vpop.eup %7083 }
0x14fb   :  { %v7086_v46 = vpop.eup %7085 }
0x14fc   :  { %v7088_v24 = vpop.eup %7087  ;;  %v4524_v1 = vadd.f32 1.0, %v7086_v46  ;;  %v4406_v46 = vmul.f32 %v8791_v23, %v8682_v15 }
0x14fd   :  { %v7090_v59 = vpop.eup %7089  ;;  %v4523_v44 = vadd.f32 1.0, %v7088_v24 }
0x14fe   :  { %v7092_v38 = vpop.eup %7091  ;;  %7093 = vrcp.f32 %v4524_v1  ;;  %v4526_v12 = vadd.f32 1.0, %v7090_v59 }
0x14ff   :  { %7095 = vrcp.f32 %v4523_v44  ;;  %v4525_v56 = vadd.f32 1.0, %v7092_v38  ;;  %v4385_v44 = vsub.f32 1.0, %v8813_v3 }
0x1500   :  { %7097 = vrcp.f32 %v4526_v12  ;;  %v4408_v12 = vmul.f32 %v8815_v11, %v8696_v48 }
0x1501   :  { %7099 = vrcp.f32 %v4525_v56 }
0x1508   :  { %v8821_v63 = vpop.eup %7093 }
0x1509   :  { %v8823_v21 = vpop.eup %7095 }
0x150a   :  { %v8828_v43 = vpop.eup %7097 }
0x150b   :  { %v8831_v13 = vpop.eup %7099 }
0x1525   :  { %v4345_v17 = vpop.permute.xlu1 %4344 }
0x1526   :  { %v4355_v7 = vmul.f32 %v8789_v16, %v4345_v17  ;;  %v4343_v37 = vpop.permute.xlu0 %4342 }
0x1527   :  { %v4354_v60 = vmul.f32 %v8791_v23, %v4343_v37 }
0x1528   :  { %4364 = vrot.lane.b32.xlu1 %v4355_v7, %s7143_s30 }
0x1529   :  { %4362 = vrot.lane.b32.xlu0 %v4354_v60, %s7143_s30 }
0x1531   :  { %v4349_v34 = vpop.permute.xlu1 %4348 }
0x1532   :  { %v4357_v2 = vmul.f32 %v8813_v3, %v4349_v34  ;;  %v4347_v58 = vpop.permute.xlu0 %4346 }
0x1533   :  { %v4356_v61 = vmul.f32 %v8815_v11, %v4347_v58  ;;  %v4382_v58 = vsub.f32 1.0, %v8791_v23 }
0x1534   :  { %4368 = vrot.lane.b32.xlu1 %v4357_v2, %s7143_s30 }
0x1535   :  { %4366 = vrot.lane.b32.xlu0 %v4356_v61, %s7143_s30 }
0x154d   :  { %v4546_v14 = vpop.permute.xlu1 %4545 }
0x154e   :  { %v4556_v47 = vmul.f32 %v8821_v63, %v4546_v14  ;;  %v4544_v52 = vpop.permute.xlu0 %4543 }
0x154f   :  { %v4555_v26 = vmul.f32 %v8823_v21, %v4544_v52  ;;  %v4584_v52 = vsub.f32 1.0, %v8821_v63 }
0x1550   :  { %4565 = vrot.lane.b32.xlu1 %v4556_v47, %s7143_s30 }
0x1551   :  { %4563 = vrot.lane.b32.xlu0 %v4555_v26, %s7143_s30  ;;  %v4550_v25 = vpop.permute.xlu1 %4549 }
0x1552   :  { %v4558_v36 = vmul.f32 %v8828_v43, %v4550_v25  ;;  %v4548_v28 = vpop.permute.xlu0 %4547  ;;  %v4607_v25 = vmul.f32 %v8823_v21, %v8711_v19 }
0x1553   :  { %v4557_v50 = vmul.f32 %v8831_v13, %v4548_v28 }
0x1554   :  { %4569 = vrot.lane.b32.xlu1 %v4558_v36, %s7143_s30 }
0x1555   :  { %4567 = vrot.lane.b32.xlu0 %v4557_v50, %s7143_s30  ;;  %v4586_v50 = vsub.f32 1.0, %v8828_v43 }
0x159a   :  { %v4365_v4 = vpop.permute.xlu1 %4364 }
0x159b   :  { %v4375_v0 = vadd.f32 %v4365_v4, %v8774_v5  ;;  %v4363_v17 = vpop.permute.xlu0 %4362 }
0x159c   :  { %v4374_v7 = vadd.f32 %v4363_v17, %v8777_v57  ;;  %v4585_v17 = vsub.f32 1.0, %v8831_v13 }
0x159d   :  { %7101 = vtanh.f32 %v4375_v0 }
0x159e   :  { %7103 = vtanh.f32 %v4374_v7  ;;  %v4610_v7 = vmul.f32 %v8828_v43, %v8722_v27 }
0x15a6   :  { %v4369_v37 = vpop.permute.xlu1 %4368 }
0x15a7   :  { %v7102_v29 = vpop.eup %7101  ;;  %v4377_v60 = vadd.f32 %v4369_v37, %v8782_v55  ;;  %v4367_v22 = vpop.permute.xlu0 %4366 }
0x15a8   :  { %v7104_v33 = vpop.eup %7103  ;;  %v4376_v40 = vadd.f32 %v4367_v22, %v8785_v45  ;;  %4392 = vrot.lane.b32.xlu1 %v7102_v29, %s7144_s23 }
0x15a9   :  { %7105 = vtanh.f32 %v4377_v60  ;;  %4390 = vrot.lane.b32.xlu0 %v7104_v33, %s7144_s23 }
0x15aa   :  { %7107 = vtanh.f32 %v4376_v40 }
0x15b3   :  { %v7106_v5 = vpop.eup %7105 }
0x15b4   :  { %v7108_v42 = vpop.eup %7107  ;;  %4396 = vrot.lane.b32.xlu1 %v7106_v5, %s7144_s23 }
0x15b5   :  { %4394 = vrot.lane.b32.xlu0 %v7108_v42, %s7144_s23 }
0x15c2   :  { %v4566_v57 = vpop.permute.xlu1 %4565 }
0x15c3   :  { %v4576_v32 = vadd.f32 %v4566_v57, %v8796_v49  ;;  %v4564_v55 = vpop.permute.xlu0 %4563 }
0x15c4   :  { %v4575_v30 = vadd.f32 %v4564_v55, %v8800_v31  ;;  %v4383_v31 = vsub.f32 1.0, %v8789_v16 }
0x15c5   :  { %7109 = vtanh.f32 %v4576_v32 }
0x15c6   :  { %7111 = vtanh.f32 %v4575_v30  ;;  %v4570_v45 = vpop.permute.xlu1 %4569 }
0x15c7   :  { %v4578_v62 = vadd.f32 %v4570_v45, %v8806_v10  ;;  %v4568_v53 = vpop.permute.xlu0 %4567 }
0x15c8   :  { %v4577_v54 = vadd.f32 %v4568_v53, %v8809_v51  ;;  %v4407_v51 = vmul.f32 %v8789_v16, %v8680_v6  ;;  %v4384_v6 = vsub.f32 1.0, %v8815_v11  ;;  %v4409_v16 = vmul.f32 %v8813_v3, %v8694_v41 }
0x15c9   :  { %7113 = vtanh.f32 %v4578_v62  ;;  %v4583_v41 = vsub.f32 1.0, %v8823_v21  ;;  %v4608_v3 = vmul.f32 %v8821_v63, %v8708_v20  ;;  %v4609_v20 = vmul.f32 %v8831_v13, %v8724_v8 }
0x15ca   :  { %7115 = vtanh.f32 %v4577_v54 }
0x15cf   :  { %v7110_v34 = vpop.eup %7109 }
0x15d0   :  { %v7112_v35 = vpop.eup %7111  ;;  %4593 = vrot.lane.b32.xlu1 %v7110_v34, %s7144_s23 }
0x15d1   :  { %4591 = vrot.lane.b32.xlu0 %v7112_v35, %s7144_s23 }
0x15d3   :  { %v7114_v49 = vpop.eup %7113 }
0x15d4   :  { %v7116_v2 = vpop.eup %7115  ;;  %4597 = vrot.lane.b32.xlu1 %v7114_v49, %s7144_s23 }
0x15d5   :  { %4595 = vrot.lane.b32.xlu0 %v7116_v2, %s7144_s23 }
0x161a   :  { %v4393_v10 = vpop.permute.xlu1 %4392 }
0x161b   :  { %v4403_v39 = vmul.f32 %v4393_v10, %v4383_v31  ;;  %v4391_v61 = vpop.permute.xlu0 %4390 }
0x161c   :  { %v4402_v24 = vmul.f32 %v4391_v61, %v4382_v58 }
0x161d   :  { %v8859_v1 = vadd.f32 %v4407_v51, %v4403_v39 }
0x161e   :  { %v8861_v59 = vadd.f32 %v4406_v46, %v4402_v24 }
0x161f   :  { %4726 = vrot.lane.b32.xlu1 %v8859_v1, %s7144_s23 }
0x1620   :  { %4724 = vrot.lane.b32.xlu0 %v8861_v59, %s7144_s23 }
0x1626   :  { %v4397_v38 = vpop.permute.xlu1 %4396 }
0x1627   :  { %v4405_v15 = vmul.f32 %v4397_v38, %v4385_v44  ;;  %v4395_v23 = vpop.permute.xlu0 %4394 }
0x1628   :  { %v4404_v56 = vmul.f32 %v4395_v23, %v4384_v6 }
0x1629   :  { %v8873_v14 = vadd.f32 %v4409_v16, %v4405_v15 }
0x162a   :  { %v8875_v47 = vadd.f32 %v4408_v12, %v4404_v56 }
0x162b   :  { %4730 = vrot.lane.b32.xlu1 %v8873_v14, %s7144_s23 }
0x162c   :  { %4728 = vrot.lane.b32.xlu0 %v8875_v47, %s7144_s23 }
0x1642   :  { %v4594_v26 = vpop.permute.xlu1 %4593 }
0x1643   :  { %v4604_v48 = vmul.f32 %v4594_v26, %v4584_v52  ;;  %v4592_v11 = vpop.permute.xlu0 %4591 }
0x1644   :  { %v4603_v36 = vmul.f32 %v4592_v11, %v4583_v41 }
0x1645   :  { %v4612_v28 = vadd.f32 %v4608_v3, %v4604_v48 }
0x1646   :  { %v4611_v4 = vadd.f32 %v4607_v25, %v4603_v36  ;;  %v4598_v0 = vpop.permute.xlu1 %4597 }
0x1647   :  { %v4606_v37 = vmul.f32 %v4598_v0, %v4586_v50  ;;  %v4596_v29 = vpop.permute.xlu0 %4595  ;;  %4621 = vrot.lane.b32.xlu1 %v4612_v28, %s7144_s23 }
0x1648   :  { %v4605_v63 = vmul.f32 %v4596_v29, %v4585_v17  ;;  %4619 = vrot.lane.b32.xlu0 %v4611_v4, %s7144_s23 }
0x1649   :  { %v4614_v19 = vadd.f32 %v4610_v7, %v4606_v37 }
0x164a   :  { %v4613_v21 = vadd.f32 %v4609_v20, %v4605_v63 }
0x164b   :  { %4625 = vrot.lane.b32.xlu1 %v4614_v19, %s7144_s23 }
0x164c   :  { %4623 = vrot.lane.b32.xlu0 %v4613_v21, %s7144_s23 }
0x1691   :  { %v4727_v22 = vpop.permute.xlu1 %4726 }
0x1692   :  { %v4725_v60 = vpop.permute.xlu0 %4724 }
0x1693   :  { %6447 = vmatprep.mubr.msk.f32.mxu1 %vm438_vm1, %v4725_v60 }
0x1694   :  { %6448 = vmatmul.mubr.msk.f32.vlgmr.msra.gmra.mrb[76].mxu1 %vm438_vm1, %v4727_v22 }
0x169d   :  { %v4731_v43 = vpop.permute.xlu1 %4730 }
0x169e   :  { %v4729_v27 = vpop.permute.xlu0 %4728 }
0x169f   :  { %6450 = vmatprep.mubr.msk.f32.mxu1 %vm438_vm1, %v4729_v27  ;;  %v4937_v27 = vld [vmem:[%s9035_s14] sm:$0xff] }
0x16a0   :  { %6451 = vmatmul.mubr.msk.f32.gmra.mrb[78].mxu1 %vm438_vm1, %v4731_v43  ;;  %v4938_v43 = vld [vmem:[%s9035_s14 + $0x8] sm:$0xff] }
0x16b9   :  { %v4622_v8 = vpop.permute.xlu1 %4621 }
0x16ba   :  { %v4620_v13 = vpop.permute.xlu0 %4619 }
0x16bb   :  { %6433 = vmatprep.mubr.msk.f32.mxu0 %vm438_vm1, %v4620_v13  ;;  %v6715_v13 = vpack.c.bf16 %v4938_v43, %v4937_v27 }
0x16bc   :  { %6434 = vmatmul.mubr.msk.f32.vlgmr.msra.gmra.mrb[76].mxu0 %vm438_vm1, %v4622_v8  ;;  %v4939_v8 = vld [vmem:[%s9035_s14 + $0x10] sm:$0xff] }
0x16bd   :  { %v4626_v40 = vpop.permute.xlu1 %4625  ;;  %6716 = vmatprep.subr.bf16.mxu0 %v6715_v13 }
0x16be   :  { %v4624_v33 = vpop.permute.xlu0 %4623  ;;  %6718 = vmatpush3.bf16.msra.mxu0 %v6715_v13 }
0x16bf   :  { %6436 = vmatprep.mubr.msk.f32.mxu0 %vm438_vm1, %v4624_v33  ;;  %v4940_v33 = vld [vmem:[%s9035_s14 + $0x18] sm:$0xff] }
0x16c0   :  { %6437 = vmatmul.mubr.msk.f32.gmra.mrb[78].mxu0 %vm438_vm1, %v4626_v40  ;;  %v6719_v40 = vpack.c.bf16 %v4940_v33, %v4939_v8 }
0x16c2   :  { %6720 = vmatprep.subr.bf16.mxu0 %v6719_v40 }
0x16c3   :  { %6722 = vmatpush3.bf16.msra.mxu0 %v6719_v40 }
0x1767   :  { %v6449_v5 = vpop.f32.mrb[76].mxu1 }
0x1768   :  { %v4854_v42 = vadd.f32 %v6449_v5, %v7872_v9  ;;  %v4806_v57 = vpop.f32.mrb[77].mxu1 }
0x1769   :  { %v4853_v32 = vadd.f32 %v4806_v57, %v7872_v9 }
0x176a   :  { %4863 = vrot.lane.b32.xlu1 %v4854_v42, %s7143_s30 }
0x176b   :  { %4861 = vrot.lane.b32.xlu0 %v4853_v32, %s7143_s30 }
0x1773   :  { %v6452_v55 = vpop.f32.mrb[78].mxu1 }
0x1774   :  { %v4856_v30 = vadd.f32 %v6452_v55, %v7872_v9  ;;  %v4816_v45 = vpop.f32.mrb[79].mxu1 }
0x1775   :  { %v4855_v62 = vadd.f32 %v4816_v45, %v7872_v9 }
0x1776   :  { %4867 = vrot.lane.b32.xlu1 %v4856_v30, %s7143_s30 }
0x1777   :  { %4865 = vrot.lane.b32.xlu0 %v4855_v62, %s7143_s30 }
0x178f   :  { %v6435_v53 = vpop.f32.mrb[76].mxu0 }
0x1790   :  { %v4701_v54 = vpop.f32.mrb[77].mxu0  ;;  %v4707_v49 = vadd.f32 %v8771_v18, %v6435_v53 }
0x1791   :  { %v4702_v2 = vadd.f32 %v8771_v18, %v4701_v54 }
0x1792   :  { %v4826_v31 = vadd.f32 %v6449_v5, %v4707_v49 }
0x1793   :  { %v6438_v34 = vpop.f32.mrb[78].mxu0  ;;  %v4825_v10 = vadd.f32 %v4806_v57, %v4702_v2 }
0x1794   :  { %v4711_v35 = vpop.f32.mrb[79].mxu0  ;;  %v5693_v58 = vmul.f32 -1.442695, %v4826_v31  ;;  %v4717_v39 = vadd.f32 %v8771_v18, %v6438_v34 }
0x1795   :  { %v5692_v51 = vmul.f32 -1.442695, %v4825_v10  ;;  %v4712_v9 = vadd.f32 %v8771_v18, %v4711_v35 }
0x1796   :  { %7117 = vpow2.f32 %v5693_v58  ;;  %v4828_v61 = vadd.f32 %v6452_v55, %v4717_v39 }
0x1797   :  { %7119 = vpow2.f32 %v5692_v51  ;;  %v4827_v46 = vadd.f32 %v4816_v45, %v4712_v9 }
0x1798   :  { %v5695_v24 = vmul.f32 -1.442695, %v4828_v61 }
0x1799   :  { %v5694_v44 = vmul.f32 -1.442695, %v4827_v46 }
0x179a   :  { %7121 = vpow2.f32 %v5695_v24 }
0x179b   :  { %7123 = vpow2.f32 %v5694_v44 }
0x17a0   :  { %v7118_v38 = vpop.eup %7117 }
0x17a1   :  { %v7120_v6 = vpop.eup %7119  ;;  %v4842_v16 = vadd.f32 1.0, %v7118_v38  ;;  %v5155_v38 = vld [vmem:[%s9037_s16 + $0x8] sm:$0xff] }
0x17a2   :  { %v4841_v15 = vadd.f32 1.0, %v7120_v6 }
0x17a3   :  { %7125 = vrcp.f32 %v4842_v16 }
0x17a4   :  { %7127 = vrcp.f32 %v4841_v15  ;;  %v7122_v23 = vpop.eup %7121 }
0x17a5   :  { %v7124_v12 = vpop.eup %7123  ;;  %v4844_v56 = vadd.f32 1.0, %v7122_v23 }
0x17a6   :  { %v4843_v52 = vadd.f32 1.0, %v7124_v12 }
0x17a7   :  { %7129 = vrcp.f32 %v4844_v56 }
0x17a8   :  { %7131 = vrcp.f32 %v4843_v52 }
0x17ad   :  { %v7126_v26 = vpop.eup %7125 }
0x17ae   :  { %v7128_v3 = vpop.eup %7127  ;;  %v4902_v57 = vsub.f32 1.0, %v7126_v26  ;;  %v4926_v30 = vmul.f32 %v7126_v26, %v8859_v1 }
0x17af   :  { %v4901_v55 = vsub.f32 1.0, %v7128_v3  ;;  %v4925_v53 = vmul.f32 %v7128_v3, %v8861_v59 }
0x17b1   :  { %v7130_v25 = vpop.eup %7129 }
0x17b2   :  { %v7132_v28 = vpop.eup %7131  ;;  %v4928_v10 = vmul.f32 %v7130_v25, %v8873_v14  ;;  %v4933_v14 = vld [vmem:[%s9036_s13] sm:$0xff] }
0x17b3   :  { %v4903_v31 = vsub.f32 1.0, %v7132_v28  ;;  %v4927_v1 = vmul.f32 %v7132_v28, %v8875_v47  ;;  %6475 = vmatprep.mubr.msk.f32.mxu1 %vm438_vm1, %v4933_v14  ;;  %v5154_v47 = vld [vmem:[%s9037_s16] sm:$0xff] }
0x17b4   :  { %v6731_v6 = vpack.c.bf16 %v5155_v38, %v5154_v47 }
0x17b6   :  { %6732 = vmatprep.subr.bf16.mxu0 %v6731_v6 }
0x17dc   :  { %v4864_v41 = vpop.permute.xlu1 %4863 }
0x17dd   :  { %v4874_v18 = vmul.f32 %v7126_v26, %v4864_v41  ;;  %v4862_v48 = vpop.permute.xlu0 %4861  ;;  %v4934_v26 = vld [vmem:[%s9036_s13 + $0x8] sm:$0xff]  ;;  %v4935_v41 = vld [vmem:[%s9036_s13 + $0x10] sm:$0xff] }
0x17de   :  { %v4873_v11 = vmul.f32 %v7128_v3, %v4862_v48  ;;  %v4936_v3 = vld [vmem:[%s9036_s13 + $0x18] sm:$0xff] }
0x17df   :  { %4883 = vrot.lane.b32.xlu1 %v4874_v18, %s7143_s30  ;;  %v5156_v18 = vld [vmem:[%s9037_s16 + $0x10] sm:$0xff]  ;;  %v5157_v48 = vld [vmem:[%s9037_s16 + $0x18] sm:$0xff] }
0x17e0   :  { %4881 = vrot.lane.b32.xlu0 %v4873_v11, %s7143_s30  ;;  %v6735_v11 = vpack.c.bf16 %v5157_v48, %v5156_v18 }
0x17e8   :  { %v4868_v36 = vpop.permute.xlu1 %4867 }
0x17e9   :  { %v4876_v50 = vmul.f32 %v7130_v25, %v4868_v36  ;;  %v4866_v4 = vpop.permute.xlu0 %4865 }
0x17ea   :  { %v4875_v0 = vmul.f32 %v7132_v28, %v4866_v4 }
0x17eb   :  { %4887 = vrot.lane.b32.xlu1 %v4876_v50, %s7143_s30 }
0x17ec   :  { %4885 = vrot.lane.b32.xlu0 %v4875_v0, %s7143_s30 }
0x1851   :  { %v4884_v17 = vpop.permute.xlu1 %4883 }
0x1852   :  { %v4894_v7 = vadd.f32 %v4884_v17, %v4707_v49  ;;  %v4882_v37 = vpop.permute.xlu0 %4881  ;;  %v4904_v49 = vsub.f32 1.0, %v7130_v25  ;;  %v5700_v25 = vld [vmem:[%s9038_s15] ss:$0 sm:$0xff] }
0x1853   :  { %v4893_v29 = vadd.f32 %v4882_v37, %v4702_v2 }
0x1854   :  { %7133 = vtanh.f32 %v4894_v7 }
0x1855   :  { %7135 = vtanh.f32 %v4893_v29 }
0x185d   :  { %v4888_v20 = vpop.permute.xlu1 %4887 }
0x185e   :  { %v7134_v63 = vpop.eup %7133  ;;  %v4896_v19 = vadd.f32 %v4888_v20, %v4717_v39  ;;  %v4886_v21 = vpop.permute.xlu0 %4885 }
0x185f   :  { %v7136_v60 = vpop.eup %7135  ;;  %v4895_v22 = vadd.f32 %v4886_v21, %v4712_v9  ;;  %4911 = vrot.lane.b32.xlu1 %v7134_v63, %s7144_s23  ;;  %v5351_v21 = vld [vmem:[%s9039_s18] sm:$0xff] }
0x1860   :  { %7137 = vtanh.f32 %v4896_v19  ;;  %4909 = vrot.lane.b32.xlu0 %v7136_v60, %s7144_s23  ;;  %v5352_v60 = vld [vmem:[%s9039_s18 + $0x8] sm:$0xff] }
0x1861   :  { %7139 = vtanh.f32 %v4895_v22  ;;  %v6747_v22 = vpack.c.bf16 %v5352_v60, %v5351_v21 }
0x186a   :  { %v7138_v5 = vpop.eup %7137 }
0x186b   :  { %v7140_v42 = vpop.eup %7139  ;;  %4915 = vrot.lane.b32.xlu1 %v7138_v5, %s7144_s23  ;;  %v5353_v5 = vld [vmem:[%s9039_s18 + $0x10] sm:$0xff] }
0x186c   :  { %4913 = vrot.lane.b32.xlu0 %v7140_v42, %s7144_s23  ;;  %v5354_v42 = vld [vmem:[%s9039_s18 + $0x18] sm:$0xff] }
0x18d1   :  { %v4912_v32 = vpop.permute.xlu1 %4911 }
0x18d2   :  { %v4922_v45 = vmul.f32 %v4912_v32, %v4902_v57  ;;  %v4910_v62 = vpop.permute.xlu0 %4909  ;;  %v6751_v57 = vpack.c.bf16 %v5354_v42, %v5353_v5  ;;  %v5709_v32 = vld [vmem:[%s9040_s17] ss:$0 sm:$0xff] }
0x18d3   :  { %v4921_v54 = vmul.f32 %v4910_v62, %v4901_v55 }
0x18d4   :  { %v4930_v34 = vadd.f32 %v4926_v30, %v4922_v45 }
0x18d5   :  { %v4929_v35 = vadd.f32 %v4925_v53, %v4921_v54 }
0x18d6   :  { %4947 = vrot.lane.b32.xlu1 %v4930_v34, %s7144_s23 }
0x18d7   :  { %4945 = vrot.lane.b32.xlu0 %v4929_v35, %s7144_s23 }
0x18dd   :  { %v4916_v2 = vpop.permute.xlu1 %4915 }
0x18de   :  { %v4924_v58 = vmul.f32 %v4916_v2, %v4904_v49  ;;  %v4914_v51 = vpop.permute.xlu0 %4913 }
0x18df   :  { %v4923_v39 = vmul.f32 %v4914_v51, %v4903_v31 }
0x18e0   :  { %v4932_v9 = vadd.f32 %v4928_v10, %v4924_v58  ;;  %v5714_v58 = vld [vmem:[%s9041_s19] ss:$0 sm:$0xff] }
0x18e1   :  { %v4931_v61 = vadd.f32 %v4927_v1, %v4923_v39 }
0x18e2   :  { %4951 = vrot.lane.b32.xlu1 %v4932_v9, %s7144_s23 }
0x18e3   :  { %4949 = vrot.lane.b32.xlu0 %v4931_v61, %s7144_s23 }
0x1948   :  { %v4948_v46 = vpop.permute.xlu1 %4947 }
0x1949   :  { %v4946_v59 = vpop.permute.xlu0 %4945 }
0x194a   :  { %6461 = vmatprep.mubr.msk.f32.mxu0 %vm438_vm1, %v4946_v59 }
0x194b   :  { %6462 = vmatmul.mubr.msk.f32.vlgmr.msra.gmra.mrb[80].mxu0 %vm438_vm1, %v4948_v46 }
0x194c   :  { %6734 = vmatpush3.bf16.msra.mxu0 %v6731_v6 }
0x194d   :  { %6736 = vmatprep.subr.bf16.mxu0 %v6735_v11 }
0x1950   :  { %6738 = vmatpush3.bf16.msra.mxu0 %v6735_v11 }
0x1951   :  { %6748 = vmatprep.subr.bf16.mxu0 %v6747_v22 }
0x1954   :  { %v4952_v44 = vpop.permute.xlu1 %4951 }
0x1955   :  { %v4950_v24 = vpop.permute.xlu0 %4949 }
0x1956   :  { %6464 = vmatprep.mubr.msk.f32.mxu0 %vm438_vm1, %v4950_v24 }
0x1957   :  { %6465 = vmatmul.mubr.msk.f32.gmra.mrb[82].mxu0 %vm438_vm1, %v4952_v44 }
0x1a1e   :  { %v6463_v16 = vpop.f32.mrb[80].mxu0 }
0x1a1f   :  { %v5027_v15 = vpop.f32.mrb[81].mxu0 }
0x1a20   :  { %v6723_v23 = vpack.c.bf16 %v6463_v16, %v5027_v15 }
0x1a22   :  { %6724 = vmatprep.subr.bf16.mxu1 %v6723_v23 }
0x1a23   :  { %6726 = vmatpush3.bf16.msra.mxu1 %v6723_v23 }
0x1a2a   :  { %v6466_v12 = vpop.f32.mrb[82].mxu0 }
0x1a2b   :  { %v5037_v56 = vpop.f32.mrb[83].mxu0 }
0x1a2c   :  { %v6727_v52 = vpack.c.bf16 %v6466_v12, %v5037_v56 }
0x1a2e   :  { %6728 = vmatprep.subr.bf16.mxu1 %v6727_v52 }
0x1a2f   :  { %6730 = vmatpush3.bf16.msra.mxu1 %v6727_v52 }
0x1a32   :  { %6476 = vmatmul.mubr.msk.f32.vlgmr.msra.gmra.mrb[80].mxu1 %vm438_vm1, %v4934_v26 }
0x1a33   :  { %6478 = vmatprep.mubr.msk.f32.mxu1 %vm438_vm1, %v4935_v41 }
0x1a36   :  { %6479 = vmatmul.mubr.msk.f32.gmra.mrb[82].mxu1 %vm438_vm1, %v4936_v3 }
0x1a37   :  { %6503 = vmatprep.mubr.msk.f32.mxu1 %vm438_vm1, %v4933_v14 }
0x1b05   :  { %v6477_v36 = vpop.f32.mrb[80].mxu1 }
0x1b06   :  { %v5137_v28 = vadd.f32 %v6477_v36, %v5700_v25  ;;  %v5131_v50 = vpop.f32.mrb[81].mxu1 }
0x1b07   :  { %v5132_v4 = vadd.f32 %v5700_v25, %v5131_v50 }
0x1b08   :  { %v5151_v7 = vmax.f32 %v5137_v28, 0.0 }
0x1b09   :  { %v5150_v0 = vmax.f32 %v5132_v4, 0.0  ;;  %v6480_v17 = vpop.f32.mrb[82].mxu1 }
0x1b0a   :  { %v5147_v37 = vadd.f32 %v6480_v17, %v5700_v25  ;;  %v5141_v29 = vpop.f32.mrb[83].mxu1 }
0x1b0b   :  { %v5142_v20 = vadd.f32 %v5700_v25, %v5141_v29  ;;  %6489 = vmatprep.mubr.msk.f32.mxu0 %vm438_vm1, %v5150_v0 }
0x1b0c   :  { %6490 = vmatmul.mubr.msk.f32.vlgmr.msra.gmra.mrb[84].mxu0 %vm438_vm1, %v5151_v7  ;;  %v5153_v19 = vmax.f32 %v5147_v37, 0.0 }
0x1b0d   :  { %v5152_v63 = vmax.f32 %v5142_v20, 0.0  ;;  %6750 = vmatpush3.bf16.msra.mxu0 %v6747_v22 }
0x1b0e   :  { %6752 = vmatprep.subr.bf16.mxu0 %v6751_v57 }
0x1b0f   :  { %6492 = vmatprep.mubr.msk.f32.mxu0 %vm438_vm1, %v5152_v63 }
0x1b10   :  { %6493 = vmatmul.mubr.msk.f32.gmra.mrb[86].mxu0 %vm438_vm1, %v5153_v19 }
0x1b11   :  { %6754 = vmatpush3.bf16.msra.mxu0 %v6751_v57 }
0x1bdf   :  { %v6491_v27 = vpop.f32.mrb[84].mxu0 }
0x1be0   :  { %v5236_v43 = vpop.f32.mrb[85].mxu0 }
0x1be1   :  { %v6739_v8 = vpack.c.bf16 %v6491_v27, %v5236_v43 }
0x1be3   :  { %v6494_v13 = vpop.f32.mrb[86].mxu0  ;;  %6740 = vmatprep.subr.bf16.mxu1 %v6739_v8 }
0x1be4   :  { %v5246_v33 = vpop.f32.mrb[87].mxu0  ;;  %6742 = vmatpush3.bf16.msra.mxu1 %v6739_v8 }
0x1be5   :  { %v6743_v40 = vpack.c.bf16 %v6494_v13, %v5246_v33 }
0x1be7   :  { %6744 = vmatprep.subr.bf16.mxu1 %v6743_v40 }
0x1be8   :  { %6746 = vmatpush3.bf16.msra.mxu1 %v6743_v40 }
0x1beb   :  { %6504 = vmatmul.mubr.msk.f32.vlgmr.msra.gmra.mrb[84].mxu1 %vm438_vm1, %v4934_v26 }
0x1bec   :  { %6506 = vmatprep.mubr.msk.f32.mxu1 %vm438_vm1, %v4935_v41 }
0x1bef   :  { %6507 = vmatmul.mubr.msk.f32.gmra.mrb[86].mxu1 %vm438_vm1, %v4936_v3 }
0x1cbe   :  { %v6505_v55 = vpop.f32.mrb[84].mxu1 }
0x1cbf   :  { %v5334_v30 = vadd.f32 %v6505_v55, %v5709_v32  ;;  %v5328_v45 = vpop.f32.mrb[85].mxu1 }
0x1cc0   :  { %v5329_v62 = vadd.f32 %v5709_v32, %v5328_v45 }
0x1cc1   :  { %v5348_v34 = vmax.f32 %v5334_v30, 0.0 }
0x1cc2   :  { %v5347_v53 = vmax.f32 %v5329_v62, 0.0  ;;  %v6508_v54 = vpop.f32.mrb[86].mxu1 }
0x1cc3   :  { %v5344_v35 = vadd.f32 %v6508_v54, %v5709_v32  ;;  %v5338_v49 = vpop.f32.mrb[87].mxu1 }
0x1cc4   :  { %v5339_v2 = vadd.f32 %v5709_v32, %v5338_v49  ;;  %6517 = vmatprep.mubr.msk.f32.mxu0 %vm438_vm1, %v5347_v53 }
0x1cc5   :  { %6518 = vmatmul.mubr.msk.f32.vlgmr.msra.gmra.mrb[88].mxu0 %vm438_vm1, %v5348_v34  ;;  %v5350_v10 = vmax.f32 %v5344_v35, 0.0 }
0x1cc6   :  { %v5349_v31 = vmax.f32 %v5339_v2, 0.0 }
0x1cc8   :  { %6520 = vmatprep.mubr.msk.f32.mxu0 %vm438_vm1, %v5349_v31 }
0x1cc9   :  { %6521 = vmatmul.mubr.msk.f32.gmra.mrb[90].mxu0 %vm438_vm1, %v5350_v10 }
0x1d98   :  { %v6519_v51 = vpop.f32.mrb[88].mxu0 }
0x1d99   :  { %v5446_v1 = vadd.f32 %v6519_v51, %v5714_v58  ;;  %v5440_v39 = vpop.f32.mrb[89].mxu0 }
0x1d9a   :  { %v5441_v9 = vadd.f32 %v5714_v58, %v5440_v39 }
0x1d9b   :  { %5460 = vst [vmem:[%s9042_s20 + $0x8] sm:$0xff] %v5446_v1 }
0x1d9c   :  { %5459 = vst [vmem:[%s9042_s20] sm:$0xff] %v5441_v9  ;;  %v6522_v61 = vpop.f32.mrb[90].mxu0 }
0x1d9d   :  { %v5456_v59 = vadd.f32 %v6522_v61, %v5714_v58  ;;  %v5450_v46 = vpop.f32.mrb[91].mxu0 }
0x1d9e   :  { %v5451_v24 = vadd.f32 %v5714_v58, %v5450_v46 }
0x1d9f   :  { %5462 = vst [vmem:[%s9042_s20 + $0x18] sm:$0xff] %v5456_v59 }
0x1da0   :  { %5461 = vst [vmem:[%s9042_s20 + $0x10] sm:$0xff] %v5451_v24 }

</bundles_post_ra>
